<compile_context>
chip_gen: v7x
topology: tpu7x:2x2x1
jax: 0.10.0
libtpu: 0.0.40
codegen_flags: <defaults>
</compile_context>

<pallas_src>
import functools

import jax
import jax.numpy as jnp
from jax.experimental import pallas as pl
from jax.experimental.pallas import tpu as pltpu

LANE = 128                      # conv OUTPUT channel padding (lane-dense stores)
CARRY_ALIGN = 8                 # carried activation channels (K = C*16 stays %128)
ROW_ALIGN = 16                  # bf16 sublane packing for matmul rows
MAX_TILE_M = 1024               # max rows per grid step
VMEM_LIMIT = 64 * 1024 * 1024   # explicit scoped-VMEM limit (v5e default is ~16 MiB)
VMEM_BUDGET = 40 * 1024 * 1024  # per-step footprint target (fits v7x's 64 MiB VMEM)
BN_EPS = 1e-5
NEG_SLOPE = 0.2


def _round_up(n, m):
    return ((n + m - 1) // m) * m


def _choose_tiling(m, k, c):
    """Pick (row tile, padded row count).

    Tile = largest power of two <= MAX_TILE_M whose per-step footprint
    (double-buffered bf16 A block + resident bf16 weight x2 + buffered output,
    f32 worst case, + stats rows) stays under VMEM_BUDGET.  Rows are padded up
    to a multiple of the tile so the grid never degrades to tiny tiles."""
    tm = MAX_TILE_M
    while tm > ROW_ALIGN:
        need = 2 * tm * k * 2 + 2 * k * c * 2 + 2 * tm * c * 4 + 4 * 8 * c * 4
        if need <= VMEM_BUDGET:
            break
        tm //= 2
    m_aligned = _round_up(m, ROW_ALIGN)
    if m_aligned <= tm:
        return m_aligned, m_aligned
    return tm, _round_up(m, tm)


def _pad_rows(a, m_pad):
    if a.shape[0] != m_pad:
        a = jnp.pad(a, ((0, m_pad - a.shape[0]), (0, 0)))
    return a


# ---------------------------------------------------------------------------
# Pallas kernels
# ---------------------------------------------------------------------------
def _matmul_act_kernel(a_ref, b_ref, o_ref, *, act):
    """Conv matmul (bf16 operands, f32 MXU accumulation) + fused activation."""
    y = jnp.dot(a_ref[...], b_ref[...], preferred_element_type=jnp.float32)
    if act == "lrelu":
        y = jnp.where(y > 0, y, NEG_SLOPE * y)
    elif act == "sigmoid":
        # exp -> EUP, reciprocal(approx=True) -> EUP vrcp (divide off the VPU)
        y = jnp.clip(pl.reciprocal(1.0 + jnp.exp(-y), approx=True), 0.0, 1.0)
    o_ref[...] = y.astype(o_ref.dtype)


def _matmul_stats_kernel(a_ref, b_ref, y_ref, ps_ref, pq_ref):
    """Conv matmul + per-tile BatchNorm partial statistics.

    y is stored in bf16; the per-channel partial sum / sum-of-squares are
    computed from the f32 MXU result and written into row 0 of this tile's
    (8, C) stats block (rows 1-7 zero), so there is no cross-iteration
    accumulation and the grid axis is fully parallel."""
    y = jnp.dot(a_ref[...], b_ref[...], preferred_element_type=jnp.float32)
    y_ref[...] = y.astype(y_ref.dtype)
    s = jnp.sum(y, axis=0, keepdims=True)          # (1, C) f32
    q = jnp.sum(y * y, axis=0, keepdims=True)      # (1, C) f32
    row0 = jax.lax.broadcasted_iota(jnp.int32, ps_ref.shape, 0) == 0
    ps_ref[...] = jnp.where(row0, s, 0.0)
    pq_ref[...] = jnp.where(row0, q, 0.0)


def _bn_lrelu_kernel(y_ref, sum_ref, ssq_ref, g_ref, b_ref, o_ref, *, count):
    """Train-mode BatchNorm (batch mean / biased variance) + LeakyReLU(0.2)."""
    inv_n = 1.0 / count
    mean = sum_ref[...] * inv_n
    var = jnp.maximum(ssq_ref[...] * inv_n - mean * mean, 0.0)
    scale = g_ref[...] * jax.lax.rsqrt(var + BN_EPS)
    shift = b_ref[...] - mean * scale
    z = y_ref[...].astype(jnp.float32) * scale + shift
    o_ref[...] = jnp.where(z > 0, z, NEG_SLOPE * z).astype(o_ref.dtype)


# ---------------------------------------------------------------------------
# pallas_call wrappers
# ---------------------------------------------------------------------------
def conv_act(patches, w_kc, act, out_dtype):
    """(M, K) bf16 @ (K, Cp) bf16 with the activation fused as the epilogue."""
    m_real, k = patches.shape
    c = w_kc.shape[1]
    tm, m_pad = _choose_tiling(m_real, k, c)
    patches = _pad_rows(patches, m_pad)
    out = pl.pallas_call(
        functools.partial(_matmul_act_kernel, act=act),
        out_shape=jax.ShapeDtypeStruct((m_pad, c), out_dtype),
        grid=(m_pad // tm,),
        in_specs=[pl.BlockSpec((tm, k), lambda i: (i, 0)),
                  pl.BlockSpec((k, c), lambda i: (0, 0))],
        out_specs=pl.BlockSpec((tm, c), lambda i: (i, 0)),
        compiler_params=pltpu.CompilerParams(
            dimension_semantics=("parallel",),
            vmem_limit_bytes=VMEM_LIMIT),
    )(patches, w_kc)
    return out[:m_real] if m_pad != m_real else out


def conv_bn_lrelu(patches, w_kc, gamma, beta, out_dtype):
    """Conv matmul with fused per-tile BN-stat partials (bf16 y intermediate),
    then one elementwise pass applying affine BN + LeakyReLU(0.2)."""
    m_real, k = patches.shape
    c = w_kc.shape[1]
    tm, m_pad = _choose_tiling(m_real, k, c)
    patches = _pad_rows(patches, m_pad)
    ntiles = m_pad // tm

    y, ps, pq = pl.pallas_call(
        _matmul_stats_kernel,
        out_shape=(jax.ShapeDtypeStruct((m_pad, c), jnp.bfloat16),
                   jax.ShapeDtypeStruct((ntiles * 8, c), jnp.float32),
                   jax.ShapeDtypeStruct((ntiles * 8, c), jnp.float32)),
        grid=(ntiles,),
        in_specs=[pl.BlockSpec((tm, k), lambda i: (i, 0)),
                  pl.BlockSpec((k, c), lambda i: (0, 0))],
        out_specs=(pl.BlockSpec((tm, c), lambda i: (i, 0)),
                   pl.BlockSpec((8, c), lambda i: (i, 0)),
                   pl.BlockSpec((8, c), lambda i: (i, 0))),
        compiler_params=pltpu.CompilerParams(
            dimension_semantics=("parallel",),   # no cross-iteration accumulation
            vmem_limit_bytes=VMEM_LIMIT),
    )(patches, w_kc)

    # tiny cross-tile reduction of the partial stats (padded rows contribute 0)
    s = jnp.sum(ps, axis=0, keepdims=True)
    ss = jnp.sum(pq, axis=0, keepdims=True)

    out = pl.pallas_call(
        functools.partial(_bn_lrelu_kernel, count=float(m_real)),
        out_shape=jax.ShapeDtypeStruct((m_pad, c), out_dtype),
        grid=(ntiles,),
        in_specs=[pl.BlockSpec((tm, c), lambda i: (i, 0)),
                  pl.BlockSpec((1, c), lambda i: (0, 0)),
                  pl.BlockSpec((1, c), lambda i: (0, 0)),
                  pl.BlockSpec((1, c), lambda i: (0, 0)),
                  pl.BlockSpec((1, c), lambda i: (0, 0))],
        out_specs=pl.BlockSpec((tm, c), lambda i: (i, 0)),
        compiler_params=pltpu.CompilerParams(
            dimension_semantics=("parallel",),
            vmem_limit_bytes=VMEM_LIMIT),
    )(y, s, ss, gamma, beta)
    return out[:m_real] if m_pad != m_real else out


# ---------------------------------------------------------------------------
# XLA glue: im2col (single fused op) — the only non-Pallas data movement
# ---------------------------------------------------------------------------
def extract_patches(x_nhwc, k, stride, pad):
    """NHWC -> (N*Ho*Wo, C*k*k) im2col matrix.  Patch features are ordered
    (C, kh, kw), matching PyTorch's Conv2d.weight.view(C_out, -1) flattening."""
    n = x_nhwc.shape[0]
    p = jax.lax.conv_general_dilated_patches(
        x_nhwc, filter_shape=(k, k), window_strides=(stride, stride),
        padding=((pad, pad), (pad, pad)),
        dimension_numbers=("NHWC", "HWIO", "NHWC"))
    _, ho, wo, kk = p.shape
    return p.reshape(n * ho * wo, kk), ho, wo


# ---------------------------------------------------------------------------
# Model
# ---------------------------------------------------------------------------
def anime_discriminator_forward(x_nchw, params, *, channels):
    """x: (N, in_planes, 64, 64) NCHW float32 -> (N,) float32.
    `channels` is the static tuple of real conv output channels per block."""
    n = x_nchw.shape[0]
    # single layout change + bf16 cast on the (small) network input,
    # channels padded once to a multiple of 8 so layer-1 K = 8*16 = 128
    x = jnp.transpose(x_nchw, (0, 2, 3, 1)).astype(jnp.bfloat16)
    cin = x.shape[-1]
    cin8 = _round_up(cin, CARRY_ALIGN)
    if cin8 != cin:
        x = jnp.pad(x, ((0, 0), (0, 0), (0, 0), (0, cin8 - cin)))

    # block 1: Conv(k4, s2, p1) + LeakyReLU(0.2)  (activation fused in matmul)
    p, ho, wo = extract_patches(x, 4, 2, 1)
    y = conv_act(p, params["w1"], "lrelu", jnp.bfloat16)       # (M, 128-padded)
    c = _round_up(channels[0], CARRY_ALIGN)
    x = y[:, :c].reshape(n, ho, wo, c)                          # carry only real-ish C

    # blocks 2-4: Conv + BatchNorm(train mode) + LeakyReLU(0.2)
    for i in (2, 3, 4):
        p, ho, wo = extract_patches(x, 4, 2, 1)
        y = conv_bn_lrelu(p, params[f"w{i}"], params[f"g{i}"], params[f"b{i}"],
                          jnp.bfloat16)
        c = _round_up(channels[i - 1], CARRY_ALIGN)
        x = y[:, :c].reshape(n, ho, wo, c)

    # block 5: Conv(k4, s1, p0) + Sigmoid ; real output is channel 0
    p, _, _ = extract_patches(x, 4, 1, 0)
    y = conv_act(p, params["w5"], "sigmoid", jnp.float32)       # (N, 128-padded)
    return y[:, 0]                                              # == .view(-1)


def init_params(key, in_planes, depth):
    """PyTorch-layout params matching weights_init: conv ~ N(0, 0.02),
    BN gamma ~ N(1, 0.02), BN beta = 0."""
    ks = jax.random.split(key, 8)
    std = 0.02
    p = {}
    p["w1"] = std * jax.random.normal(ks[0], (depth, in_planes, 4, 4), jnp.float32)
    p["w2"] = std * jax.random.normal(ks[1], (depth * 2, depth, 4, 4), jnp.float32)
    p["g2"] = 1.0 + std * jax.random.normal(ks[2], (depth * 2,), jnp.float32)
    p["b2"] = jnp.zeros((depth * 2,), jnp.float32)
    p["w3"] = std * jax.random.normal(ks[3], (depth * 4, depth * 2, 4, 4), jnp.float32)
    p["g3"] = 1.0 + std * jax.random.normal(ks[4], (depth * 4,), jnp.float32)
    p["b3"] = jnp.zeros((depth * 4,), jnp.float32)
    p["w4"] = std * jax.random.normal(ks[5], (depth * 8, depth * 4, 4, 4), jnp.float32)
    p["g4"] = 1.0 + std * jax.random.normal(ks[6], (depth * 8,), jnp.float32)
    p["b4"] = jnp.zeros((depth * 8,), jnp.float32)
    p["w5"] = std * jax.random.normal(ks[7], (1, depth * 8, 4, 4), jnp.float32)
    return p


def prepare_params(raw, in_planes):
    """One-time conversion of PyTorch-layout params into the kernel layout.

    Conv weights (C_out, C_in, kh, kw) -> (K, C_out_p) bf16 matmul matrices,
    K flattened in (C_in_carry, kh, kw) order (matching the im2col feature
    order), where the carried input-channel dim is padded only to a multiple
    of 8 and the OUTPUT channel dim is padded to 128 lanes.  BN gamma/beta ->
    (1, C_out_p) f32 rows; padded output channels get gamma=beta=0 so they
    stay exactly 0 through BN + LeakyReLU."""
    p = {}
    cin_real = in_planes
    for i in (1, 2, 3, 4, 5):
        w = raw[f"w{i}"]
        cout, cin, kh, kw = w.shape
        assert cin == cin_real
        cin8 = _round_up(cin_real, CARRY_ALIGN)
        cout_p = _round_up(cout, LANE)
        w = jnp.pad(w, ((0, cout_p - cout), (0, cin8 - cin), (0, 0), (0, 0)))
        p[f"w{i}"] = w.reshape(cout_p, cin8 * kh * kw).T.astype(jnp.bfloat16)
        if i in (2, 3, 4):
            p[f"g{i}"] = jnp.pad(raw[f"g{i}"], (0, cout_p - cout)).reshape(1, -1)
            p[f"b{i}"] = jnp.pad(raw[f"b{i}"], (0, cout_p - cout)).reshape(1, -1)
        cin_real = cout
    return p


if __name__ == "__main__":
    key = jax.random.PRNGKey(0)
    kx, kp = jax.random.split(key)
    # 64x64 spatial is required by the architecture (4 stride-2 convs followed
    # by a 4x4 valid conv -> 1x1); keep batch / channel counts small.
    batch, in_planes, depth = 2, 3, 8
    x = jax.random.normal(kx, (batch, in_planes, 64, 64), jnp.float32)
    channels = (depth, depth * 2, depth * 4, depth * 8, 1)
    params = prepare_params(init_params(kp, in_planes, depth), in_planes)

    fwd = jax.jit(functools.partial(anime_discriminator_forward, channels=channels))
    out = jax.block_until_ready(fwd(x, params))

    assert out.shape == (batch,), out.shape
    assert bool(jnp.all(jnp.isfinite(out)))
    assert bool(jnp.all((out >= 0.0) & (out <= 1.0)))   # sigmoid range
    print("KERNEL_OK")
</pallas_src>

<mosaic_0001>
module attributes {stable_mosaic.version = 11 : i64} {
  func.func @_matmul_act_kernel(%arg0: i32, %arg1: memref<1024x128xbf16, #tpu.memory_space<vmem>>, %arg2: memref<128x128xbf16, #tpu.memory_space<vmem>>, %arg3: memref<1024x128xbf16, #tpu.memory_space<vmem>>) attributes {dimension_semantics = [#tpu.dimension_semantics<parallel>], iteration_bounds = array<i64: 2>, scalar_prefetch = 0 : i64, scratch_operands = 0 : i64, tpu.core_type = #tpu.core_type<tc>, window_params = [{transform_indices = @transform_0, window_bounds = array<i64: 1024, 128>}, {pipeline_mode = #tpu.pipeline_mode<synchronous>, transform_indices = @transform_1, window_bounds = array<i64: 128, 128>}, {transform_indices = @transform_2, window_bounds = array<i64: 1024, 128>}]} {
    %c0 = arith.constant 0 : index
    %c0_0 = arith.constant 0 : index
    %0 = vector.load %arg1[%c0, %c0_0] : memref<1024x128xbf16, #tpu.memory_space<vmem>>, vector<1024x128xbf16>
    %c0_1 = arith.constant 0 : index
    %c0_2 = arith.constant 0 : index
    %1 = vector.load %arg2[%c0_1, %c0_2] : memref<128x128xbf16, #tpu.memory_space<vmem>>, vector<128x128xbf16>
    %cst = arith.constant dense<0.000000e+00> : vector<1024x128xf32>
    %2 = tpu.matmul %0, %1, %cst {dimension_numbers = #tpu.dot_dimension_numbers<[1], [0], [0], [1], [0, 0, 1, 1], [], []>} : vector<1024x128xbf16>, vector<128x128xbf16>, vector<1024x128xf32> -> vector<1024x128xf32>
    %cst_3 = arith.constant 0.000000e+00 : f32
    %3 = vector.broadcast %cst_3 : f32 to vector<1024x128xf32>
    %4 = arith.cmpf ogt, %2, %3 : vector<1024x128xf32>
    %cst_4 = arith.constant 2.000000e-01 : f32
    %5 = vector.broadcast %cst_4 : f32 to vector<1024x128xf32>
    %6 = arith.mulf %5, %2 : vector<1024x128xf32>
    %7 = arith.select %4, %2, %6 : vector<1024x128xi1>, vector<1024x128xf32>
    %8 = arith.truncf %7 : vector<1024x128xf32> to vector<1024x128xbf16>
    %c0_5 = arith.constant 0 : index
    %c0_6 = arith.constant 0 : index
    %9 = vector.load %arg3[%c0_5, %c0_6] : memref<1024x128xbf16, #tpu.memory_space<vmem>>, vector<1024x128xbf16>
    tpu.vector_store %arg3[%c0_5, %c0_6], %8 {strides = array<i32>} : memref<1024x128xbf16, #tpu.memory_space<vmem>>, vector<1024x128xbf16>,
    return
  }
  func.func @transform_0(%arg0: i32) -> (i32, i32) {
    %c0_i32 = arith.constant 0 : i32
    %c0_i32_0 = arith.constant 0 : i32
    return %arg0, %c0_i32 : i32, i32
  }
  func.func @transform_1(%arg0: i32) -> (i32, i32) {
    %c0_i32 = arith.constant 0 : i32
    %c0_i32_0 = arith.constant 0 : i32
    %c0_i32_1 = arith.constant 0 : i32
    return %c0_i32, %c0_i32_0 : i32, i32
  }
  func.func @transform_2(%arg0: i32) -> (i32, i32) {
    %c0_i32 = arith.constant 0 : i32
    %c0_i32_0 = arith.constant 0 : i32
    return %arg0, %c0_i32 : i32, i32
  }
}

module attributes {stable_mosaic.version = 11 : i64} {
  func.func @_matmul_stats_kernel(%arg0: i32, %arg1: memref<512x128xbf16, #tpu.memory_space<vmem>>, %arg2: memref<128x128xbf16, #tpu.memory_space<vmem>>, %arg3: memref<512x128xbf16, #tpu.memory_space<vmem>>, %arg4: memref<8x128xf32, #tpu.memory_space<vmem>>, %arg5: memref<8x128xf32, #tpu.memory_space<vmem>>) attributes {dimension_semantics = [#tpu.dimension_semantics<parallel>], iteration_bounds = array<i64: 1>, scalar_prefetch = 0 : i64, scratch_operands = 0 : i64, tpu.core_type = #tpu.core_type<tc>, window_params = [{transform_indices = @transform_0, window_bounds = array<i64: 512, 128>}, {pipeline_mode = #tpu.pipeline_mode<synchronous>, transform_indices = @transform_1, window_bounds = array<i64: 128, 128>}, {transform_indices = @transform_2, window_bounds = array<i64: 512, 128>}, {transform_indices = @transform_3, window_bounds = array<i64: 8, 128>}, {transform_indices = @transform_4, window_bounds = array<i64: 8, 128>}]} {
    %c0 = arith.constant 0 : index
    %c0_0 = arith.constant 0 : index
    %0 = vector.load %arg1[%c0, %c0_0] : memref<512x128xbf16, #tpu.memory_space<vmem>>, vector<512x128xbf16>
    %c0_1 = arith.constant 0 : index
    %c0_2 = arith.constant 0 : index
    %1 = vector.load %arg2[%c0_1, %c0_2] : memref<128x128xbf16, #tpu.memory_space<vmem>>, vector<128x128xbf16>
    %cst = arith.constant dense<0.000000e+00> : vector<512x128xf32>
    %2 = tpu.matmul %0, %1, %cst {dimension_numbers = #tpu.dot_dimension_numbers<[1], [0], [0], [1], [0, 0, 1, 1], [], []>} : vector<512x128xbf16>, vector<128x128xbf16>, vector<512x128xf32> -> vector<512x128xf32>
    %3 = arith.truncf %2 : vector<512x128xf32> to vector<512x128xbf16>
    %c0_3 = arith.constant 0 : index
    %c0_4 = arith.constant 0 : index
    %4 = vector.load %arg3[%c0_3, %c0_4] : memref<512x128xbf16, #tpu.memory_space<vmem>>, vector<512x128xbf16>
    tpu.vector_store %arg3[%c0_3, %c0_4], %3 {strides = array<i32>} : memref<512x128xbf16, #tpu.memory_space<vmem>>, vector<512x128xbf16>,
    %cst_5 = arith.constant dense<0.000000e+00> : vector<128xf32>
    %5 = vector.multi_reduction <add>, %2, %cst_5 [0] : vector<512x128xf32> to vector<128xf32>
    %6 = vector.shape_cast %5 : vector<128xf32> to vector<1x128xf32>
    %7 = arith.mulf %2, %2 : vector<512x128xf32>
    %cst_6 = arith.constant dense<0.000000e+00> : vector<128xf32>
    %8 = vector.multi_reduction <add>, %7, %cst_6 [0] : vector<512x128xf32> to vector<128xf32>
    %9 = vector.shape_cast %8 : vector<128xf32> to vector<1x128xf32>
    %10 = tpu.iota {dimensions = array<i32: 0>} : vector<8x128xi32>
    %c0_i32 = arith.constant 0 : i32
    %11 = vector.broadcast %c0_i32 : i32 to vector<8x128xi32>
    %12 = arith.cmpi eq, %10, %11 : vector<8x128xi32>
    %cst_7 = arith.constant 0.000000e+00 : f32
    %13 = vector.shape_cast %6 : vector<1x128xf32> to vector<1x128xf32>
    %14 = vector.broadcast %13 : vector<1x128xf32> to vector<8x128xf32>
    %15 = vector.broadcast %cst_7 : f32 to vector<8x128xf32>
    %16 = arith.select %12, %14, %15 : vector<8x128xi1>, vector<8x128xf32>
    %c0_8 = arith.constant 0 : index
    %c0_9 = arith.constant 0 : index
    %17 = vector.load %arg4[%c0_8, %c0_9] : memref<8x128xf32, #tpu.memory_space<vmem>>, vector<8x128xf32>
    tpu.vector_store %arg4[%c0_8, %c0_9], %16 {strides = array<i32>} : memref<8x128xf32, #tpu.memory_space<vmem>>, vector<8x128xf32>,
    %cst_10 = arith.constant 0.000000e+00 : f32
    %18 = vector.shape_cast %9 : vector<1x128xf32> to vector<1x128xf32>
    %19 = vector.broadcast %18 : vector<1x128xf32> to vector<8x128xf32>
    %20 = vector.broadcast %cst_10 : f32 to vector<8x128xf32>
    %21 = arith.select %12, %19, %20 : vector<8x128xi1>, vector<8x128xf32>
    %c0_11 = arith.constant 0 : index
    %c0_12 = arith.constant 0 : index
    %22 = vector.load %arg5[%c0_11, %c0_12] : memref<8x128xf32, #tpu.memory_space<vmem>>, vector<8x128xf32>
    tpu.vector_store %arg5[%c0_11, %c0_12], %21 {strides = array<i32>} : memref<8x128xf32, #tpu.memory_space<vmem>>, vector<8x128xf32>,
    return
  }
  func.func @transform_0(%arg0: i32) -> (i32, i32) {
    %c0_i32 = arith.constant 0 : i32
    %c0_i32_0 = arith.constant 0 : i32
    return %arg0, %c0_i32 : i32, i32
  }
  func.func @transform_1(%arg0: i32) -> (i32, i32) {
    %c0_i32 = arith.constant 0 : i32
    %c0_i32_0 = arith.constant 0 : i32
    %c0_i32_1 = arith.constant 0 : i32
    return %c0_i32, %c0_i32_0 : i32, i32
  }
  func.func @transform_2(%arg0: i32) -> (i32, i32) {
    %c0_i32 = arith.constant 0 : i32
    %c0_i32_0 = arith.constant 0 : i32
    return %arg0, %c0_i32 : i32, i32
  }
  func.func @transform_3(%arg0: i32) -> (i32, i32) {
    %c0_i32 = arith.constant 0 : i32
    %c0_i32_0 = arith.constant 0 : i32
    return %arg0, %c0_i32 : i32, i32
  }
  func.func @transform_4(%arg0: i32) -> (i32, i32) {
    %c0_i32 = arith.constant 0 : i32
    %c0_i32_0 = arith.constant 0 : i32
    return %arg0, %c0_i32 : i32, i32
  }
}

module attributes {stable_mosaic.version = 11 : i64} {
  func.func @_bn_lrelu_kernel(%arg0: i32, %arg1: memref<512x128xbf16, #tpu.memory_space<vmem>>, %arg2: memref<1x128xf32, #tpu.memory_space<vmem>>, %arg3: memref<1x128xf32, #tpu.memory_space<vmem>>, %arg4: memref<1x128xf32, #tpu.memory_space<vmem>>, %arg5: memref<1x128xf32, #tpu.memory_space<vmem>>, %arg6: memref<512x128xbf16, #tpu.memory_space<vmem>>) attributes {dimension_semantics = [#tpu.dimension_semantics<parallel>], iteration_bounds = array<i64: 1>, scalar_prefetch = 0 : i64, scratch_operands = 0 : i64, tpu.core_type = #tpu.core_type<tc>, window_params = [{transform_indices = @transform_0, window_bounds = array<i64: 512, 128>}, {pipeline_mode = #tpu.pipeline_mode<synchronous>, transform_indices = @transform_1, window_bounds = array<i64: 1, 128>}, {pipeline_mode = #tpu.pipeline_mode<synchronous>, transform_indices = @transform_2, window_bounds = array<i64: 1, 128>}, {pipeline_mode = #tpu.pipeline_mode<synchronous>, transform_indices = @transform_3, window_bounds = array<i64: 1, 128>}, {pipeline_mode = #tpu.pipeline_mode<synchronous>, transform_indices = @transform_4, window_bounds = array<i64: 1, 128>}, {transform_indices = @transform_5, window_bounds = array<i64: 512, 128>}]} {
    %c0 = arith.constant 0 : index
    %c0_0 = arith.constant 0 : index
    %0 = vector.load %arg2[%c0, %c0_0] : memref<1x128xf32, #tpu.memory_space<vmem>>, vector<1x128xf32>
    %cst = arith.constant 0.001953125 : f32
    %1 = vector.broadcast %cst : f32 to vector<1x128xf32>
    %2 = arith.mulf %0, %1 : vector<1x128xf32>
    %c0_1 = arith.constant 0 : index
    %c0_2 = arith.constant 0 : index
    %3 = vector.load %arg3[%c0_1, %c0_2] : memref<1x128xf32, #tpu.memory_space<vmem>>, vector<1x128xf32>
    %cst_3 = arith.constant 0.001953125 : f32
    %4 = vector.broadcast %cst_3 : f32 to vector<1x128xf32>
    %5 = arith.mulf %3, %4 : vector<1x128xf32>
    %6 = arith.mulf %2, %2 : vector<1x128xf32>
    %7 = arith.subf %5, %6 : vector<1x128xf32>
    %cst_4 = arith.constant 0.000000e+00 : f32
    %8 = vector.broadcast %cst_4 : f32 to vector<1x128xf32>
    %9 = arith.maximumf %7, %8 : vector<1x128xf32>
    %c0_5 = arith.constant 0 : index
    %c0_6 = arith.constant 0 : index
    %10 = vector.load %arg4[%c0_5, %c0_6] : memref<1x128xf32, #tpu.memory_space<vmem>>, vector<1x128xf32>
    %cst_7 = arith.constant 9.99999974E-6 : f32
    %11 = vector.broadcast %cst_7 : f32 to vector<1x128xf32>
    %12 = arith.addf %9, %11 : vector<1x128xf32>
    %13 = math.rsqrt %12 : vector<1x128xf32>
    %14 = arith.mulf %10, %13 : vector<1x128xf32>
    %c0_8 = arith.constant 0 : index
    %c0_9 = arith.constant 0 : index
    %15 = vector.load %arg5[%c0_8, %c0_9] : memref<1x128xf32, #tpu.memory_space<vmem>>, vector<1x128xf32>
    %16 = arith.mulf %2, %14 : vector<1x128xf32>
    %17 = arith.subf %15, %16 : vector<1x128xf32>
    %c0_10 = arith.constant 0 : index
    %c0_11 = arith.constant 0 : index
    %18 = vector.load %arg1[%c0_10, %c0_11] : memref<512x128xbf16, #tpu.memory_space<vmem>>, vector<512x128xbf16>
    %19 = arith.extf %18 : vector<512x128xbf16> to vector<512x128xf32>
    %20 = vector.broadcast %14 : vector<1x128xf32> to vector<512x128xf32>
    %21 = arith.mulf %19, %20 : vector<512x128xf32>
    %22 = vector.broadcast %17 : vector<1x128xf32> to vector<512x128xf32>
    %23 = arith.addf %21, %22 : vector<512x128xf32>
    %cst_12 = arith.constant 0.000000e+00 : f32
    %24 = vector.broadcast %cst_12 : f32 to vector<512x128xf32>
    %25 = arith.cmpf ogt, %23, %24 : vector<512x128xf32>
    %cst_13 = arith.constant 2.000000e-01 : f32
    %26 = vector.broadcast %cst_13 : f32 to vector<512x128xf32>
    %27 = arith.mulf %26, %23 : vector<512x128xf32>
    %28 = arith.select %25, %23, %27 : vector<512x128xi1>, vector<512x128xf32>
    %29 = arith.truncf %28 : vector<512x128xf32> to vector<512x128xbf16>
    %c0_14 = arith.constant 0 : index
    %c0_15 = arith.constant 0 : index
    %30 = vector.load %arg6[%c0_14, %c0_15] : memref<512x128xbf16, #tpu.memory_space<vmem>>, vector<512x128xbf16>
    tpu.vector_store %arg6[%c0_14, %c0_15], %29 {strides = array<i32>} : memref<512x128xbf16, #tpu.memory_space<vmem>>, vector<512x128xbf16>,
    return
  }
  func.func @transform_0(%arg0: i32) -> (i32, i32) {
    %c0_i32 = arith.constant 0 : i32
    %c0_i32_0 = arith.constant 0 : i32
    return %arg0, %c0_i32 : i32, i32
  }
  func.func @transform_1(%arg0: i32) -> (i32, i32) {
    %c0_i32 = arith.constant 0 : i32
    %c0_i32_0 = arith.constant 0 : i32
    %c0_i32_1 = arith.constant 0 : i32
    return %c0_i32, %c0_i32_0 : i32, i32
  }
  func.func @transform_2(%arg0: i32) -> (i32, i32) {
    %c0_i32 = arith.constant 0 : i32
    %c0_i32_0 = arith.constant 0 : i32
    %c0_i32_1 = arith.constant 0 : i32
    return %c0_i32, %c0_i32_0 : i32, i32
  }
  func.func @transform_3(%arg0: i32) -> (i32, i32) {
    %c0_i32 = arith.constant 0 : i32
    %c0_i32_0 = arith.constant 0 : i32
    %c0_i32_1 = arith.constant 0 : i32
    return %c0_i32, %c0_i32_0 : i32, i32
  }
  func.func @transform_4(%arg0: i32) -> (i32, i32) {
    %c0_i32 = arith.constant 0 : i32
    %c0_i32_0 = arith.constant 0 : i32
    %c0_i32_1 = arith.constant 0 : i32
    return %c0_i32, %c0_i32_0 : i32, i32
  }
  func.func @transform_5(%arg0: i32) -> (i32, i32) {
    %c0_i32 = arith.constant 0 : i32
    %c0_i32_0 = arith.constant 0 : i32
    return %arg0, %c0_i32 : i32, i32
  }
}

module attributes {stable_mosaic.version = 11 : i64} {
  func.func @_matmul_stats_kernel(%arg0: i32, %arg1: memref<128x256xbf16, #tpu.memory_space<vmem>>, %arg2: memref<256x128xbf16, #tpu.memory_space<vmem>>, %arg3: memref<128x128xbf16, #tpu.memory_space<vmem>>, %arg4: memref<8x128xf32, #tpu.memory_space<vmem>>, %arg5: memref<8x128xf32, #tpu.memory_space<vmem>>) attributes {dimension_semantics = [#tpu.dimension_semantics<parallel>], iteration_bounds = array<i64: 1>, scalar_prefetch = 0 : i64, scratch_operands = 0 : i64, tpu.core_type = #tpu.core_type<tc>, window_params = [{transform_indices = @transform_0, window_bounds = array<i64: 128, 256>}, {pipeline_mode = #tpu.pipeline_mode<synchronous>, transform_indices = @transform_1, window_bounds = array<i64: 256, 128>}, {transform_indices = @transform_2, window_bounds = array<i64: 128, 128>}, {transform_indices = @transform_3, window_bounds = array<i64: 8, 128>}, {transform_indices = @transform_4, window_bounds = array<i64: 8, 128>}]} {
    %c0 = arith.constant 0 : index
    %c0_0 = arith.constant 0 : index
    %0 = vector.load %arg1[%c0, %c0_0] : memref<128x256xbf16, #tpu.memory_space<vmem>>, vector<128x256xbf16>
    %c0_1 = arith.constant 0 : index
    %c0_2 = arith.constant 0 : index
    %1 = vector.load %arg2[%c0_1, %c0_2] : memref<256x128xbf16, #tpu.memory_space<vmem>>, vector<256x128xbf16>
    %cst = arith.constant dense<0.000000e+00> : vector<128x128xf32>
    %2 = tpu.matmul %0, %1, %cst {dimension_numbers = #tpu.dot_dimension_numbers<[1], [0], [0], [1], [0, 0, 1, 1], [], []>} : vector<128x256xbf16>, vector<256x128xbf16>, vector<128x128xf32> -> vector<128x128xf32>
    %3 = arith.truncf %2 : vector<128x128xf32> to vector<128x128xbf16>
    %c0_3 = arith.constant 0 : index
    %c0_4 = arith.constant 0 : index
    %4 = vector.load %arg3[%c0_3, %c0_4] : memref<128x128xbf16, #tpu.memory_space<vmem>>, vector<128x128xbf16>
    tpu.vector_store %arg3[%c0_3, %c0_4], %3 {strides = array<i32>} : memref<128x128xbf16, #tpu.memory_space<vmem>>, vector<128x128xbf16>,
    %cst_5 = arith.constant dense<0.000000e+00> : vector<128xf32>
    %5 = vector.multi_reduction <add>, %2, %cst_5 [0] : vector<128x128xf32> to vector<128xf32>
    %6 = vector.shape_cast %5 : vector<128xf32> to vector<1x128xf32>
    %7 = arith.mulf %2, %2 : vector<128x128xf32>
    %cst_6 = arith.constant dense<0.000000e+00> : vector<128xf32>
    %8 = vector.multi_reduction <add>, %7, %cst_6 [0] : vector<128x128xf32> to vector<128xf32>
    %9 = vector.shape_cast %8 : vector<128xf32> to vector<1x128xf32>
    %10 = tpu.iota {dimensions = array<i32: 0>} : vector<8x128xi32>
    %c0_i32 = arith.constant 0 : i32
    %11 = vector.broadcast %c0_i32 : i32 to vector<8x128xi32>
    %12 = arith.cmpi eq, %10, %11 : vector<8x128xi32>
    %cst_7 = arith.constant 0.000000e+00 : f32
    %13 = vector.shape_cast %6 : vector<1x128xf32> to vector<1x128xf32>
    %14 = vector.broadcast %13 : vector<1x128xf32> to vector<8x128xf32>
    %15 = vector.broadcast %cst_7 : f32 to vector<8x128xf32>
    %16 = arith.select %12, %14, %15 : vector<8x128xi1>, vector<8x128xf32>
    %c0_8 = arith.constant 0 : index
    %c0_9 = arith.constant 0 : index
    %17 = vector.load %arg4[%c0_8, %c0_9] : memref<8x128xf32, #tpu.memory_space<vmem>>, vector<8x128xf32>
    tpu.vector_store %arg4[%c0_8, %c0_9], %16 {strides = array<i32>} : memref<8x128xf32, #tpu.memory_space<vmem>>, vector<8x128xf32>,
    %cst_10 = arith.constant 0.000000e+00 : f32
    %18 = vector.shape_cast %9 : vector<1x128xf32> to vector<1x128xf32>
    %19 = vector.broadcast %18 : vector<1x128xf32> to vector<8x128xf32>
    %20 = vector.broadcast %cst_10 : f32 to vector<8x128xf32>
    %21 = arith.select %12, %19, %20 : vector<8x128xi1>, vector<8x128xf32>
    %c0_11 = arith.constant 0 : index
    %c0_12 = arith.constant 0 : index
    %22 = vector.load %arg5[%c0_11, %c0_12] : memref<8x128xf32, #tpu.memory_space<vmem>>, vector<8x128xf32>
    tpu.vector_store %arg5[%c0_11, %c0_12], %21 {strides = array<i32>} : memref<8x128xf32, #tpu.memory_space<vmem>>, vector<8x128xf32>,
    return
  }
  func.func @transform_0(%arg0: i32) -> (i32, i32) {
    %c0_i32 = arith.constant 0 : i32
    %c0_i32_0 = arith.constant 0 : i32
    return %arg0, %c0_i32 : i32, i32
  }
  func.func @transform_1(%arg0: i32) -> (i32, i32) {
    %c0_i32 = arith.constant 0 : i32
    %c0_i32_0 = arith.constant 0 : i32
    %c0_i32_1 = arith.constant 0 : i32
    return %c0_i32, %c0_i32_0 : i32, i32
  }
  func.func @transform_2(%arg0: i32) -> (i32, i32) {
    %c0_i32 = arith.constant 0 : i32
    %c0_i32_0 = arith.constant 0 : i32
    return %arg0, %c0_i32 : i32, i32
  }
  func.func @transform_3(%arg0: i32) -> (i32, i32) {
    %c0_i32 = arith.constant 0 : i32
    %c0_i32_0 = arith.constant 0 : i32
    return %arg0, %c0_i32 : i32, i32
  }
  func.func @transform_4(%arg0: i32) -> (i32, i32) {
    %c0_i32 = arith.constant 0 : i32
    %c0_i32_0 = arith.constant 0 : i32
    return %arg0, %c0_i32 : i32, i32
  }
}

module attributes {stable_mosaic.version = 11 : i64} {
  func.func @_bn_lrelu_kernel(%arg0: i32, %arg1: memref<128x128xbf16, #tpu.memory_space<vmem>>, %arg2: memref<1x128xf32, #tpu.memory_space<vmem>>, %arg3: memref<1x128xf32, #tpu.memory_space<vmem>>, %arg4: memref<1x128xf32, #tpu.memory_space<vmem>>, %arg5: memref<1x128xf32, #tpu.memory_space<vmem>>, %arg6: memref<128x128xbf16, #tpu.memory_space<vmem>>) attributes {dimension_semantics = [#tpu.dimension_semantics<parallel>], iteration_bounds = array<i64: 1>, scalar_prefetch = 0 : i64, scratch_operands = 0 : i64, tpu.core_type = #tpu.core_type<tc>, window_params = [{transform_indices = @transform_0, window_bounds = array<i64: 128, 128>}, {pipeline_mode = #tpu.pipeline_mode<synchronous>, transform_indices = @transform_1, window_bounds = array<i64: 1, 128>}, {pipeline_mode = #tpu.pipeline_mode<synchronous>, transform_indices = @transform_2, window_bounds = array<i64: 1, 128>}, {pipeline_mode = #tpu.pipeline_mode<synchronous>, transform_indices = @transform_3, window_bounds = array<i64: 1, 128>}, {pipeline_mode = #tpu.pipeline_mode<synchronous>, transform_indices = @transform_4, window_bounds = array<i64: 1, 128>}, {transform_indices = @transform_5, window_bounds = array<i64: 128, 128>}]} {
    %c0 = arith.constant 0 : index
    %c0_0 = arith.constant 0 : index
    %0 = vector.load %arg2[%c0, %c0_0] : memref<1x128xf32, #tpu.memory_space<vmem>>, vector<1x128xf32>
    %cst = arith.constant 7.812500e-03 : f32
    %1 = vector.broadcast %cst : f32 to vector<1x128xf32>
    %2 = arith.mulf %0, %1 : vector<1x128xf32>
    %c0_1 = arith.constant 0 : index
    %c0_2 = arith.constant 0 : index
    %3 = vector.load %arg3[%c0_1, %c0_2] : memref<1x128xf32, #tpu.memory_space<vmem>>, vector<1x128xf32>
    %cst_3 = arith.constant 7.812500e-03 : f32
    %4 = vector.broadcast %cst_3 : f32 to vector<1x128xf32>
    %5 = arith.mulf %3, %4 : vector<1x128xf32>
    %6 = arith.mulf %2, %2 : vector<1x128xf32>
    %7 = arith.subf %5, %6 : vector<1x128xf32>
    %cst_4 = arith.constant 0.000000e+00 : f32
    %8 = vector.broadcast %cst_4 : f32 to vector<1x128xf32>
    %9 = arith.maximumf %7, %8 : vector<1x128xf32>
    %c0_5 = arith.constant 0 : index
    %c0_6 = arith.constant 0 : index
    %10 = vector.load %arg4[%c0_5, %c0_6] : memref<1x128xf32, #tpu.memory_space<vmem>>, vector<1x128xf32>
    %cst_7 = arith.constant 9.99999974E-6 : f32
    %11 = vector.broadcast %cst_7 : f32 to vector<1x128xf32>
    %12 = arith.addf %9, %11 : vector<1x128xf32>
    %13 = math.rsqrt %12 : vector<1x128xf32>
    %14 = arith.mulf %10, %13 : vector<1x128xf32>
    %c0_8 = arith.constant 0 : index
    %c0_9 = arith.constant 0 : index
    %15 = vector.load %arg5[%c0_8, %c0_9] : memref<1x128xf32, #tpu.memory_space<vmem>>, vector<1x128xf32>
    %16 = arith.mulf %2, %14 : vector<1x128xf32>
    %17 = arith.subf %15, %16 : vector<1x128xf32>
    %c0_10 = arith.constant 0 : index
    %c0_11 = arith.constant 0 : index
    %18 = vector.load %arg1[%c0_10, %c0_11] : memref<128x128xbf16, #tpu.memory_space<vmem>>, vector<128x128xbf16>
    %19 = arith.extf %18 : vector<128x128xbf16> to vector<128x128xf32>
    %20 = vector.broadcast %14 : vector<1x128xf32> to vector<128x128xf32>
    %21 = arith.mulf %19, %20 : vector<128x128xf32>
    %22 = vector.broadcast %17 : vector<1x128xf32> to vector<128x128xf32>
    %23 = arith.addf %21, %22 : vector<128x128xf32>
    %cst_12 = arith.constant 0.000000e+00 : f32
    %24 = vector.broadcast %cst_12 : f32 to vector<128x128xf32>
    %25 = arith.cmpf ogt, %23, %24 : vector<128x128xf32>
    %cst_13 = arith.constant 2.000000e-01 : f32
    %26 = vector.broadcast %cst_13 : f32 to vector<128x128xf32>
    %27 = arith.mulf %26, %23 : vector<128x128xf32>
    %28 = arith.select %25, %23, %27 : vector<128x128xi1>, vector<128x128xf32>
    %29 = arith.truncf %28 : vector<128x128xf32> to vector<128x128xbf16>
    %c0_14 = arith.constant 0 : index
    %c0_15 = arith.constant 0 : index
    %30 = vector.load %arg6[%c0_14, %c0_15] : memref<128x128xbf16, #tpu.memory_space<vmem>>, vector<128x128xbf16>
    tpu.vector_store %arg6[%c0_14, %c0_15], %29 {strides = array<i32>} : memref<128x128xbf16, #tpu.memory_space<vmem>>, vector<128x128xbf16>,
    return
  }
  func.func @transform_0(%arg0: i32) -> (i32, i32) {
    %c0_i32 = arith.constant 0 : i32
    %c0_i32_0 = arith.constant 0 : i32
    return %arg0, %c0_i32 : i32, i32
  }
  func.func @transform_1(%arg0: i32) -> (i32, i32) {
    %c0_i32 = arith.constant 0 : i32
    %c0_i32_0 = arith.constant 0 : i32
    %c0_i32_1 = arith.constant 0 : i32
    return %c0_i32, %c0_i32_0 : i32, i32
  }
  func.func @transform_2(%arg0: i32) -> (i32, i32) {
    %c0_i32 = arith.constant 0 : i32
    %c0_i32_0 = arith.constant 0 : i32
    %c0_i32_1 = arith.constant 0 : i32
    return %c0_i32, %c0_i32_0 : i32, i32
  }
  func.func @transform_3(%arg0: i32) -> (i32, i32) {
    %c0_i32 = arith.constant 0 : i32
    %c0_i32_0 = arith.constant 0 : i32
    %c0_i32_1 = arith.constant 0 : i32
    return %c0_i32, %c0_i32_0 : i32, i32
  }
  func.func @transform_4(%arg0: i32) -> (i32, i32) {
    %c0_i32 = arith.constant 0 : i32
    %c0_i32_0 = arith.constant 0 : i32
    %c0_i32_1 = arith.constant 0 : i32
    return %c0_i32, %c0_i32_0 : i32, i32
  }
  func.func @transform_5(%arg0: i32) -> (i32, i32) {
    %c0_i32 = arith.constant 0 : i32
    %c0_i32_0 = arith.constant 0 : i32
    return %arg0, %c0_i32 : i32, i32
  }
}

module attributes {stable_mosaic.version = 11 : i64} {
  func.func @_matmul_stats_kernel(%arg0: i32, %arg1: memref<32x512xbf16, #tpu.memory_space<vmem>>, %arg2: memref<512x128xbf16, #tpu.memory_space<vmem>>, %arg3: memref<32x128xbf16, #tpu.memory_space<vmem>>, %arg4: memref<8x128xf32, #tpu.memory_space<vmem>>, %arg5: memref<8x128xf32, #tpu.memory_space<vmem>>) attributes {dimension_semantics = [#tpu.dimension_semantics<parallel>], iteration_bounds = array<i64: 1>, scalar_prefetch = 0 : i64, scratch_operands = 0 : i64, tpu.core_type = #tpu.core_type<tc>, window_params = [{transform_indices = @transform_0, window_bounds = array<i64: 32, 512>}, {pipeline_mode = #tpu.pipeline_mode<synchronous>, transform_indices = @transform_1, window_bounds = array<i64: 512, 128>}, {transform_indices = @transform_2, window_bounds = array<i64: 32, 128>}, {transform_indices = @transform_3, window_bounds = array<i64: 8, 128>}, {transform_indices = @transform_4, window_bounds = array<i64: 8, 128>}]} {
    %c0 = arith.constant 0 : index
    %c0_0 = arith.constant 0 : index
    %0 = vector.load %arg1[%c0, %c0_0] : memref<32x512xbf16, #tpu.memory_space<vmem>>, vector<32x512xbf16>
    %c0_1 = arith.constant 0 : index
    %c0_2 = arith.constant 0 : index
    %1 = vector.load %arg2[%c0_1, %c0_2] : memref<512x128xbf16, #tpu.memory_space<vmem>>, vector<512x128xbf16>
    %cst = arith.constant dense<0.000000e+00> : vector<32x128xf32>
    %2 = tpu.matmul %0, %1, %cst {dimension_numbers = #tpu.dot_dimension_numbers<[1], [0], [0], [1], [0, 0, 1, 1], [], []>} : vector<32x512xbf16>, vector<512x128xbf16>, vector<32x128xf32> -> vector<32x128xf32>
    %3 = arith.truncf %2 : vector<32x128xf32> to vector<32x128xbf16>
    %c0_3 = arith.constant 0 : index
    %c0_4 = arith.constant 0 : index
    %4 = vector.load %arg3[%c0_3, %c0_4] : memref<32x128xbf16, #tpu.memory_space<vmem>>, vector<32x128xbf16>
    tpu.vector_store %arg3[%c0_3, %c0_4], %3 {strides = array<i32>} : memref<32x128xbf16, #tpu.memory_space<vmem>>, vector<32x128xbf16>,
    %cst_5 = arith.constant dense<0.000000e+00> : vector<128xf32>
    %5 = vector.multi_reduction <add>, %2, %cst_5 [0] : vector<32x128xf32> to vector<128xf32>
    %6 = vector.shape_cast %5 : vector<128xf32> to vector<1x128xf32>
    %7 = arith.mulf %2, %2 : vector<32x128xf32>
    %cst_6 = arith.constant dense<0.000000e+00> : vector<128xf32>
    %8 = vector.multi_reduction <add>, %7, %cst_6 [0] : vector<32x128xf32> to vector<128xf32>
    %9 = vector.shape_cast %8 : vector<128xf32> to vector<1x128xf32>
    %10 = tpu.iota {dimensions = array<i32: 0>} : vector<8x128xi32>
    %c0_i32 = arith.constant 0 : i32
    %11 = vector.broadcast %c0_i32 : i32 to vector<8x128xi32>
    %12 = arith.cmpi eq, %10, %11 : vector<8x128xi32>
    %cst_7 = arith.constant 0.000000e+00 : f32
    %13 = vector.shape_cast %6 : vector<1x128xf32> to vector<1x128xf32>
    %14 = vector.broadcast %13 : vector<1x128xf32> to vector<8x128xf32>
    %15 = vector.broadcast %cst_7 : f32 to vector<8x128xf32>
    %16 = arith.select %12, %14, %15 : vector<8x128xi1>, vector<8x128xf32>
    %c0_8 = arith.constant 0 : index
    %c0_9 = arith.constant 0 : index
    %17 = vector.load %arg4[%c0_8, %c0_9] : memref<8x128xf32, #tpu.memory_space<vmem>>, vector<8x128xf32>
    tpu.vector_store %arg4[%c0_8, %c0_9], %16 {strides = array<i32>} : memref<8x128xf32, #tpu.memory_space<vmem>>, vector<8x128xf32>,
    %cst_10 = arith.constant 0.000000e+00 : f32
    %18 = vector.shape_cast %9 : vector<1x128xf32> to vector<1x128xf32>
    %19 = vector.broadcast %18 : vector<1x128xf32> to vector<8x128xf32>
    %20 = vector.broadcast %cst_10 : f32 to vector<8x128xf32>
    %21 = arith.select %12, %19, %20 : vector<8x128xi1>, vector<8x128xf32>
    %c0_11 = arith.constant 0 : index
    %c0_12 = arith.constant 0 : index
    %22 = vector.load %arg5[%c0_11, %c0_12] : memref<8x128xf32, #tpu.memory_space<vmem>>, vector<8x128xf32>
    tpu.vector_store %arg5[%c0_11, %c0_12], %21 {strides = array<i32>} : memref<8x128xf32, #tpu.memory_space<vmem>>, vector<8x128xf32>,
    return
  }
  func.func @transform_0(%arg0: i32) -> (i32, i32) {
    %c0_i32 = arith.constant 0 : i32
    %c0_i32_0 = arith.constant 0 : i32
    return %arg0, %c0_i32 : i32, i32
  }
  func.func @transform_1(%arg0: i32) -> (i32, i32) {
    %c0_i32 = arith.constant 0 : i32
    %c0_i32_0 = arith.constant 0 : i32
    %c0_i32_1 = arith.constant 0 : i32
    return %c0_i32, %c0_i32_0 : i32, i32
  }
  func.func @transform_2(%arg0: i32) -> (i32, i32) {
    %c0_i32 = arith.constant 0 : i32
    %c0_i32_0 = arith.constant 0 : i32
    return %arg0, %c0_i32 : i32, i32
  }
  func.func @transform_3(%arg0: i32) -> (i32, i32) {
    %c0_i32 = arith.constant 0 : i32
    %c0_i32_0 = arith.constant 0 : i32
    return %arg0, %c0_i32 : i32, i32
  }
  func.func @transform_4(%arg0: i32) -> (i32, i32) {
    %c0_i32 = arith.constant 0 : i32
    %c0_i32_0 = arith.constant 0 : i32
    return %arg0, %c0_i32 : i32, i32
  }
}

module attributes {stable_mosaic.version = 11 : i64} {
  func.func @_bn_lrelu_kernel(%arg0: i32, %arg1: memref<32x128xbf16, #tpu.memory_space<vmem>>, %arg2: memref<1x128xf32, #tpu.memory_space<vmem>>, %arg3: memref<1x128xf32, #tpu.memory_space<vmem>>, %arg4: memref<1x128xf32, #tpu.memory_space<vmem>>, %arg5: memref<1x128xf32, #tpu.memory_space<vmem>>, %arg6: memref<32x128xbf16, #tpu.memory_space<vmem>>) attributes {dimension_semantics = [#tpu.dimension_semantics<parallel>], iteration_bounds = array<i64: 1>, scalar_prefetch = 0 : i64, scratch_operands = 0 : i64, tpu.core_type = #tpu.core_type<tc>, window_params = [{transform_indices = @transform_0, window_bounds = array<i64: 32, 128>}, {pipeline_mode = #tpu.pipeline_mode<synchronous>, transform_indices = @transform_1, window_bounds = array<i64: 1, 128>}, {pipeline_mode = #tpu.pipeline_mode<synchronous>, transform_indices = @transform_2, window_bounds = array<i64: 1, 128>}, {pipeline_mode = #tpu.pipeline_mode<synchronous>, transform_indices = @transform_3, window_bounds = array<i64: 1, 128>}, {pipeline_mode = #tpu.pipeline_mode<synchronous>, transform_indices = @transform_4, window_bounds = array<i64: 1, 128>}, {transform_indices = @transform_5, window_bounds = array<i64: 32, 128>}]} {
    %c0 = arith.constant 0 : index
    %c0_0 = arith.constant 0 : index
    %0 = vector.load %arg2[%c0, %c0_0] : memref<1x128xf32, #tpu.memory_space<vmem>>, vector<1x128xf32>
    %cst = arith.constant 3.125000e-02 : f32
    %1 = vector.broadcast %cst : f32 to vector<1x128xf32>
    %2 = arith.mulf %0, %1 : vector<1x128xf32>
    %c0_1 = arith.constant 0 : index
    %c0_2 = arith.constant 0 : index
    %3 = vector.load %arg3[%c0_1, %c0_2] : memref<1x128xf32, #tpu.memory_space<vmem>>, vector<1x128xf32>
    %cst_3 = arith.constant 3.125000e-02 : f32
    %4 = vector.broadcast %cst_3 : f32 to vector<1x128xf32>
    %5 = arith.mulf %3, %4 : vector<1x128xf32>
    %6 = arith.mulf %2, %2 : vector<1x128xf32>
    %7 = arith.subf %5, %6 : vector<1x128xf32>
    %cst_4 = arith.constant 0.000000e+00 : f32
    %8 = vector.broadcast %cst_4 : f32 to vector<1x128xf32>
    %9 = arith.maximumf %7, %8 : vector<1x128xf32>
    %c0_5 = arith.constant 0 : index
    %c0_6 = arith.constant 0 : index
    %10 = vector.load %arg4[%c0_5, %c0_6] : memref<1x128xf32, #tpu.memory_space<vmem>>, vector<1x128xf32>
    %cst_7 = arith.constant 9.99999974E-6 : f32
    %11 = vector.broadcast %cst_7 : f32 to vector<1x128xf32>
    %12 = arith.addf %9, %11 : vector<1x128xf32>
    %13 = math.rsqrt %12 : vector<1x128xf32>
    %14 = arith.mulf %10, %13 : vector<1x128xf32>
    %c0_8 = arith.constant 0 : index
    %c0_9 = arith.constant 0 : index
    %15 = vector.load %arg5[%c0_8, %c0_9] : memref<1x128xf32, #tpu.memory_space<vmem>>, vector<1x128xf32>
    %16 = arith.mulf %2, %14 : vector<1x128xf32>
    %17 = arith.subf %15, %16 : vector<1x128xf32>
    %c0_10 = arith.constant 0 : index
    %c0_11 = arith.constant 0 : index
    %18 = vector.load %arg1[%c0_10, %c0_11] : memref<32x128xbf16, #tpu.memory_space<vmem>>, vector<32x128xbf16>
    %19 = arith.extf %18 : vector<32x128xbf16> to vector<32x128xf32>
    %20 = vector.broadcast %14 : vector<1x128xf32> to vector<32x128xf32>
    %21 = arith.mulf %19, %20 : vector<32x128xf32>
    %22 = vector.broadcast %17 : vector<1x128xf32> to vector<32x128xf32>
    %23 = arith.addf %21, %22 : vector<32x128xf32>
    %cst_12 = arith.constant 0.000000e+00 : f32
    %24 = vector.broadcast %cst_12 : f32 to vector<32x128xf32>
    %25 = arith.cmpf ogt, %23, %24 : vector<32x128xf32>
    %cst_13 = arith.constant 2.000000e-01 : f32
    %26 = vector.broadcast %cst_13 : f32 to vector<32x128xf32>
    %27 = arith.mulf %26, %23 : vector<32x128xf32>
    %28 = arith.select %25, %23, %27 : vector<32x128xi1>, vector<32x128xf32>
    %29 = arith.truncf %28 : vector<32x128xf32> to vector<32x128xbf16>
    %c0_14 = arith.constant 0 : index
    %c0_15 = arith.constant 0 : index
    %30 = vector.load %arg6[%c0_14, %c0_15] : memref<32x128xbf16, #tpu.memory_space<vmem>>, vector<32x128xbf16>
    tpu.vector_store %arg6[%c0_14, %c0_15], %29 {strides = array<i32>} : memref<32x128xbf16, #tpu.memory_space<vmem>>, vector<32x128xbf16>,
    return
  }
  func.func @transform_0(%arg0: i32) -> (i32, i32) {
    %c0_i32 = arith.constant 0 : i32
    %c0_i32_0 = arith.constant 0 : i32
    return %arg0, %c0_i32 : i32, i32
  }
  func.func @transform_1(%arg0: i32) -> (i32, i32) {
    %c0_i32 = arith.constant 0 : i32
    %c0_i32_0 = arith.constant 0 : i32
    %c0_i32_1 = arith.constant 0 : i32
    return %c0_i32, %c0_i32_0 : i32, i32
  }
  func.func @transform_2(%arg0: i32) -> (i32, i32) {
    %c0_i32 = arith.constant 0 : i32
    %c0_i32_0 = arith.constant 0 : i32
    %c0_i32_1 = arith.constant 0 : i32
    return %c0_i32, %c0_i32_0 : i32, i32
  }
  func.func @transform_3(%arg0: i32) -> (i32, i32) {
    %c0_i32 = arith.constant 0 : i32
    %c0_i32_0 = arith.constant 0 : i32
    %c0_i32_1 = arith.constant 0 : i32
    return %c0_i32, %c0_i32_0 : i32, i32
  }
  func.func @transform_4(%arg0: i32) -> (i32, i32) {
    %c0_i32 = arith.constant 0 : i32
    %c0_i32_0 = arith.constant 0 : i32
    %c0_i32_1 = arith.constant 0 : i32
    return %c0_i32, %c0_i32_0 : i32, i32
  }
  func.func @transform_5(%arg0: i32) -> (i32, i32) {
    %c0_i32 = arith.constant 0 : i32
    %c0_i32_0 = arith.constant 0 : i32
    return %arg0, %c0_i32 : i32, i32
  }
}

module attributes {stable_mosaic.version = 11 : i64} {
  func.func @_matmul_act_kernel(%arg0: i32, %arg1: memref<16x1024xbf16, #tpu.memory_space<vmem>>, %arg2: memref<1024x128xbf16, #tpu.memory_space<vmem>>, %arg3: memref<16x128xf32, #tpu.memory_space<vmem>>) attributes {dimension_semantics = [#tpu.dimension_semantics<parallel>], iteration_bounds = array<i64: 1>, scalar_prefetch = 0 : i64, scratch_operands = 0 : i64, tpu.core_type = #tpu.core_type<tc>, window_params = [{transform_indices = @transform_0, window_bounds = array<i64: 16, 1024>}, {pipeline_mode = #tpu.pipeline_mode<synchronous>, transform_indices = @transform_1, window_bounds = array<i64: 1024, 128>}, {transform_indices = @transform_2, window_bounds = array<i64: 16, 128>}]} {
    %c0 = arith.constant 0 : index
    %c0_0 = arith.constant 0 : index
    %0 = vector.load %arg1[%c0, %c0_0] : memref<16x1024xbf16, #tpu.memory_space<vmem>>, vector<16x1024xbf16>
    %c0_1 = arith.constant 0 : index
    %c0_2 = arith.constant 0 : index
    %1 = vector.load %arg2[%c0_1, %c0_2] : memref<1024x128xbf16, #tpu.memory_space<vmem>>, vector<1024x128xbf16>
    %cst = arith.constant dense<0.000000e+00> : vector<16x128xf32>
    %2 = tpu.matmul %0, %1, %cst {dimension_numbers = #tpu.dot_dimension_numbers<[1], [0], [0], [1], [0, 0, 1, 1], [], []>} : vector<16x1024xbf16>, vector<1024x128xbf16>, vector<16x128xf32> -> vector<16x128xf32>
    %cst_3 = arith.constant 0.000000e+00 : f32
    %3 = vector.broadcast %cst_3 : f32 to vector<16x128xf32>
    %4 = arith.subf %3, %2 : vector<16x128xf32>
    %5 = math.exp %4 : vector<16x128xf32>
    %cst_4 = arith.constant 1.000000e+00 : f32
    %6 = vector.broadcast %cst_4 : f32 to vector<16x128xf32>
    %7 = arith.addf %6, %5 : vector<16x128xf32>
    %8 = tpu.reciprocal %7 {approx = true} : vector<16x128xf32> -> vector<16x128xf32>
    %cst_5 = arith.constant 0.000000e+00 : f32
    %cst_6 = arith.constant 1.000000e+00 : f32
    %9 = vector.broadcast %cst_5 : f32 to vector<16x128xf32>
    %10 = arith.maximumf %9, %8 : vector<16x128xf32>
    %11 = vector.broadcast %cst_6 : f32 to vector<16x128xf32>
    %12 = arith.minimumf %11, %10 : vector<16x128xf32>
    %c0_7 = arith.constant 0 : index
    %c0_8 = arith.constant 0 : index
    %13 = vector.load %arg3[%c0_7, %c0_8] : memref<16x128xf32, #tpu.memory_space<vmem>>, vector<16x128xf32>
    tpu.vector_store %arg3[%c0_7, %c0_8], %12 {strides = array<i32>} : memref<16x128xf32, #tpu.memory_space<vmem>>, vector<16x128xf32>,
    return
  }
  func.func @transform_0(%arg0: i32) -> (i32, i32) {
    %c0_i32 = arith.constant 0 : i32
    %c0_i32_0 = arith.constant 0 : i32
    return %arg0, %c0_i32 : i32, i32
  }
  func.func @transform_1(%arg0: i32) -> (i32, i32) {
    %c0_i32 = arith.constant 0 : i32
    %c0_i32_0 = arith.constant 0 : i32
    %c0_i32_1 = arith.constant 0 : i32
    return %c0_i32, %c0_i32_0 : i32, i32
  }
  func.func @transform_2(%arg0: i32) -> (i32, i32) {
    %c0_i32 = arith.constant 0 : i32
    %c0_i32_0 = arith.constant 0 : i32
    return %arg0, %c0_i32 : i32, i32
  }
}

</mosaic_0001>

<bundles_post_ra>
// kernel: anime_discriminator_forward.9
= control target key start
LH: loop header
LB: loop body
LE: loop exit
PB: predicated region body
PF: predicated region fallthrough
CT: control target
= control target key end

     0   :  { %10 = vsyncpa [#allocation3], 0  ;;  %s2183_s0 = inlined_call_operand.hbm [shape: bf16[512,128], index: 0, kind: input, shape index: {}]   ;;  %s2184_s1 = inlined_call_operand.hbm [shape: bf16[128,128], index: 1, kind: input, shape index: {}]   ;;  %s2185_s2 = inlined_call_operand.hbm [shape: bf16[512,128], index: 2, kind: output, shape index: {0}]   ;;  %s2186_s3 = inlined_call_operand.hbm [shape: f32[8,128], index: 3, kind: output, shape index: {1}]   ;;  %s2187_s4 = inlined_call_operand.hbm [shape: f32[8,128], index: 4, kind: output, shape index: {2}]  }
   0x1   :  { %11 = vsyncpa [#allocation6], 0 }
   0x2   :  { %12 = vsyncpa [#allocation4], 0 }
   0x3   :  { %13 = vsyncpa [#allocation9], 0  ;;  %s1888_s15 = smov [#allocation2]   ;;  %s1770_s19 = scalar_lea.hbm %s2183_s0, 4096 }
   0x4   :  { %s19_s16 = sshll.u32 %s1888_s15, 4  ;;  %p1771_p0 = scmp.ne.s32.totalorder %s2183_s0, %s1770_s19  ;;  %s20_s16 = int_to_ptr.vmem [resolvable:$true] %s19_s16 }
   0x5   :  { %p1774_p1 = scmp.lt.u32.totalorder %s1770_s19, %s2183_s0 }
   0x7   :  { %p1776_p2 = pnand %p1774_p1, %p1771_p0 }
   0x9   :  { %1779 = shalt.err (!%p1776_p2)
}
   0xa   :  { %s1780_s24 = scalar_lea.vmem %s20_s16, 4096  ;;  %p1785_p4 = scmp.lt.s32.totalorder %s20_s16, %s20_s16 }
   0xb   :  { %p1781_p3 = scmp.ne.s32.totalorder %s20_s16, %s1780_s24  ;;  %p1786_p5 = scmp.lt.s32.totalorder %s1780_s24, %s1780_s24 }
   0xd   :  { %p1787_p6 = por %p1786_p5, %p1785_p4 }
   0xf   :  { %p1788_p7 = pnand %p1787_p6, %p1781_p3 }
  0x11   :  { %1791 = shalt.err (!%p1788_p7)
}
  0x12   :  { %s1889_s25 = smov 64   ;;  %s1890_s26 = smov 4  }
  0x13   :  { %25 = dma.hbm_to_vmem [thread:$0]  %s2183_s0, 4096, %s20_s16, [#allocation3], %s1889_s25, %s1889_s25, %s1890_s26  }
  0x14   :  { %s1891_s29 = smov [#allocation5]   ;;  %s1792_s7 = scalar_lea.hbm %s2184_s1, 1024 }
  0x15   :  { %s31_s30 = sshll.u32 %s1891_s29, 4  ;;  %p1793_p8 = scmp.ne.s32.totalorder %s2184_s1, %s1792_s7  ;;  %s32_s30 = int_to_ptr.vmem [resolvable:$true] %s31_s30 }
  0x16   :  { %p1796_p9 = scmp.lt.u32.totalorder %s1792_s7, %s2184_s1 }
  0x18   :  { %p1798_p10 = pnand %p1796_p9, %p1793_p8 }
  0x1a   :  { %1801 = shalt.err (!%p1798_p10)
}
  0x1b   :  { %s1802_s12 = scalar_lea.vmem %s32_s30, 1024  ;;  %p1807_p12 = scmp.lt.s32.totalorder %s32_s30, %s32_s30 }
  0x1c   :  { %p1803_p11 = scmp.ne.s32.totalorder %s32_s30, %s1802_s12  ;;  %p1808_p13 = scmp.lt.s32.totalorder %s1802_s12, %s1802_s12 }
  0x1e   :  { %p1809_p0 = por %p1808_p13, %p1807_p12 }
  0x20   :  { %p1810_p1 = pnand %p1809_p0, %p1803_p11 }
  0x22   :  { %1813 = shalt.err (!%p1810_p1)
}
  0x23   :  { %37 = dma.hbm_to_vmem [thread:$0]  %s2184_s1, 1024, %s32_s30, [#allocation6], %s1889_s25, %s1889_s25, %s1890_s26  }
  0x24   :  { %1880 = dma.done.wait [#allocation3], 4096  }
  0x25   :  { %1881 = vsyncadd [#allocation3], 4294963200 }
  0x26   :  { %1882 = dma.done.wait [#allocation6], 1024  }
  0x27   :  { %1883 = vsyncadd [#allocation6], 4294966272  ;;  %v1730_v0 = vld [vmem:[#allocation5] sm:$0xff]   ;;  %v1731_v1 = vld [vmem:[#allocation5 + $0x8] sm:$0xff]   ;;  %s1892_s1 = smov [#allocation7]  }
  0x28   :  { %1627 = vmatprep.subr.bf16.mxu0 %v1730_v0  ;;  %1707 = vmatprep.subr.bf16.mxu1 %v1730_v0  ;;  %v1732_v2 = vld [vmem:[#allocation5 + $0x10] sm:$0xff]   ;;  %v1733_v3 = vld [vmem:[#allocation5 + $0x18] sm:$0xff]   ;;  %v1738_v4 = vld [vmem:[#allocation2] sm:$0xff]   ;;  %s1188_s14 = sshll.u32 %s1892_s1, 4  ;;  %s1189_s14 = int_to_ptr.vmem [resolvable:$true] %s1188_s14 }
  0x29   :  { %1628 = vmatpush3.bf16.msra.mxu0 %v1730_v0  ;;  %1715 = vmatpush3.bf16.msra.mxu1 %v1730_v0  ;;  %v1734_v5 = vld [vmem:[#allocation5 + $0x20] sm:$0xff]   ;;  %v1735_v6 = vld [vmem:[#allocation5 + $0x28] sm:$0xff]   ;;  %v1736_v7 = vld [vmem:[#allocation5 + $0x30] sm:$0xff]   ;;  %s1814_s15 = scalar_lea.vmem %s1189_s14, 4096  ;;  %p1819_p3 = scmp.lt.s32.totalorder %s1189_s14, %s1189_s14 }
  0x2a   :  { %1629 = vmatprep.subr.bf16.mxu0 %v1731_v1  ;;  %1708 = vmatprep.subr.bf16.mxu1 %v1731_v1  ;;  %v1737_v8 = vld [vmem:[#allocation5 + $0x38] sm:$0xff]   ;;  %v1754_v9 = vld [vmem:[#allocation2 + $0x80] sm:$0xff]   ;;  %v1739_v10 = vld [vmem:[#allocation2 + $0x8] sm:$0xff]   ;;  %p1815_p2 = scmp.ne.s32.totalorder %s1189_s14, %s1814_s15  ;;  %p1820_p4 = scmp.lt.s32.totalorder %s1814_s15, %s1814_s15 }
  0x2b   :  { %1643 = vmatprep.mubr.bf16.mxu0 %v1738_v4  ;;  %1675 = vmatprep.mubr.bf16.mxu1 %v1754_v9  ;;  %v1740_v11 = vld [vmem:[#allocation2 + $0x10] sm:$0xff]   ;;  %v1755_v12 = vld [vmem:[#allocation2 + $0x88] sm:$0xff]   ;;  %v1741_v14 = vld [vmem:[#allocation2 + $0x18] sm:$0xff]  }
  0x2c   :  { %v1756_v13 = vld [vmem:[#allocation2 + $0x90] sm:$0xff]   ;;  %v1742_v15 = vld [vmem:[#allocation2 + $0x20] sm:$0xff]   ;;  %v1757_v16 = vld [vmem:[#allocation2 + $0x98] sm:$0xff]   ;;  %p1821_p5 = por %p1820_p4, %p1819_p3 }
  0x2d   :  { %1630 = vmatpush3.bf16.msra.mxu0 %v1731_v1  ;;  %1716 = vmatpush3.bf16.msra.mxu1 %v1731_v1  ;;  %v1758_v17 = vld [vmem:[#allocation2 + $0xa0] sm:$0xff]   ;;  %v1743_v18 = vld [vmem:[#allocation2 + $0x28] sm:$0xff]   ;;  %v1744_v20 = vld [vmem:[#allocation2 + $0x30] sm:$0xff]  }
  0x2e   :  { %1631 = vmatprep.subr.bf16.mxu0 %v1732_v2  ;;  %1709 = vmatprep.subr.bf16.mxu1 %v1732_v2  ;;  %v1759_v19 = vld [vmem:[#allocation2 + $0xa8] sm:$0xff]   ;;  %v1760_v21 = vld [vmem:[#allocation2 + $0xb0] sm:$0xff]   ;;  %v1745_v22 = vld [vmem:[#allocation2 + $0x38] sm:$0xff]   ;;  %p1822_p6 = pnand %p1821_p5, %p1815_p2 }
  0x2f   :  { %v1761_v23 = vld [vmem:[#allocation2 + $0xb8] sm:$0xff]   ;;  %v1746_v24 = vld [vmem:[#allocation2 + $0x40] sm:$0xff]   ;;  %v1747_v26 = vld [vmem:[#allocation2 + $0x48] sm:$0xff]  }
  0x30   :  { %v1762_v25 = vld [vmem:[#allocation2 + $0xc0] sm:$0xff]   ;;  %v1763_v27 = vld [vmem:[#allocation2 + $0xc8] sm:$0xff]   ;;  %v1748_v28 = vld [vmem:[#allocation2 + $0x50] sm:$0xff]  }
  0x31   :  { %1632 = vmatpush3.bf16.msra.mxu0 %v1732_v2  ;;  %1717 = vmatpush3.bf16.msra.mxu1 %v1732_v2  ;;  %v1764_v29 = vld [vmem:[#allocation2 + $0xd0] sm:$0xff]   ;;  %v1749_v30 = vld [vmem:[#allocation2 + $0x58] sm:$0xff]   ;;  %v1750_v32 = vld [vmem:[#allocation2 + $0x60] sm:$0xff]  }
  0x32   :  { %1633 = vmatprep.subr.bf16.mxu0 %v1733_v3  ;;  %1710 = vmatprep.subr.bf16.mxu1 %v1733_v3  ;;  %v1765_v31 = vld [vmem:[#allocation2 + $0xd8] sm:$0xff]   ;;  %v1766_v33 = vld [vmem:[#allocation2 + $0xe0] sm:$0xff]   ;;  %v1751_v34 = vld [vmem:[#allocation2 + $0x68] sm:$0xff]  }
  0x33   :  { %v1767_v35 = vld [vmem:[#allocation2 + $0xe8] sm:$0xff]   ;;  %v1752_v36 = vld [vmem:[#allocation2 + $0x70] sm:$0xff]   ;;  %v1753_v38 = vld [vmem:[#allocation2 + $0x78] sm:$0xff]  }
  0x34   :  { %v1768_v37 = vld [vmem:[#allocation2 + $0xf0] sm:$0xff]   ;;  %v1769_v39 = vld [vmem:[#allocation2 + $0xf8] sm:$0xff]  }
  0x35   :  { %1634 = vmatpush3.bf16.msra.mxu0 %v1733_v3  ;;  %1718 = vmatpush3.bf16.msra.mxu1 %v1733_v3 }
  0x36   :  { %1635 = vmatprep.subr.bf16.mxu0 %v1734_v5  ;;  %1711 = vmatprep.subr.bf16.mxu1 %v1734_v5 }
  0x39   :  { %1636 = vmatpush3.bf16.msra.mxu0 %v1734_v5  ;;  %1719 = vmatpush3.bf16.msra.mxu1 %v1734_v5 }
  0x3a   :  { %1637 = vmatprep.subr.bf16.mxu0 %v1735_v6  ;;  %1712 = vmatprep.subr.bf16.mxu1 %v1735_v6 }
  0x3d   :  { %1638 = vmatpush3.bf16.msra.mxu0 %v1735_v6  ;;  %1720 = vmatpush3.bf16.msra.mxu1 %v1735_v6 }
  0x3e   :  { %1639 = vmatprep.subr.bf16.mxu0 %v1736_v7  ;;  %1713 = vmatprep.subr.bf16.mxu1 %v1736_v7 }
  0x41   :  { %1640 = vmatpush3.bf16.msra.mxu0 %v1736_v7  ;;  %1721 = vmatpush3.bf16.msra.mxu1 %v1736_v7 }
  0x42   :  { %1641 = vmatprep.subr.bf16.mxu0 %v1737_v8  ;;  %1714 = vmatprep.subr.bf16.mxu1 %v1737_v8 }
  0x45   :  { %1642 = vmatpush3.bf16.msra.mxu0 %v1737_v8  ;;  %1722 = vmatpush3.bf16.msra.mxu1 %v1737_v8 }
  0x48   :  { %1644 = vmatmul.mubr.bf16.vlgmr.msra.gmra.mrb[0].mxu0 %v1739_v10  ;;  %1676 = vmatmul.mubr.bf16.vlgmr.msra.gmra.mrb[0].mxu1 %v1755_v12 }
  0x49   :  { %1647 = vmatprep.mubr.bf16.mxu0 %v1740_v11  ;;  %1679 = vmatprep.mubr.bf16.mxu1 %v1756_v13 }
  0x50   :  { %1648 = vmatmul.mubr.bf16.gmra.mrb[4].mxu0 %v1741_v14  ;;  %1680 = vmatmul.mubr.bf16.gmra.mrb[4].mxu1 %v1757_v16 }
  0x51   :  { %1651 = vmatprep.mubr.bf16.mxu0 %v1742_v15  ;;  %1683 = vmatprep.mubr.bf16.mxu1 %v1758_v17 }
  0x58   :  { %1652 = vmatmul.mubr.bf16.gmra.mrb[8].mxu0 %v1743_v18  ;;  %1684 = vmatmul.mubr.bf16.gmra.mrb[8].mxu1 %v1759_v19 }
  0x59   :  { %1655 = vmatprep.mubr.bf16.mxu0 %v1744_v20  ;;  %1687 = vmatprep.mubr.bf16.mxu1 %v1760_v21 }
  0x60   :  { %1656 = vmatmul.mubr.bf16.gmra.mrb[12].mxu0 %v1745_v22  ;;  %1688 = vmatmul.mubr.bf16.gmra.mrb[12].mxu1 %v1761_v23 }
  0x61   :  { %1659 = vmatprep.mubr.bf16.mxu0 %v1746_v24  ;;  %1691 = vmatprep.mubr.bf16.mxu1 %v1762_v25 }
  0x68   :  { %1660 = vmatmul.mubr.bf16.gmra.mrb[16].mxu0 %v1747_v26  ;;  %1692 = vmatmul.mubr.bf16.gmra.mrb[16].mxu1 %v1763_v27 }
  0x69   :  { %1663 = vmatprep.mubr.bf16.mxu0 %v1748_v28  ;;  %1695 = vmatprep.mubr.bf16.mxu1 %v1764_v29 }
  0x70   :  { %1664 = vmatmul.mubr.bf16.gmra.mrb[20].mxu0 %v1749_v30  ;;  %1696 = vmatmul.mubr.bf16.gmra.mrb[20].mxu1 %v1765_v31 }
  0x71   :  { %1667 = vmatprep.mubr.bf16.mxu0 %v1750_v32  ;;  %1699 = vmatprep.mubr.bf16.mxu1 %v1766_v33 }
  0x78   :  { %1668 = vmatmul.mubr.bf16.gmra.mrb[24].mxu0 %v1751_v34  ;;  %1700 = vmatmul.mubr.bf16.gmra.mrb[24].mxu1 %v1767_v35 }
  0x79   :  { %1671 = vmatprep.mubr.bf16.mxu0 %v1752_v36  ;;  %1703 = vmatprep.mubr.bf16.mxu1 %v1768_v37 }
  0x80   :  { %1672 = vmatmul.mubr.bf16.gmra.mrb[28].mxu0 %v1753_v38  ;;  %1704 = vmatmul.mubr.bf16.gmra.mrb[28].mxu1 %v1769_v39 }
 0x11b   :  { %v1645_v40 = vpop.f32.mrb[0].mxu0  ;;  %v1950_v41 = vpop.f32.mrb[0].mxu1 }
 0x11c   :  { %v399_v42 = vpop.f32.mrb[1].mxu0  ;;  %v1952_v43 = vpop.f32.mrb[1].mxu1  ;;  %v1045_v55 = vmul.f32 %v1645_v40, %v1645_v40 }
 0x11d   :  { %v1646_v44 = vpop.f32.mrb[2].mxu0  ;;  %v1954_v45 = vpop.f32.mrb[2].mxu1  ;;  %v1043_v46 = vmul.f32 %v399_v42, %v399_v42 }
 0x11e   :  { %v1404_v47 = vpack.c.bf16 %v1646_v44, %v1645_v40  ;;  %v402_v48 = vpop.f32.mrb[3].mxu0  ;;  %v1484_v49 = vpack.c.bf16 %v1954_v45, %v1950_v41  ;;  %v1958_v50 = vpop.f32.mrb[3].mxu1  ;;  %v1046_v58 = vmul.f32 %v1646_v44, %v1646_v44 }
 0x11f   :  { %v1399_v51 = vpack.c.bf16 %v402_v48, %v399_v42  ;;  %v974_v52 = vadd.f32 %v402_v48, %v399_v42  ;;  %v1044_v53 = vmul.f32 %v402_v48, %v402_v48  ;;  %v1479_v54 = vpack.c.bf16 %v1958_v50, %v1952_v43 }
 0x120   :  { %1556 = vst [vmem:[#allocation7 + $0x8] sm:$0xff] %v1404_v47   ;;  %1572 = vst [vmem:[#allocation7 + $0x88] sm:$0xff] %v1484_v49  }
 0x121   :  { %1400 = vst [vmem:[#allocation7] sm:$0xff] %v1399_v51   ;;  %v975_v56 = vadd.f32 %v1645_v40, %v974_v52  ;;  %v1107_v57 = vadd.f32 %v1044_v53, %v1043_v46  ;;  %1571 = vst [vmem:[#allocation7 + $0x80] sm:$0xff] %v1479_v54  }
 0x123   :  { %v1108_v59 = vadd.f32 %v1107_v57, %v1045_v55  ;;  %v1649_v60 = vpop.f32.mrb[4].mxu0  ;;  %v976_v61 = vadd.f32 %v1646_v44, %v975_v56  ;;  %v1962_v62 = vpop.f32.mrb[4].mxu1 }
 0x124   :  { %v415_v63 = vpop.f32.mrb[5].mxu0  ;;  %v1964_v0 = vpop.f32.mrb[5].mxu1  ;;  %v1049_v15 = vmul.f32 %v1649_v60, %v1649_v60 }
 0x125   :  { %v977_v1 = vadd.f32 %v976_v61, %v415_v63  ;;  %v1047_v2 = vmul.f32 %v415_v63, %v415_v63  ;;  %v1109_v3 = vadd.f32 %v1108_v59, %v1046_v58  ;;  %v1650_v4 = vpop.f32.mrb[6].mxu0  ;;  %v1966_v5 = vpop.f32.mrb[6].mxu1 }
 0x126   :  { %v1414_v6 = vpack.c.bf16 %v1650_v4, %v1649_v60  ;;  %v418_v7 = vpop.f32.mrb[7].mxu0  ;;  %v1494_v8 = vpack.c.bf16 %v1966_v5, %v1962_v62  ;;  %v1970_v9 = vpop.f32.mrb[7].mxu1  ;;  %v1050_v18 = vmul.f32 %v1650_v4, %v1650_v4 }
 0x127   :  { %v1110_v10 = vadd.f32 %v1109_v3, %v1047_v2  ;;  %v1409_v11 = vpack.c.bf16 %v418_v7, %v415_v63  ;;  %v978_v12 = vadd.f32 %v977_v1, %v418_v7  ;;  %v1048_v13 = vmul.f32 %v418_v7, %v418_v7 }
 0x128   :  { %1558 = vst [vmem:[#allocation7 + $0x18] sm:$0xff] %v1414_v6   ;;  %1574 = vst [vmem:[#allocation7 + $0x98] sm:$0xff] %v1494_v8   ;;  %v1489_v14 = vpack.c.bf16 %v1970_v9, %v1964_v0 }
 0x129   :  { %1557 = vst [vmem:[#allocation7 + $0x10] sm:$0xff] %v1409_v11   ;;  %v979_v16 = vadd.f32 %v1649_v60, %v978_v12  ;;  %v1111_v17 = vadd.f32 %v1110_v10, %v1048_v13 }
 0x12a   :  { %1573 = vst [vmem:[#allocation7 + $0x90] sm:$0xff] %v1489_v14  }
 0x12b   :  { %v1112_v19 = vadd.f32 %v1111_v17, %v1049_v15  ;;  %v1653_v20 = vpop.f32.mrb[8].mxu0  ;;  %v980_v21 = vadd.f32 %v1650_v4, %v979_v16  ;;  %v1974_v22 = vpop.f32.mrb[8].mxu1 }
 0x12c   :  { %v431_v23 = vpop.f32.mrb[9].mxu0  ;;  %v1976_v24 = vpop.f32.mrb[9].mxu1  ;;  %v1053_v39 = vmul.f32 %v1653_v20, %v1653_v20 }
 0x12d   :  { %v981_v25 = vadd.f32 %v980_v21, %v431_v23  ;;  %v1051_v26 = vmul.f32 %v431_v23, %v431_v23  ;;  %v1113_v27 = vadd.f32 %v1112_v19, %v1050_v18  ;;  %v1654_v28 = vpop.f32.mrb[10].mxu0  ;;  %v1978_v29 = vpop.f32.mrb[10].mxu1 }
 0x12e   :  { %v1424_v30 = vpack.c.bf16 %v1654_v28, %v1653_v20  ;;  %v434_v31 = vpop.f32.mrb[11].mxu0  ;;  %v1504_v32 = vpack.c.bf16 %v1978_v29, %v1974_v22  ;;  %v1982_v33 = vpop.f32.mrb[11].mxu1  ;;  %v1054_v44 = vmul.f32 %v1654_v28, %v1654_v28 }
 0x12f   :  { %v1114_v34 = vadd.f32 %v1113_v27, %v1051_v26  ;;  %v1419_v35 = vpack.c.bf16 %v434_v31, %v431_v23  ;;  %v982_v36 = vadd.f32 %v981_v25, %v434_v31  ;;  %v1052_v37 = vmul.f32 %v434_v31, %v434_v31 }
 0x130   :  { %1560 = vst [vmem:[#allocation7 + $0x28] sm:$0xff] %v1424_v30   ;;  %1576 = vst [vmem:[#allocation7 + $0xa8] sm:$0xff] %v1504_v32   ;;  %v1499_v38 = vpack.c.bf16 %v1982_v33, %v1976_v24 }
 0x131   :  { %1559 = vst [vmem:[#allocation7 + $0x20] sm:$0xff] %v1419_v35   ;;  %v983_v40 = vadd.f32 %v1653_v20, %v982_v36  ;;  %v1115_v42 = vadd.f32 %v1114_v34, %v1052_v37 }
 0x132   :  { %1575 = vst [vmem:[#allocation7 + $0xa0] sm:$0xff] %v1499_v38  }
 0x133   :  { %v1116_v46 = vadd.f32 %v1115_v42, %v1053_v39  ;;  %v1657_v47 = vpop.f32.mrb[12].mxu0  ;;  %v984_v48 = vadd.f32 %v1654_v28, %v983_v40  ;;  %v1986_v49 = vpop.f32.mrb[12].mxu1 }
 0x134   :  { %v447_v51 = vpop.f32.mrb[13].mxu0  ;;  %v1988_v52 = vpop.f32.mrb[13].mxu1  ;;  %v1057_v6 = vmul.f32 %v1657_v47, %v1657_v47 }
 0x135   :  { %v985_v53 = vadd.f32 %v984_v48, %v447_v51  ;;  %v1055_v54 = vmul.f32 %v447_v51, %v447_v51  ;;  %v1117_v55 = vadd.f32 %v1116_v46, %v1054_v44  ;;  %v1658_v56 = vpop.f32.mrb[14].mxu0  ;;  %v1990_v57 = vpop.f32.mrb[14].mxu1 }
 0x136   :  { %v1434_v58 = vpack.c.bf16 %v1658_v56, %v1657_v47  ;;  %v450_v59 = vpop.f32.mrb[15].mxu0  ;;  %v1514_v60 = vpack.c.bf16 %v1990_v57, %v1986_v49  ;;  %v1994_v61 = vpop.f32.mrb[15].mxu1  ;;  %v1058_v10 = vmul.f32 %v1658_v56, %v1658_v56 }
 0x137   :  { %v1118_v63 = vadd.f32 %v1117_v55, %v1055_v54  ;;  %v1429_v1 = vpack.c.bf16 %v450_v59, %v447_v51  ;;  %v986_v2 = vadd.f32 %v985_v53, %v450_v59  ;;  %v1056_v3 = vmul.f32 %v450_v59, %v450_v59 }
 0x138   :  { %1562 = vst [vmem:[#allocation7 + $0x38] sm:$0xff] %v1434_v58   ;;  %1578 = vst [vmem:[#allocation7 + $0xb8] sm:$0xff] %v1514_v60   ;;  %v1509_v4 = vpack.c.bf16 %v1994_v61, %v1988_v52 }
 0x139   :  { %1561 = vst [vmem:[#allocation7 + $0x30] sm:$0xff] %v1429_v1   ;;  %v987_v7 = vadd.f32 %v1657_v47, %v986_v2  ;;  %v1119_v8 = vadd.f32 %v1118_v63, %v1056_v3 }
 0x13a   :  { %1577 = vst [vmem:[#allocation7 + $0xb0] sm:$0xff] %v1509_v4  }
 0x13b   :  { %v1120_v11 = vadd.f32 %v1119_v8, %v1057_v6  ;;  %v1661_v12 = vpop.f32.mrb[16].mxu0  ;;  %v988_v13 = vadd.f32 %v1658_v56, %v987_v7  ;;  %v1998_v14 = vpop.f32.mrb[16].mxu1 }
 0x13c   :  { %v463_v15 = vpop.f32.mrb[17].mxu0  ;;  %v2000_v16 = vpop.f32.mrb[17].mxu1  ;;  %v1061_v35 = vmul.f32 %v1661_v12, %v1661_v12 }
 0x13d   :  { %v989_v17 = vadd.f32 %v988_v13, %v463_v15  ;;  %v1059_v18 = vmul.f32 %v463_v15, %v463_v15  ;;  %v1121_v19 = vadd.f32 %v1120_v11, %v1058_v10  ;;  %v1662_v20 = vpop.f32.mrb[18].mxu0  ;;  %v2002_v21 = vpop.f32.mrb[18].mxu1 }
 0x13e   :  { %v1444_v23 = vpack.c.bf16 %v1662_v20, %v1661_v12  ;;  %v466_v25 = vpop.f32.mrb[19].mxu0  ;;  %v1524_v26 = vpack.c.bf16 %v2002_v21, %v1998_v14  ;;  %v2006_v27 = vpop.f32.mrb[19].mxu1  ;;  %v1062_v38 = vmul.f32 %v1662_v20, %v1662_v20 }
 0x13f   :  { %v1122_v28 = vadd.f32 %v1121_v19, %v1059_v18  ;;  %v1439_v30 = vpack.c.bf16 %v466_v25, %v463_v15  ;;  %v990_v31 = vadd.f32 %v989_v17, %v466_v25  ;;  %v1060_v32 = vmul.f32 %v466_v25, %v466_v25 }
 0x140   :  { %1564 = vst [vmem:[#allocation7 + $0x48] sm:$0xff] %v1444_v23   ;;  %1580 = vst [vmem:[#allocation7 + $0xc8] sm:$0xff] %v1524_v26   ;;  %v1519_v34 = vpack.c.bf16 %v2006_v27, %v2000_v16 }
 0x141   :  { %1563 = vst [vmem:[#allocation7 + $0x40] sm:$0xff] %v1439_v30   ;;  %v991_v36 = vadd.f32 %v1661_v12, %v990_v31  ;;  %v1123_v37 = vadd.f32 %v1122_v28, %v1060_v32 }
 0x142   :  { %1579 = vst [vmem:[#allocation7 + $0xc0] sm:$0xff] %v1519_v34  }
 0x143   :  { %v1124_v39 = vadd.f32 %v1123_v37, %v1061_v35  ;;  %v1665_v40 = vpop.f32.mrb[20].mxu0  ;;  %v992_v42 = vadd.f32 %v1662_v20, %v991_v36  ;;  %v2010_v44 = vpop.f32.mrb[20].mxu1 }
 0x144   :  { %v479_v46 = vpop.f32.mrb[21].mxu0  ;;  %v2012_v47 = vpop.f32.mrb[21].mxu1  ;;  %v1065_v6 = vmul.f32 %v1665_v40, %v1665_v40 }
 0x145   :  { %v993_v48 = vadd.f32 %v992_v42, %v479_v46  ;;  %v1063_v51 = vmul.f32 %v479_v46, %v479_v46  ;;  %v1125_v53 = vadd.f32 %v1124_v39, %v1062_v38  ;;  %v1666_v54 = vpop.f32.mrb[22].mxu0  ;;  %v2014_v55 = vpop.f32.mrb[22].mxu1 }
 0x146   :  { %v1454_v56 = vpack.c.bf16 %v1666_v54, %v1665_v40  ;;  %v482_v58 = vpop.f32.mrb[23].mxu0  ;;  %v1534_v59 = vpack.c.bf16 %v2014_v55, %v2010_v44  ;;  %v2018_v60 = vpop.f32.mrb[23].mxu1  ;;  %v1066_v10 = vmul.f32 %v1666_v54, %v1666_v54 }
 0x147   :  { %v1126_v63 = vadd.f32 %v1125_v53, %v1063_v51  ;;  %v1449_v1 = vpack.c.bf16 %v482_v58, %v479_v46  ;;  %v994_v2 = vadd.f32 %v993_v48, %v482_v58  ;;  %v1064_v3 = vmul.f32 %v482_v58, %v482_v58 }
 0x148   :  { %1566 = vst [vmem:[#allocation7 + $0x58] sm:$0xff] %v1454_v56   ;;  %1582 = vst [vmem:[#allocation7 + $0xd8] sm:$0xff] %v1534_v59   ;;  %v1529_v4 = vpack.c.bf16 %v2018_v60, %v2012_v47 }
 0x149   :  { %1565 = vst [vmem:[#allocation7 + $0x50] sm:$0xff] %v1449_v1   ;;  %v995_v7 = vadd.f32 %v1665_v40, %v994_v2  ;;  %v1127_v8 = vadd.f32 %v1126_v63, %v1064_v3 }
 0x14a   :  { %1581 = vst [vmem:[#allocation7 + $0xd0] sm:$0xff] %v1529_v4  }
 0x14b   :  { %v1128_v11 = vadd.f32 %v1127_v8, %v1065_v6  ;;  %v1669_v12 = vpop.f32.mrb[24].mxu0  ;;  %v996_v13 = vadd.f32 %v1666_v54, %v995_v7  ;;  %v2022_v15 = vpop.f32.mrb[24].mxu1 }
 0x14c   :  { %v495_v17 = vpop.f32.mrb[25].mxu0  ;;  %v2024_v18 = vpop.f32.mrb[25].mxu1  ;;  %v1069_v39 = vmul.f32 %v1669_v12, %v1669_v12 }
 0x14d   :  { %v997_v19 = vadd.f32 %v996_v13, %v495_v17  ;;  %v1067_v20 = vmul.f32 %v495_v17, %v495_v17  ;;  %v1129_v23 = vadd.f32 %v1128_v11, %v1066_v10  ;;  %v1670_v25 = vpop.f32.mrb[26].mxu0  ;;  %v2026_v26 = vpop.f32.mrb[26].mxu1 }
 0x14e   :  { %v1464_v28 = vpack.c.bf16 %v1670_v25, %v1669_v12  ;;  %v498_v30 = vpop.f32.mrb[27].mxu0  ;;  %v1544_v31 = vpack.c.bf16 %v2026_v26, %v2022_v15  ;;  %v2030_v32 = vpop.f32.mrb[27].mxu1  ;;  %v1070_v46 = vmul.f32 %v1670_v25, %v1670_v25 }
 0x14f   :  { %v1130_v34 = vadd.f32 %v1129_v23, %v1067_v20  ;;  %v1459_v35 = vpack.c.bf16 %v498_v30, %v495_v17  ;;  %v998_v36 = vadd.f32 %v997_v19, %v498_v30  ;;  %v1068_v37 = vmul.f32 %v498_v30, %v498_v30 }
 0x150   :  { %1568 = vst [vmem:[#allocation7 + $0x68] sm:$0xff] %v1464_v28   ;;  %1584 = vst [vmem:[#allocation7 + $0xe8] sm:$0xff] %v1544_v31   ;;  %v1539_v38 = vpack.c.bf16 %v2030_v32, %v2024_v18  ;;  %v1075_v31 = vmul.f32 %v1952_v43, %v1952_v43 }
 0x151   :  { %1567 = vst [vmem:[#allocation7 + $0x60] sm:$0xff] %v1459_v35   ;;  %v999_v40 = vadd.f32 %v1669_v12, %v998_v36  ;;  %v1131_v42 = vadd.f32 %v1130_v34, %v1068_v37 }
 0x152   :  { %1583 = vst [vmem:[#allocation7 + $0xe0] sm:$0xff] %v1539_v38  }
 0x153   :  { %v1132_v48 = vadd.f32 %v1131_v42, %v1069_v39  ;;  %v1673_v51 = vpop.f32.mrb[28].mxu0  ;;  %v1000_v53 = vadd.f32 %v1670_v25, %v999_v40  ;;  %v2034_v54 = vpop.f32.mrb[28].mxu1 }
 0x154   :  { %v511_v56 = vpop.f32.mrb[29].mxu0  ;;  %v2036_v58 = vpop.f32.mrb[29].mxu1  ;;  %v1073_v19 = vmul.f32 %v1673_v51, %v1673_v51 }
 0x155   :  { %v1001_v59 = vadd.f32 %v1000_v53, %v511_v56  ;;  %v1071_v63 = vmul.f32 %v511_v56, %v511_v56  ;;  %v1133_v1 = vadd.f32 %v1132_v48, %v1070_v46  ;;  %v1674_v2 = vpop.f32.mrb[30].mxu0  ;;  %v2038_v3 = vpop.f32.mrb[30].mxu1 }
 0x156   :  { %v1474_v4 = vpack.c.bf16 %v1674_v2, %v1673_v51  ;;  %v514_v6 = vpop.f32.mrb[31].mxu0  ;;  %v1554_v7 = vpack.c.bf16 %v2038_v3, %v2034_v54  ;;  %v2042_v8 = vpop.f32.mrb[31].mxu1  ;;  %v1074_v25 = vmul.f32 %v1674_v2, %v1674_v2 }
 0x157   :  { %v1134_v10 = vadd.f32 %v1133_v1, %v1071_v63  ;;  %v1469_v11 = vpack.c.bf16 %v514_v6, %v511_v56  ;;  %v1002_v12 = vadd.f32 %v1001_v59, %v514_v6  ;;  %v1072_v13 = vmul.f32 %v514_v6, %v514_v6 }
 0x158   :  { %1570 = vst [vmem:[#allocation7 + $0x78] sm:$0xff] %v1474_v4   ;;  %1586 = vst [vmem:[#allocation7 + $0xf8] sm:$0xff] %v1554_v7   ;;  %v1549_v17 = vpack.c.bf16 %v2042_v8, %v2036_v58 }
 0x159   :  { %1569 = vst [vmem:[#allocation7 + $0x70] sm:$0xff] %v1469_v11   ;;  %v1003_v20 = vadd.f32 %v1673_v51, %v1002_v12  ;;  %v1135_v23 = vadd.f32 %v1134_v10, %v1072_v13 }
 0x15a   :  { %1585 = vst [vmem:[#allocation7 + $0xf0] sm:$0xff] %v1549_v17  }
 0x15b   :  { %v1136_v28 = vadd.f32 %v1135_v23, %v1073_v19  ;;  %v1004_v30 = vadd.f32 %v1674_v2, %v1003_v20 }
 0x15c   :  { %1825 = shalt.err (!%p1822_p6)
}
 0x15d   :  { %s1826_s18 = scalar_lea.hbm %s2185_s2, 4096 }
 0x15e   :  { %p1827_p7 = scmp.ne.s32.totalorder %s2185_s2, %s1826_s18  ;;  %p1830_p8 = scmp.lt.u32.totalorder %s1826_s18, %s2185_s2 }
 0x160   :  { %p1832_p9 = pnand %p1830_p8, %p1827_p7 }
 0x162   :  { %1835 = shalt.err (!%p1832_p9)
}
 0x163   :  { %1194 = dma.vmem_to_hbm [thread:$0]  %s1189_s14, 4096, %s2185_s2, [#allocation4], %s1889_s25, %s1889_s25, %s1890_s26   ;;  %v1005_v34 = vadd.f32 %v1004_v30, %v1952_v43  ;;  %v1137_v35 = vadd.f32 %v1136_v28, %v1074_v25  ;;  %v1076_v38 = vmul.f32 %v1958_v50, %v1958_v50  ;;  %v1077_v39 = vmul.f32 %v1950_v41, %v1950_v41 }
 0x164   :  { %v1078_v46 = vmul.f32 %v1954_v45, %v1954_v45  ;;  %v1079_v43 = vmul.f32 %v1964_v0, %v1964_v0  ;;  %v1080_v63 = vmul.f32 %v1970_v9, %v1970_v9  ;;  %v1084_v12 = vmul.f32 %v1982_v33, %v1982_v33  ;;  %s1893_s2 = smov [#allocation8]   ;;  %s1894_s26 = smov [#allocation10]  }
 0x165   :  { %v1138_v36 = vadd.f32 %v1137_v35, %v1075_v31  ;;  %v1006_v37 = vadd.f32 %v1005_v34, %v1958_v50  ;;  %v1088_v30 = vmul.f32 %v1994_v61, %v1994_v61  ;;  %s1201_s25 = sshll.u32 %s1893_s2, 4  ;;  %s1211_s27 = sshll.u32 %s1894_s26, 4  ;;  %s1202_s25 = int_to_ptr.vmem [resolvable:$true] %s1201_s25  ;;  %s1212_s27 = int_to_ptr.vmem [resolvable:$true] %s1211_s27 }
 0x166   :  { %s1836_s28 = scalar_lea.vmem %s1202_s25, 128  ;;  %p1841_p11 = scmp.lt.s32.totalorder %s1202_s25, %s1202_s25 }
 0x167   :  { %v1007_v40 = vadd.f32 %v1950_v41, %v1006_v37  ;;  %v1139_v42 = vadd.f32 %v1138_v36, %v1076_v38  ;;  %v1081_v41 = vmul.f32 %v1962_v62, %v1962_v62  ;;  %p1837_p10 = scmp.ne.s32.totalorder %s1202_s25, %s1836_s28  ;;  %p1842_p12 = scmp.lt.s32.totalorder %s1836_s28, %s1836_s28 }
 0x169   :  { %v1140_v48 = vadd.f32 %v1139_v42, %v1077_v39  ;;  %v1008_v51 = vadd.f32 %v1954_v45, %v1007_v40  ;;  %v1082_v45 = vmul.f32 %v1966_v5, %v1966_v5  ;;  %v1092_v40 = vmul.f32 %v2006_v27, %v2006_v27  ;;  %p1843_p13 = por %p1842_p12, %p1841_p11 }
 0x16b   :  { %v1009_v53 = vadd.f32 %v1008_v51, %v1964_v0  ;;  %v1141_v56 = vadd.f32 %v1140_v48, %v1078_v46  ;;  %v1083_v0 = vmul.f32 %v1976_v24, %v1976_v24  ;;  %p1844_p0 = pnand %p1843_p13, %p1837_p10 }
 0x16d   :  { %v1142_v59 = vadd.f32 %v1141_v56, %v1079_v43  ;;  %v1010_v50 = vadd.f32 %v1009_v53, %v1970_v9 }
 0x16f   :  { %v1011_v1 = vadd.f32 %v1962_v62, %v1010_v50  ;;  %v1143_v2 = vadd.f32 %v1142_v59, %v1080_v63  ;;  %v1085_v62 = vmul.f32 %v1974_v22, %v1974_v22  ;;  %v1096_v59 = vmul.f32 %v2018_v60, %v2018_v60 }
 0x171   :  { %v1144_v4 = vadd.f32 %v1143_v2, %v1081_v41  ;;  %v1012_v6 = vadd.f32 %v1966_v5, %v1011_v1  ;;  %v1086_v5 = vmul.f32 %v1978_v29, %v1978_v29 }
 0x173   :  { %v1013_v7 = vadd.f32 %v1012_v6, %v1976_v24  ;;  %v1145_v10 = vadd.f32 %v1144_v4, %v1082_v45  ;;  %v1087_v24 = vmul.f32 %v1988_v52, %v1988_v52  ;;  %v1100_v6 = vmul.f32 %v2030_v32, %v2030_v32 }
 0x175   :  { %v1146_v11 = vadd.f32 %v1145_v10, %v1083_v0  ;;  %v1014_v9 = vadd.f32 %v1013_v7, %v1982_v33 }
 0x177   :  { %v1015_v13 = vadd.f32 %v1974_v22, %v1014_v9  ;;  %v1147_v17 = vadd.f32 %v1146_v11, %v1084_v12  ;;  %v1089_v22 = vmul.f32 %v1986_v49, %v1986_v49 }
 0x179   :  { %v1148_v19 = vadd.f32 %v1147_v17, %v1085_v62  ;;  %v1016_v20 = vadd.f32 %v1978_v29, %v1015_v13  ;;  %v1090_v29 = vmul.f32 %v1990_v57, %v1990_v57  ;;  %v1104_v13 = vmul.f32 %v2042_v8, %v2042_v8 }
 0x17b   :  { %v1017_v23 = vadd.f32 %v1016_v20, %v1988_v52  ;;  %v1149_v25 = vadd.f32 %v1148_v19, %v1086_v5  ;;  %v1091_v52 = vmul.f32 %v2000_v16, %v2000_v16 }
 0x17d   :  { %v1150_v28 = vadd.f32 %v1149_v25, %v1087_v24  ;;  %v1018_v33 = vadd.f32 %v1017_v23, %v1994_v61  ;;  %v1176_v23 = vlaneseq }
 0x17f   :  { %v1019_v31 = vadd.f32 %v1986_v49, %v1018_v33  ;;  %v1151_v34 = vadd.f32 %v1150_v28, %v1088_v30  ;;  %v1093_v49 = vmul.f32 %v1998_v14, %v1998_v14 }
 0x181   :  { %v1152_v35 = vadd.f32 %v1151_v34, %v1089_v22  ;;  %v1020_v36 = vadd.f32 %v1990_v57, %v1019_v31  ;;  %v1094_v57 = vmul.f32 %v2002_v21, %v2002_v21 }
 0x183   :  { %v1021_v37 = vadd.f32 %v1020_v36, %v2000_v16  ;;  %v1153_v38 = vadd.f32 %v1152_v35, %v1090_v29  ;;  %v1095_v16 = vmul.f32 %v2012_v47, %v2012_v47 }
 0x185   :  { %v1154_v39 = vadd.f32 %v1153_v38, %v1091_v52  ;;  %v1022_v61 = vadd.f32 %v1021_v37, %v2006_v27 }
 0x187   :  { %v1023_v42 = vadd.f32 %v1998_v14, %v1022_v61  ;;  %v1155_v46 = vadd.f32 %v1154_v39, %v1092_v40  ;;  %v1097_v14 = vmul.f32 %v2010_v44, %v2010_v44 }
 0x189   :  { %v1156_v48 = vadd.f32 %v1155_v46, %v1093_v49  ;;  %v1024_v51 = vadd.f32 %v2002_v21, %v1023_v42  ;;  %v1098_v21 = vmul.f32 %v2014_v55, %v2014_v55 }
 0x18b   :  { %v1025_v43 = vadd.f32 %v1024_v51, %v2012_v47  ;;  %v1157_v53 = vadd.f32 %v1156_v48, %v1094_v57  ;;  %v1099_v47 = vmul.f32 %v2024_v18, %v2024_v18 }
 0x18d   :  { %v1158_v56 = vadd.f32 %v1157_v53, %v1095_v16  ;;  %v1026_v27 = vadd.f32 %v1025_v43, %v2018_v60 }
 0x18f   :  { %v1027_v50 = vadd.f32 %v2010_v44, %v1026_v27  ;;  %v1159_v63 = vadd.f32 %v1158_v56, %v1096_v59  ;;  %v1101_v44 = vmul.f32 %v2022_v15, %v2022_v15 }
 0x191   :  { %v1160_v41 = vadd.f32 %v1159_v63, %v1097_v14  ;;  %v1028_v1 = vadd.f32 %v2014_v55, %v1027_v50  ;;  %v1102_v55 = vmul.f32 %v2026_v26, %v2026_v26 }
 0x193   :  { %v1029_v2 = vadd.f32 %v1028_v1, %v2024_v18  ;;  %v1161_v45 = vadd.f32 %v1160_v41, %v1098_v21  ;;  %v1103_v18 = vmul.f32 %v2036_v58, %v2036_v58 }
 0x195   :  { %v1162_v4 = vadd.f32 %v1161_v45, %v1099_v47  ;;  %v1030_v60 = vadd.f32 %v1029_v2, %v2030_v32 }
 0x197   :  { %v1031_v0 = vadd.f32 %v2022_v15, %v1030_v60  ;;  %v1163_v7 = vadd.f32 %v1162_v4, %v1100_v6  ;;  %v1105_v15 = vmul.f32 %v2034_v54, %v2034_v54 }
 0x199   :  { %v1164_v10 = vadd.f32 %v1163_v7, %v1101_v44  ;;  %v1032_v11 = vadd.f32 %v2026_v26, %v1031_v0  ;;  %v1106_v26 = vmul.f32 %v2038_v3, %v2038_v3 }
 0x19b   :  { %v1033_v9 = vadd.f32 %v1032_v11, %v2036_v58  ;;  %v1165_v12 = vadd.f32 %v1164_v10, %v1102_v55 }
 0x19d   :  { %v1166_v62 = vadd.f32 %v1165_v12, %v1103_v18  ;;  %v1034_v32 = vadd.f32 %v1033_v9, %v2042_v8  ;;  %v1177_v8 = vshrl.u32 %v1176_v23, 7 }
 0x19f   :  { %v1035_v17 = vadd.f32 %v2034_v54, %v1034_v32  ;;  %v1167_v5 = vadd.f32 %v1166_v62, %v1104_v13  ;;  %vm1178_vm0 = vcmp.eq.s32.totalorder %v1177_v8, 0 }
 0x1a1   :  { %v1036_v19 = vadd.f32 %v2038_v3, %v1035_v17  ;;  %v1168_v20 = vadd.f32 %v1167_v5, %v1105_v15 }
 0x1a3   :  { %v1037_v58 = vrot.slane %v1036_v19, 4  ;;  %v1169_v24 = vadd.f32 %v1168_v20, %v1106_v26 }
 0x1a5   :  { %v1038_v25 = vadd.f32 %v1037_v58, %v1036_v19  ;;  %v1170_v28 = vrot.slane %v1169_v24, 4 }
 0x1a7   :  { %v1171_v33 = vadd.f32 %v1170_v28, %v1169_v24  ;;  %v1039_v30 = vrot.slane %v1038_v25, 2 }
 0x1a9   :  { %v1040_v22 = vadd.f32 %v1039_v30, %v1038_v25  ;;  %v1172_v31 = vrot.slane %v1171_v33, 2 }
 0x1ab   :  { %v1041_v34 = vrot.slane %v1040_v22, 1  ;;  %v1173_v54 = vadd.f32 %v1172_v31, %v1171_v33 }
 0x1ad   :  { %v1042_v29 = vadd.f32 %v1041_v34, %v1040_v22  ;;  %v1174_v35 = vrot.slane %v1173_v54, 1 }
 0x1af   :  { %v1179_v3 = vsel %vm1178_vm0, %v1042_v29, 0.0  ;;  %v1175_v36 = vadd.f32 %v1174_v35, %v1173_v54 }
 0x1b0   :  { %1180 = vst [vmem:[#allocation8] sm:$0xff] %v1179_v3 }
 0x1b1   :  { %1847 = shalt.err (!%p1844_p0)
}
 0x1b2   :  { %s1848_s5 = scalar_lea.hbm %s2186_s3, 128 }
 0x1b3   :  { %p1849_p1 = scmp.ne.s32.totalorder %s2186_s3, %s1848_s5  ;;  %p1852_p2 = scmp.lt.u32.totalorder %s1848_s5, %s2186_s3 }
 0x1b5   :  { %p1854_p3 = pnand %p1852_p2, %p1849_p1 }
 0x1b7   :  { %1857 = shalt.err (!%p1854_p3)
}
 0x1b8   :  { %1204 = dma.vmem_to_hbm [thread:$0]  %s1202_s25, 128, %s2186_s3, [#allocation9]   ;;  %v1181_v52 = vsel %vm1178_vm0, %v1175_v36, 0.0 }
 0x1b9   :  { %1182 = vst [vmem:[#allocation10] sm:$0xff] %v1181_v52  ;;  %s1858_s12 = scalar_lea.vmem %s1212_s27, 128  ;;  %p1863_p5 = scmp.lt.s32.totalorder %s1212_s27, %s1212_s27 }
 0x1ba   :  { %p1859_p4 = scmp.ne.s32.totalorder %s1212_s27, %s1858_s12  ;;  %p1864_p6 = scmp.lt.s32.totalorder %s1858_s12, %s1858_s12 }
 0x1bc   :  { %p1865_p7 = por %p1864_p6, %p1863_p5 }
 0x1be   :  { %p1866_p8 = pnand %p1865_p7, %p1859_p4 }
 0x1c0   :  { %1869 = shalt.err (!%p1866_p8)
}
 0x1c1   :  { %s1870_s1 = scalar_lea.hbm %s2187_s4, 128 }
 0x1c2   :  { %p1871_p9 = scmp.ne.s32.totalorder %s2187_s4, %s1870_s1  ;;  %p1874_p10 = scmp.lt.u32.totalorder %s1870_s1, %s2187_s4 }
 0x1c4   :  { %p1876_p11 = pnand %p1874_p10, %p1871_p9 }
 0x1c6   :  { %1879 = shalt.err (!%p1876_p11)
}
 0x1c7   :  { %1214 = dma.vmem_to_hbm [thread:$0]  %s1212_s27, 128, %s2187_s4, [#allocation9]  }
 0x1c8   :  { %1884 = dma.done.wait [#allocation4], 4096  }
 0x1c9   :  { %1885 = vsyncadd [#allocation4], 4294963200 }
 0x1ca   :  { %1886 = dma.done.wait [#allocation9], 256  }
 0x1cb   :  { %1887 = vsyncadd [#allocation9], 4294967040 }
 0x1cc   :  { %1224 = vsyncpa [#allocation3], 1 }
 0x1cd   :  { %1225 = vsyncpa [#allocation6], 1 }
 0x1ce   :  { %1226 = vsyncpa [#allocation4], 1 }
 0x1cf   :  { %1227 = vsyncpa [#allocation9], 1 }

// kernel: anime_discriminator_forward.8
= control target key start
LH: loop header
LB: loop body
LE: loop exit
PB: predicated region body
PF: predicated region fallthrough
CT: control target
= control target key end

     0   :  { %7 = vsyncpa [#allocation3], 0  ;;  %s4029_s0 = inlined_call_operand.hbm [shape: bf16[2048,128], index: 0, kind: input, shape index: {}]   ;;  %s4030_s1 = inlined_call_operand.hbm [shape: bf16[128,128], index: 1, kind: input, shape index: {}]   ;;  %s4031_s2 = inlined_call_operand.hbm [shape: bf16[2048,128], index: 2, kind: output, shape index: {}]  }
   0x1   :  { %9 = vsyncpa [#allocation3 + $0x1], 0 }
   0x2   :  { %10 = vsyncpa [#allocation6], 0 }
   0x3   :  { %11 = vsyncpa [#allocation4], 0 }
   0x4   :  { %13 = vsyncpa [#allocation4 + $0x1], 0  ;;  %s3668_s9 = smov 0   ;;  %s3670_s10 = smov 0  }
   0x5   :  { %s3672_s11 = smov 0   ;;  %s3674_s12 = smov 0  }
   0x6 LB: > { %s3689_s13 = sadd.s32 4294967295, %s3644_s12   ;;  %s2422_s14 = sadd.s32 4294967294, %s3644_s12   ;;  %s3644_s12 = sphi %s3674_s12, %s4051_s12   ;;  %s3640_s11 = sphi %s3672_s11, %s4050_s11   ;;  %s3636_s10 = sphi %s3670_s10, %s4049_s10   ;;  %s3632_s9 = sphi %s3668_s9, %s4048_s9  }
   0x7   : > { %p39_p0 = scmp.ne.s32.totalorder %s3636_s10, %s3632_s9  ;;  %p4032_p1 = scmp.eq.s32.totalorder %s3689_s13, 0 }
   0x8   : > { %p90_p3 = scmp.eq.s32.totalorder %s2422_s14, 1  ;;  %p2423_p5 = scmp.ge.s32.totalorder %s3644_s12, 1 }
   0x9   : > { %p3698_p4 = por %p4032_p1, %p39_p0  ;;  %p97_p7 = scmp.lt.s32.totalorder %s3644_s12, 3 }
   0xa   : > { %p3703_p6 = por %p90_p3, %p39_p0  ;;  %s3646_s18 = smov [#allocation5]  }
   0xb   : > { %s4035_s15 = scalar_select %p3698_p4, 1, 0 }
   0xc   : > { %s4036_s16 = scalar_select %p3703_p6, 1, 0 }
   0xd   : > { %p3708_p8 = pnand %p2423_p5, %p97_p7  ;;  %s109_s19 = sshll.u32 %s3646_s18, 4  ;;  %s3712_s19 = int_to_ptr.vmem [resolvable:$true] %s109_s19 }
   0xe   : > { %s3724_s21 = sadd.s32 1, %s3644_s12   ;;  %s26_s22 = sadd.s32 1, %s3640_s11 }
   0xf   : > { %s4037_s17 = scalar_select %p3708_p8, 1, 0 }
  0x10   : > { %p3391_p9 = pneg %p3708_p8  ;;  %s23_s23 = ssub.s32 %s3644_s12, %s3724_s21 }
  0x11   : > { %s3516_s26 = scalar_lea.hbm %s4030_s1, 1024 }
  0x12   : > { %p3719_p11 = pnand %p3391_p9, %p4032_p1  ;;  %p3517_p12 = scmp.ne.s32.totalorder %s4030_s1, %s3516_s26 }
  0x13   : > { %p3523_p5 = scmp.lt.u32.totalorder %s3516_s26, %s4030_s1 }
  0x14   : > { %p3518_p13 = pneg %p3719_p11 }
  0x16   : > { %p3519_p0 = pnand %p3518_p13, %p3517_p12 }
  0x18   : > { %p3520_p3 = pneg %p3519_p0 }
  0x1a   : > { %p3525_p7 = pnand %p3523_p5, %p3520_p3 }
  0x1c   : > { %3528 = shalt.err (!%p3525_p7)
}
  0x1d   : > { %s3529_s3 = scalar_lea.vmem %s3712_s19, 1024  ;;  %p3537_p2 = scmp.lt.s32.totalorder %s3712_s19, %s3712_s19 }
  0x1e   : > { %p3530_p9 = scmp.ne.s32.totalorder %s3712_s19, %s3529_s3  ;;  %p3538_p6 = scmp.lt.s32.totalorder %s3529_s3, %s3529_s3 }
  0x20   : > { %p3532_p10 = pnand %p3530_p9, %p3518_p13  ;;  %p3539_p4 = por %p3538_p6, %p3537_p2 }
  0x22   : > { %p3533_p1 = pneg %p3532_p10 }
  0x24   : > { %p3540_p8 = pnand %p3539_p4, %p3533_p1 }
  0x26   : > { %3543 = shalt.err (!%p3540_p8)
}
  0x27   : > { %s3647_s4 = smov 64   ;;  %s3648_s5 = smov 4  }
  0x28   : > { %3394 = dma.hbm_to_vmem [thread:$0]  (!%p3719_p11), %s4030_s1, 1024, %s3712_s19, [#allocation6], %s3647_s4, %s3647_s4, %s3648_s5  }
  0x29   : > { %p24_p1 = scmp.eq.s32.totalorder %s23_s23, 0  ;;  %p33_p2 = scmp.ne.s32.totalorder %s3640_s11, %s3636_s10 }
  0x2a   : > { %p34_p4 = scmp.eq.s32.totalorder %s3644_s12, 0  ;;  %p3404_p6 = scmp.lt.s32.totalorder %s3644_s12, 2 }
  0x2b   : > { %s3758_s8 = scalar_select %p24_p1, %s3640_s11, %s26_s22  }
  0x2c   : > { %p35_p8 = por %p34_p4, %p33_p2  ;;  %p4039_p10 = scmp.eq.s32.totalorder %s3689_s13, 1 }
  0x2d   : > { %s123_s18 = sand.u32 1, %s3640_s11   ;;  %s2638_s20 = sshll.u32 %s3644_s12, 13 }
  0x2e   : > { %p3762_p12 = por %p4039_p10, %p33_p2  ;;  %s2426_s24 = sshll.u32 %s123_s18, 9 }
  0x2f   : > { %s3771_s27 = scalar_lea.hbm %s4029_s0, %s2638_s20  ;;  %s127_s19 = scalar_lea.vmem [#allocation2], %s2426_s24 }
  0x30   : > { %s134_s22 = sshll.u32 %s127_s19, 4  ;;  %p3773_p11 = pnand %p3404_p6, %p35_p8  ;;  %s3777_s22 = int_to_ptr.vmem [resolvable:$true] %s134_s22 }
  0x31   : > { %s3779_s28 = scalar_lea.sflag [#allocation3], %s123_s18  ;;  %s3544_s29 = scalar_lea.hbm %s3771_s27, 8192 }
  0x32   : > { %p3545_p13 = scmp.ne.s32.totalorder %s3771_s27, %s3544_s29  ;;  %p3546_p0 = pneg %p3773_p11 }
  0x33   : > { %s3549_s6 = scalar_lea.hbm %s4029_s0, 16384  ;;  %p3550_p7 = scmp.lt.u32.totalorder %s3771_s27, %s4029_s0 }
  0x34   : > { %p3547_p3 = pnand %p3546_p0, %p3545_p13  ;;  %p3551_p9 = scmp.lt.u32.totalorder %s3549_s6, %s3544_s29 }
  0x35   : > { %p3553_p2 = scmp.lt.u32.totalorder %s3544_s29, %s3771_s27 }
  0x36   : > { %p3548_p5 = pneg %p3547_p3  ;;  %p3552_p1 = por %p3551_p9, %p3550_p7 }
  0x38   : > { %p3554_p4 = por %p3553_p2, %p3552_p1 }
  0x3a   : > { %p3555_p6 = pnand %p3554_p4, %p3548_p5 }
  0x3c   : > { %3558 = shalt.err (!%p3555_p6)
}
  0x3d   : > { %s3559_s18 = scalar_lea.vmem %s3777_s22, 8192  ;;  %s3649_s24 = smov [#allocation2]  }
  0x3e   : > { %p3560_p8 = scmp.ne.s32.totalorder %s3777_s22, %s3559_s18  ;;  %s3564_s25 = sshll.u32 %s3649_s24, 4  ;;  %s3565_s25 = int_to_ptr.vmem [resolvable:$false] %s3564_s25 }
  0x3f   : > { %s3566_s26 = scalar_lea.vmem %s3565_s25, 16384  ;;  %p3567_p3 = scmp.lt.s32.totalorder %s3777_s22, %s3565_s25 }
  0x40   : > { %p3562_p10 = pnand %p3560_p8, %p3546_p0  ;;  %p3568_p7 = scmp.lt.s32.totalorder %s3566_s26, %s3559_s18 }
  0x42   : > { %p3563_p13 = pneg %p3562_p10  ;;  %p3569_p9 = por %p3568_p7, %p3567_p3 }
  0x44   : > { %p3570_p1 = pnand %p3569_p9, %p3563_p13 }
  0x46   : > { %3573 = shalt.err (!%p3570_p1)
}
  0x47   : > { %3398 = dma.hbm_to_vmem [thread:$0]  (!%p3773_p11), %s3771_s27, 8192, %s3777_s22, %s3779_s28, %s3647_s4, %s3647_s4, %s3648_s5  }
  0x48   : > { %p4042_p0 = scmp.ne.s32.totalorder %s4037_s17, 0 }
  0x49   : > { %s3813_s19 = sand.u32 (!%p4042_p0), 1, %s3636_s10   ;;  %p4043_p5 = scmp.ne.s32.totalorder (!%p4042_p0), %s4035_s15, 0 }
  0x4a   : > { %146 = sbr.rel (%p4042_p0) target bundleno = 475 (0x1db), region = 28  ;;  %s2430_s29 = sshll.u32 (!%p4042_p0), %s3813_s19, 9 }
  0x4b   : > { %s149_s30 = scalar_lea.sflag (!%p4042_p0), [#allocation3], %s3813_s19  ;;  %s3819_s23 = scalar_lea.vmem (!%p4042_p0), [#allocation2], %s2430_s29 }
  0x51   : > { %3619 = dma.done.wait (%p4043_p5), %s149_s30, 8192  }
  0x52   : > { %3621 = vsyncadd (%p4043_p5), %s149_s30, 4294959104  ;;  %p4044_p11 = scmp.eq.s32.totalorder %s3689_s13, 0 }
  0x54   : > { %3623 = dma.done.wait (%p4044_p11), [#allocation6], 1024   ;;  %p4045_p2 = pmov %p4044_p11 }
  0x55   : > { %v3444_v0 = vld [vmem:[#allocation5] sm:$0xff]   ;;  %v3445_v1 = vld [vmem:[#allocation5 + $0x8] sm:$0xff]   ;;  %v3446_v2 = vld [vmem:[#allocation5 + $0x10] sm:$0xff]   ;;  %s3895_s15 = scalar_lea.vmem [#allocation7], %s2430_s29  ;;  %s2767_s17 = sshll.u32 %s3689_s13, 13 }
  0x56   : > { %3625 = vsyncadd (%p4045_p2), [#allocation6], 4294966272  ;;  %3223 = vmatprep.subr.bf16.mxu0 %v3444_v0  ;;  %3367 = vmatprep.subr.bf16.mxu1 %v3444_v0  ;;  %v3447_v3 = vld [vmem:[#allocation5 + $0x18] sm:$0xff]   ;;  %v3452_v4 = vld [vmem:[%s3819_s23] sm:$0xff]   ;;  %s2339_s4 = sshll.u32 %s3895_s15, 4  ;;  %s3979_s22 = scalar_lea.hbm %s4031_s2, %s2767_s17  ;;  %s3981_s4 = int_to_ptr.vmem [resolvable:$true] %s2339_s4 }
  0x57   : > { %3224 = vmatpush3.bf16.msra.mxu0 %v3444_v0  ;;  %3375 = vmatpush3.bf16.msra.mxu1 %v3444_v0  ;;  %v3453_v5 = vld [vmem:[%s3819_s23 + $0x100] sm:$0xff]   ;;  %v3449_v7 = vld [vmem:[#allocation5 + $0x28] sm:$0xff]   ;;  %v3450_v8 = vld [vmem:[#allocation5 + $0x30] sm:$0xff]   ;;  %s2326_s28 = scalar_lea.sflag [#allocation4], %s3813_s19  ;;  %s3574_s3 = scalar_lea.vmem %s3981_s4, 8192 }
  0x58   : > { %3225 = vmatprep.subr.bf16.mxu0 %v3445_v1  ;;  %3368 = vmatprep.subr.bf16.mxu1 %v3445_v1  ;;  %v3448_v6 = vld [vmem:[#allocation5 + $0x20] sm:$0xff]   ;;  %v3451_v9 = vld [vmem:[#allocation5 + $0x38] sm:$0xff]   ;;  %v3454_v10 = vld [vmem:[%s3819_s23 + $0x8] sm:$0xff]   ;;  %p3575_p4 = scmp.ne.s32.totalorder %s3981_s4, %s3574_s3  ;;  %s3650_s13 = smov [#allocation7]  }
  0x59   : > { %3239 = vmatprep.mubr.bf16.mxu0 %v3452_v4  ;;  %3303 = vmatprep.mubr.bf16.mxu1 %v3453_v5  ;;  %v3455_v11 = vld [vmem:[%s3819_s23 + $0x108] sm:$0xff]   ;;  %v3456_v12 = vld [vmem:[%s3819_s23 + $0x10] sm:$0xff]   ;;  %v3458_v14 = vld [vmem:[%s3819_s23 + $0x18] sm:$0xff]   ;;  %s3578_s6 = sshll.u32 %s3650_s13, 4  ;;  %s3579_s6 = int_to_ptr.vmem [resolvable:$false] %s3578_s6 }
  0x5a   : > { %v3457_v13 = vld [vmem:[%s3819_s23 + $0x110] sm:$0xff]   ;;  %v3459_v15 = vld [vmem:[%s3819_s23 + $0x118] sm:$0xff]   ;;  %v3460_v16 = vld [vmem:[%s3819_s23 + $0x20] sm:$0xff]   ;;  %p3576_p6 = pnand %p3575_p4, %p3762_p12  ;;  %s3580_s7 = scalar_lea.vmem %s3579_s6, 16384 }
  0x5b   : > { %3226 = vmatpush3.bf16.msra.mxu0 %v3445_v1  ;;  %3376 = vmatpush3.bf16.msra.mxu1 %v3445_v1  ;;  %v3461_v17 = vld [vmem:[%s3819_s23 + $0x120] sm:$0xff]   ;;  %v3462_v18 = vld [vmem:[%s3819_s23 + $0x28] sm:$0xff]   ;;  %v3464_v20 = vld [vmem:[%s3819_s23 + $0x30] sm:$0xff]   ;;  %p3581_p10 = scmp.lt.s32.totalorder %s3981_s4, %s3579_s6  ;;  %p3582_p13 = scmp.lt.s32.totalorder %s3580_s7, %s3574_s3 }
  0x5c   : > { %3227 = vmatprep.subr.bf16.mxu0 %v3446_v2  ;;  %3369 = vmatprep.subr.bf16.mxu1 %v3446_v2  ;;  %v3463_v19 = vld [vmem:[%s3819_s23 + $0x128] sm:$0xff]   ;;  %v3465_v21 = vld [vmem:[%s3819_s23 + $0x130] sm:$0xff]   ;;  %v3466_v22 = vld [vmem:[%s3819_s23 + $0x38] sm:$0xff]   ;;  %p3577_p8 = pneg %p3576_p6 }
  0x5d   : > { %v3467_v23 = vld [vmem:[%s3819_s23 + $0x138] sm:$0xff]   ;;  %v3468_v24 = vld [vmem:[%s3819_s23 + $0x40] sm:$0xff]   ;;  %v3470_v26 = vld [vmem:[%s3819_s23 + $0x48] sm:$0xff]   ;;  %p3583_p3 = por %p3582_p13, %p3581_p10 }
  0x5e   : > { %v3469_v25 = vld [vmem:[%s3819_s23 + $0x140] sm:$0xff]   ;;  %v3471_v27 = vld [vmem:[%s3819_s23 + $0x148] sm:$0xff]   ;;  %v3472_v28 = vld [vmem:[%s3819_s23 + $0x50] sm:$0xff]  }
  0x5f   : > { %3228 = vmatpush3.bf16.msra.mxu0 %v3446_v2  ;;  %3377 = vmatpush3.bf16.msra.mxu1 %v3446_v2  ;;  %v3473_v29 = vld [vmem:[%s3819_s23 + $0x150] sm:$0xff]   ;;  %v3474_v30 = vld [vmem:[%s3819_s23 + $0x58] sm:$0xff]   ;;  %v3476_v32 = vld [vmem:[%s3819_s23 + $0x60] sm:$0xff]   ;;  %p3584_p7 = pnand %p3583_p3, %p3577_p8 }
  0x60   : > { %3229 = vmatprep.subr.bf16.mxu0 %v3447_v3  ;;  %3370 = vmatprep.subr.bf16.mxu1 %v3447_v3  ;;  %v3475_v31 = vld [vmem:[%s3819_s23 + $0x158] sm:$0xff]   ;;  %v3477_v33 = vld [vmem:[%s3819_s23 + $0x160] sm:$0xff]   ;;  %v3478_v34 = vld [vmem:[%s3819_s23 + $0x68] sm:$0xff]  }
  0x61   : > { %v3479_v35 = vld [vmem:[%s3819_s23 + $0x168] sm:$0xff]   ;;  %v3480_v36 = vld [vmem:[%s3819_s23 + $0x70] sm:$0xff]   ;;  %v3482_v38 = vld [vmem:[%s3819_s23 + $0x78] sm:$0xff]  }
  0x62   : > { %v3481_v37 = vld [vmem:[%s3819_s23 + $0x170] sm:$0xff]   ;;  %v3483_v39 = vld [vmem:[%s3819_s23 + $0x178] sm:$0xff]   ;;  %v3484_v40 = vld [vmem:[%s3819_s23 + $0x80] sm:$0xff]  }
  0x63   : > { %3230 = vmatpush3.bf16.msra.mxu0 %v3447_v3  ;;  %3378 = vmatpush3.bf16.msra.mxu1 %v3447_v3  ;;  %v3485_v41 = vld [vmem:[%s3819_s23 + $0x180] sm:$0xff]   ;;  %v3486_v42 = vld [vmem:[%s3819_s23 + $0x88] sm:$0xff]   ;;  %v3488_v44 = vld [vmem:[%s3819_s23 + $0x90] sm:$0xff]  }
  0x64   : > { %3231 = vmatprep.subr.bf16.mxu0 %v3448_v6  ;;  %3371 = vmatprep.subr.bf16.mxu1 %v3448_v6  ;;  %v3487_v43 = vld [vmem:[%s3819_s23 + $0x188] sm:$0xff]   ;;  %v3489_v45 = vld [vmem:[%s3819_s23 + $0x190] sm:$0xff]   ;;  %v3490_v46 = vld [vmem:[%s3819_s23 + $0x98] sm:$0xff]  }
  0x65   : > { %v3491_v47 = vld [vmem:[%s3819_s23 + $0x198] sm:$0xff]   ;;  %v3492_v48 = vld [vmem:[%s3819_s23 + $0xa0] sm:$0xff]   ;;  %v3494_v50 = vld [vmem:[%s3819_s23 + $0xa8] sm:$0xff]  }
  0x66   : > { %v3493_v49 = vld [vmem:[%s3819_s23 + $0x1a0] sm:$0xff]   ;;  %v3495_v51 = vld [vmem:[%s3819_s23 + $0x1a8] sm:$0xff]   ;;  %v3496_v52 = vld [vmem:[%s3819_s23 + $0xb0] sm:$0xff]  }
  0x67   : > { %3232 = vmatpush3.bf16.msra.mxu0 %v3448_v6  ;;  %3379 = vmatpush3.bf16.msra.mxu1 %v3448_v6  ;;  %v3497_v53 = vld [vmem:[%s3819_s23 + $0x1b0] sm:$0xff]   ;;  %v3498_v54 = vld [vmem:[%s3819_s23 + $0xb8] sm:$0xff]   ;;  %v3500_v56 = vld [vmem:[%s3819_s23 + $0xc0] sm:$0xff]  }
  0x68   : > { %3233 = vmatprep.subr.bf16.mxu0 %v3449_v7  ;;  %3372 = vmatprep.subr.bf16.mxu1 %v3449_v7  ;;  %v3499_v55 = vld [vmem:[%s3819_s23 + $0x1b8] sm:$0xff]   ;;  %v3501_v57 = vld [vmem:[%s3819_s23 + $0x1c0] sm:$0xff]   ;;  %v3502_v58 = vld [vmem:[%s3819_s23 + $0xc8] sm:$0xff]  }
  0x69   : > { %v3503_v59 = vld [vmem:[%s3819_s23 + $0x1c8] sm:$0xff]   ;;  %v3504_v60 = vld [vmem:[%s3819_s23 + $0xd0] sm:$0xff]   ;;  %v3506_v62 = vld [vmem:[%s3819_s23 + $0xd8] sm:$0xff]  }
  0x6a   : > { %v3505_v61 = vld [vmem:[%s3819_s23 + $0x1d0] sm:$0xff]   ;;  %v3507_v63 = vld [vmem:[%s3819_s23 + $0x1d8] sm:$0xff]   ;;  %v3508_v0 = vld [vmem:[%s3819_s23 + $0xe0] sm:$0xff]  }
  0x6b   : > { %3234 = vmatpush3.bf16.msra.mxu0 %v3449_v7  ;;  %3380 = vmatpush3.bf16.msra.mxu1 %v3449_v7  ;;  %v3509_v1 = vld [vmem:[%s3819_s23 + $0x1e0] sm:$0xff]   ;;  %v3510_v2 = vld [vmem:[%s3819_s23 + $0xe8] sm:$0xff]   ;;  %v3512_v4 = vld [vmem:[%s3819_s23 + $0xf0] sm:$0xff]  }
  0x6c   : > { %3235 = vmatprep.subr.bf16.mxu0 %v3450_v8  ;;  %3373 = vmatprep.subr.bf16.mxu1 %v3450_v8  ;;  %v3511_v3 = vld [vmem:[%s3819_s23 + $0x1e8] sm:$0xff]   ;;  %v3513_v5 = vld [vmem:[%s3819_s23 + $0x1f0] sm:$0xff]   ;;  %v3514_v6 = vld [vmem:[%s3819_s23 + $0xf8] sm:$0xff]  }
  0x6d   : > { %v3515_v7 = vld [vmem:[%s3819_s23 + $0x1f8] sm:$0xff]  }
  0x6f   : > { %3236 = vmatpush3.bf16.msra.mxu0 %v3450_v8  ;;  %3381 = vmatpush3.bf16.msra.mxu1 %v3450_v8 }
  0x70   : > { %3237 = vmatprep.subr.bf16.mxu0 %v3451_v9  ;;  %3374 = vmatprep.subr.bf16.mxu1 %v3451_v9 }
  0x73   : > { %3238 = vmatpush3.bf16.msra.mxu0 %v3451_v9  ;;  %3382 = vmatpush3.bf16.msra.mxu1 %v3451_v9 }
  0x76   : > { %3240 = vmatmul.mubr.bf16.vlgmr.msra.gmra.mrb[0].mxu0 %v3454_v10  ;;  %3304 = vmatmul.mubr.bf16.vlgmr.msra.gmra.mrb[0].mxu1 %v3455_v11 }
  0x77   : > { %3243 = vmatprep.mubr.bf16.mxu0 %v3456_v12  ;;  %3307 = vmatprep.mubr.bf16.mxu1 %v3457_v13 }
  0x7e   : > { %3244 = vmatmul.mubr.bf16.gmra.mrb[4].mxu0 %v3458_v14  ;;  %3308 = vmatmul.mubr.bf16.gmra.mrb[4].mxu1 %v3459_v15 }
  0x7f   : > { %3247 = vmatprep.mubr.bf16.mxu0 %v3460_v16  ;;  %3311 = vmatprep.mubr.bf16.mxu1 %v3461_v17 }
  0x86   : > { %3248 = vmatmul.mubr.bf16.gmra.mrb[8].mxu0 %v3462_v18  ;;  %3312 = vmatmul.mubr.bf16.gmra.mrb[8].mxu1 %v3463_v19 }
  0x87   : > { %3251 = vmatprep.mubr.bf16.mxu0 %v3464_v20  ;;  %3315 = vmatprep.mubr.bf16.mxu1 %v3465_v21 }
  0x8e   : > { %3252 = vmatmul.mubr.bf16.gmra.mrb[12].mxu0 %v3466_v22  ;;  %3316 = vmatmul.mubr.bf16.gmra.mrb[12].mxu1 %v3467_v23 }
  0x8f   : > { %3255 = vmatprep.mubr.bf16.mxu0 %v3468_v24  ;;  %3319 = vmatprep.mubr.bf16.mxu1 %v3469_v25 }
  0x96   : > { %3256 = vmatmul.mubr.bf16.gmra.mrb[16].mxu0 %v3470_v26  ;;  %3320 = vmatmul.mubr.bf16.gmra.mrb[16].mxu1 %v3471_v27 }
  0x97   : > { %3259 = vmatprep.mubr.bf16.mxu0 %v3472_v28  ;;  %3323 = vmatprep.mubr.bf16.mxu1 %v3473_v29 }
  0x9e   : > { %3260 = vmatmul.mubr.bf16.gmra.mrb[20].mxu0 %v3474_v30  ;;  %3324 = vmatmul.mubr.bf16.gmra.mrb[20].mxu1 %v3475_v31 }
  0x9f   : > { %3263 = vmatprep.mubr.bf16.mxu0 %v3476_v32  ;;  %3327 = vmatprep.mubr.bf16.mxu1 %v3477_v33 }
  0xa6   : > { %3264 = vmatmul.mubr.bf16.gmra.mrb[24].mxu0 %v3478_v34  ;;  %3328 = vmatmul.mubr.bf16.gmra.mrb[24].mxu1 %v3479_v35 }
  0xa7   : > { %3267 = vmatprep.mubr.bf16.mxu0 %v3480_v36  ;;  %3331 = vmatprep.mubr.bf16.mxu1 %v3481_v37 }
  0xae   : > { %3268 = vmatmul.mubr.bf16.gmra.mrb[28].mxu0 %v3482_v38  ;;  %3332 = vmatmul.mubr.bf16.gmra.mrb[28].mxu1 %v3483_v39 }
  0xaf   : > { %3271 = vmatprep.mubr.bf16.mxu0 %v3484_v40  ;;  %3335 = vmatprep.mubr.bf16.mxu1 %v3485_v41 }
  0xb6   : > { %3272 = vmatmul.mubr.bf16.gmra.mrb[32].mxu0 %v3486_v42  ;;  %3336 = vmatmul.mubr.bf16.gmra.mrb[32].mxu1 %v3487_v43 }
  0xb7   : > { %3275 = vmatprep.mubr.bf16.mxu0 %v3488_v44  ;;  %3339 = vmatprep.mubr.bf16.mxu1 %v3489_v45 }
  0xbe   : > { %3276 = vmatmul.mubr.bf16.gmra.mrb[36].mxu0 %v3490_v46  ;;  %3340 = vmatmul.mubr.bf16.gmra.mrb[36].mxu1 %v3491_v47 }
  0xbf   : > { %3279 = vmatprep.mubr.bf16.mxu0 %v3492_v48  ;;  %3343 = vmatprep.mubr.bf16.mxu1 %v3493_v49 }
  0xc6   : > { %3280 = vmatmul.mubr.bf16.gmra.mrb[40].mxu0 %v3494_v50  ;;  %3344 = vmatmul.mubr.bf16.gmra.mrb[40].mxu1 %v3495_v51 }
  0xc7   : > { %3283 = vmatprep.mubr.bf16.mxu0 %v3496_v52  ;;  %3347 = vmatprep.mubr.bf16.mxu1 %v3497_v53 }
  0xce   : > { %3284 = vmatmul.mubr.bf16.gmra.mrb[44].mxu0 %v3498_v54  ;;  %3348 = vmatmul.mubr.bf16.gmra.mrb[44].mxu1 %v3499_v55 }
  0xcf   : > { %3287 = vmatprep.mubr.bf16.mxu0 %v3500_v56  ;;  %3351 = vmatprep.mubr.bf16.mxu1 %v3501_v57 }
  0xd6   : > { %3288 = vmatmul.mubr.bf16.gmra.mrb[48].mxu0 %v3502_v58  ;;  %3352 = vmatmul.mubr.bf16.gmra.mrb[48].mxu1 %v3503_v59 }
  0xd7   : > { %3291 = vmatprep.mubr.bf16.mxu0 %v3504_v60  ;;  %3355 = vmatprep.mubr.bf16.mxu1 %v3505_v61 }
  0xde   : > { %3292 = vmatmul.mubr.bf16.gmra.mrb[52].mxu0 %v3506_v62  ;;  %3356 = vmatmul.mubr.bf16.gmra.mrb[52].mxu1 %v3507_v63 }
  0xdf   : > { %3295 = vmatprep.mubr.bf16.mxu0 %v3508_v0  ;;  %3359 = vmatprep.mubr.bf16.mxu1 %v3509_v1 }
  0xe6   : > { %3296 = vmatmul.mubr.bf16.gmra.mrb[56].mxu0 %v3510_v2  ;;  %3360 = vmatmul.mubr.bf16.gmra.mrb[56].mxu1 %v3511_v3 }
  0xe7   : > { %3299 = vmatprep.mubr.bf16.mxu0 %v3512_v4  ;;  %3363 = vmatprep.mubr.bf16.mxu1 %v3513_v5 }
  0xee   : > { %3300 = vmatmul.mubr.bf16.gmra.mrb[60].mxu0 %v3514_v6  ;;  %3364 = vmatmul.mubr.bf16.gmra.mrb[60].mxu1 %v3515_v7 }
 0x149   : > { %v3241_v8 = vpop.f32.mrb[0].mxu0  ;;  %v3305_v9 = vpop.f32.mrb[0].mxu1 }
 0x14a   : > { %vm1303_vm0 = vcmp.gt.f32.partialorder %v3241_v8, 0.0  ;;  %v1431_v10 = vmul.f32 0.2, %v3241_v8  ;;  %v1495_v11 = vmul.f32 0.2, %v3305_v9  ;;  %vm1367_vm1 = vcmp.gt.f32.partialorder %v3305_v9, 0.0 }
 0x14b   : > { %v790_v12 = vpop.f32.mrb[1].mxu0  ;;  %v1046_v13 = vpop.f32.mrb[1].mxu1 }
 0x14c   : > { %v1429_v14 = vmul.f32 0.2, %v790_v12  ;;  %v3242_v15 = vpop.f32.mrb[2].mxu0  ;;  %v3306_v16 = vpop.f32.mrb[2].mxu1  ;;  %v1559_v17 = vsel %vm1303_vm0, %v3241_v8, %v1431_v10  ;;  %v1493_v18 = vmul.f32 0.2, %v1046_v13  ;;  %v1623_v20 = vsel %vm1367_vm1, %v3305_v9, %v1495_v11 }
 0x14d   : > { %vm1304_vm2 = vcmp.gt.f32.partialorder %v3242_v15, 0.0  ;;  %v1432_v19 = vmul.f32 0.2, %v3242_v15  ;;  %vm1301_vm3 = vcmp.gt.f32.partialorder %v790_v12, 0.0  ;;  %vm1368_vm4 = vcmp.gt.f32.partialorder %v3306_v16, 0.0  ;;  %v793_v22 = vpop.f32.mrb[3].mxu0 }
 0x14e   : > { %v1496_v21 = vmul.f32 0.2, %v3306_v16  ;;  %v1049_v23 = vpop.f32.mrb[3].mxu1  ;;  %vm1365_vm5 = vcmp.gt.f32.partialorder %v1046_v13, 0.0  ;;  %vm1302_vm6 = vcmp.gt.f32.partialorder %v793_v22, 0.0  ;;  %v1557_v29 = vsel %vm1301_vm3, %v790_v12, %v1429_v14 }
 0x14f   : > { %v1560_v24 = vsel %vm1304_vm2, %v3242_v15, %v1432_v19  ;;  %v1430_v25 = vmul.f32 0.2, %v793_v22  ;;  %vm1366_vm7 = vcmp.gt.f32.partialorder %v1049_v23, 0.0  ;;  %v1494_v28 = vmul.f32 0.2, %v1049_v23 }
 0x150   : > { %v2776_v26 = vpack.c.bf16 %v1560_v24, %v1559_v17  ;;  %v1624_v27 = vsel %vm1368_vm4, %v3306_v16, %v1496_v21  ;;  %v1621_v34 = vsel %vm1365_vm5, %v1046_v13, %v1493_v18 }
 0x151   : > { %v2936_v30 = vpack.c.bf16 %v1624_v27, %v1623_v20  ;;  %v1558_v31 = vsel %vm1302_vm6, %v793_v22, %v1430_v25  ;;  %v3245_v32 = vpop.f32.mrb[4].mxu0  ;;  %v3309_v33 = vpop.f32.mrb[4].mxu1  ;;  %v1622_v36 = vsel %vm1366_vm7, %v1049_v23, %v1494_v28 }
 0x152   : > { %3088 = vst [vmem:[%s3895_s15 + $0x8] sm:$0xff] %v2776_v26   ;;  %v2771_v35 = vpack.c.bf16 %v1558_v31, %v1557_v29  ;;  %v1435_v37 = vmul.f32 0.2, %v3245_v32  ;;  %v806_v38 = vpop.f32.mrb[5].mxu0  ;;  %v1062_v39 = vpop.f32.mrb[5].mxu1  ;;  %v2931_v40 = vpack.c.bf16 %v1622_v36, %v1621_v34  ;;  %vm1307_vm8 = vcmp.gt.f32.partialorder %v3245_v32, 0.0 }
 0x153   : > { %3120 = vst [vmem:[%s3895_s15 + $0x108] sm:$0xff] %v2936_v30   ;;  %v1499_v41 = vmul.f32 0.2, %v3309_v33  ;;  %v3246_v42 = vpop.f32.mrb[6].mxu0  ;;  %v3310_v43 = vpop.f32.mrb[6].mxu1  ;;  %vm1371_vm9 = vcmp.gt.f32.partialorder %v3309_v33, 0.0 }
 0x154   : > { %2772 = vst [vmem:[%s3895_s15] sm:$0xff] %v2771_v35   ;;  %v1433_v44 = vmul.f32 0.2, %v806_v38  ;;  %v1497_v45 = vmul.f32 0.2, %v1062_v39  ;;  %v809_v46 = vpop.f32.mrb[7].mxu0  ;;  %3119 = vst [vmem:[%s3895_s15 + $0x100] sm:$0xff] %v2931_v40   ;;  %v1563_v49 = vsel %vm1307_vm8, %v3245_v32, %v1435_v37 }
 0x155   : > { %vm1305_vm10 = vcmp.gt.f32.partialorder %v806_v38, 0.0  ;;  %vm1308_vm11 = vcmp.gt.f32.partialorder %v3246_v42, 0.0  ;;  %v1436_v47 = vmul.f32 0.2, %v3246_v42  ;;  %vm1372_vm12 = vcmp.gt.f32.partialorder %v3310_v43, 0.0  ;;  %v1065_v48 = vpop.f32.mrb[7].mxu1 }
 0x156   : > { %vm1369_vm13 = vcmp.gt.f32.partialorder %v1062_v39, 0.0  ;;  %v1500_v50 = vmul.f32 0.2, %v3310_v43  ;;  %vm1306_vm14 = vcmp.gt.f32.partialorder %v809_v46, 0.0  ;;  %v1434_v52 = vmul.f32 0.2, %v809_v46 }
 0x157   : > { %v1564_v51 = vsel %vm1308_vm11, %v3246_v42, %v1436_v47  ;;  %vm1370_vm15 = vcmp.gt.f32.partialorder %v1065_v48, 0.0  ;;  %v1498_v53 = vmul.f32 0.2, %v1065_v48  ;;  %v1627_v54 = vsel %vm1371_vm9, %v3309_v33, %v1499_v41 }
 0x158   : > { %v1561_v55 = vsel %vm1305_vm10, %v806_v38, %v1433_v44  ;;  %v2786_v56 = vpack.c.bf16 %v1564_v51, %v1563_v49  ;;  %v1628_v57 = vsel %vm1372_vm12, %v3310_v43, %v1500_v50  ;;  %v1625_v58 = vsel %vm1369_vm13, %v1062_v39, %v1497_v45 }
 0x159   : > { %v2946_v59 = vpack.c.bf16 %v1628_v57, %v1627_v54  ;;  %v1562_v60 = vsel %vm1306_vm14, %v809_v46, %v1434_v52  ;;  %v1626_v61 = vsel %vm1370_vm15, %v1065_v48, %v1498_v53  ;;  %v3249_v62 = vpop.f32.mrb[8].mxu0  ;;  %v3313_v63 = vpop.f32.mrb[8].mxu1 }
 0x15a   : > { %3090 = vst [vmem:[%s3895_s15 + $0x18] sm:$0xff] %v2786_v56   ;;  %v2781_v0 = vpack.c.bf16 %v1562_v60, %v1561_v55  ;;  %v2941_v1 = vpack.c.bf16 %v1626_v61, %v1625_v58  ;;  %vm1311_vm0 = vcmp.gt.f32.partialorder %v3249_v62, 0.0  ;;  %v1439_v2 = vmul.f32 0.2, %v3249_v62  ;;  %v822_v3 = vpop.f32.mrb[9].mxu0  ;;  %v1078_v4 = vpop.f32.mrb[9].mxu1 }
 0x15b   : > { %3122 = vst [vmem:[%s3895_s15 + $0x118] sm:$0xff] %v2946_v59   ;;  %vm1375_vm1 = vcmp.gt.f32.partialorder %v3313_v63, 0.0  ;;  %v1503_v5 = vmul.f32 0.2, %v3313_v63  ;;  %v1437_v6 = vmul.f32 0.2, %v822_v3 }
 0x15c   : > { %3089 = vst [vmem:[%s3895_s15 + $0x10] sm:$0xff] %v2781_v0   ;;  %3121 = vst [vmem:[%s3895_s15 + $0x110] sm:$0xff] %v2941_v1   ;;  %v1501_v7 = vmul.f32 0.2, %v1078_v4  ;;  %v3250_v8 = vpop.f32.mrb[10].mxu0  ;;  %v3314_v9 = vpop.f32.mrb[10].mxu1  ;;  %v1567_v10 = vsel %vm1311_vm0, %v3249_v62, %v1439_v2 }
 0x15d   : > { %vm1309_vm2 = vcmp.gt.f32.partialorder %v822_v3, 0.0  ;;  %vm1312_vm3 = vcmp.gt.f32.partialorder %v3250_v8, 0.0  ;;  %v1440_v11 = vmul.f32 0.2, %v3250_v8  ;;  %v825_v12 = vpop.f32.mrb[11].mxu0  ;;  %v1081_v13 = vpop.f32.mrb[11].mxu1  ;;  %v1631_v18 = vsel %vm1375_vm1, %v3313_v63, %v1503_v5 }
 0x15e   : > { %vm1373_vm4 = vcmp.gt.f32.partialorder %v1078_v4, 0.0  ;;  %vm1376_vm5 = vcmp.gt.f32.partialorder %v3314_v9, 0.0  ;;  %v1504_v14 = vmul.f32 0.2, %v3314_v9  ;;  %vm1310_vm6 = vcmp.gt.f32.partialorder %v825_v12, 0.0 }
 0x15f   : > { %v1568_v15 = vsel %vm1312_vm3, %v3250_v8, %v1440_v11  ;;  %v1438_v16 = vmul.f32 0.2, %v825_v12  ;;  %vm1374_vm7 = vcmp.gt.f32.partialorder %v1081_v13, 0.0  ;;  %v1502_v17 = vmul.f32 0.2, %v1081_v13 }
 0x160   : > { %v1565_v19 = vsel %vm1309_vm2, %v822_v3, %v1437_v6  ;;  %v2796_v20 = vpack.c.bf16 %v1568_v15, %v1567_v10  ;;  %v1632_v21 = vsel %vm1376_vm5, %v3314_v9, %v1504_v14  ;;  %v1629_v22 = vsel %vm1373_vm4, %v1078_v4, %v1501_v7 }
 0x161   : > { %v2956_v23 = vpack.c.bf16 %v1632_v21, %v1631_v18  ;;  %v1566_v24 = vsel %vm1310_vm6, %v825_v12, %v1438_v16  ;;  %v1630_v25 = vsel %vm1374_vm7, %v1081_v13, %v1502_v17  ;;  %v3253_v26 = vpop.f32.mrb[12].mxu0  ;;  %v3317_v27 = vpop.f32.mrb[12].mxu1 }
 0x162   : > { %3092 = vst [vmem:[%s3895_s15 + $0x28] sm:$0xff] %v2796_v20   ;;  %v2791_v28 = vpack.c.bf16 %v1566_v24, %v1565_v19  ;;  %v2951_v29 = vpack.c.bf16 %v1630_v25, %v1629_v22  ;;  %vm1315_vm8 = vcmp.gt.f32.partialorder %v3253_v26, 0.0  ;;  %v1443_v30 = vmul.f32 0.2, %v3253_v26  ;;  %v838_v31 = vpop.f32.mrb[13].mxu0  ;;  %v1094_v32 = vpop.f32.mrb[13].mxu1 }
 0x163   : > { %3124 = vst [vmem:[%s3895_s15 + $0x128] sm:$0xff] %v2956_v23   ;;  %vm1379_vm9 = vcmp.gt.f32.partialorder %v3317_v27, 0.0  ;;  %v1507_v33 = vmul.f32 0.2, %v3317_v27  ;;  %v1441_v34 = vmul.f32 0.2, %v838_v31 }
 0x164   : > { %3091 = vst [vmem:[%s3895_s15 + $0x20] sm:$0xff] %v2791_v28   ;;  %3123 = vst [vmem:[%s3895_s15 + $0x120] sm:$0xff] %v2951_v29   ;;  %v1505_v35 = vmul.f32 0.2, %v1094_v32  ;;  %v3254_v36 = vpop.f32.mrb[14].mxu0  ;;  %v3318_v37 = vpop.f32.mrb[14].mxu1  ;;  %v1571_v38 = vsel %vm1315_vm8, %v3253_v26, %v1443_v30 }
 0x165   : > { %vm1313_vm10 = vcmp.gt.f32.partialorder %v838_v31, 0.0  ;;  %vm1316_vm11 = vcmp.gt.f32.partialorder %v3254_v36, 0.0  ;;  %v1444_v39 = vmul.f32 0.2, %v3254_v36  ;;  %v841_v40 = vpop.f32.mrb[15].mxu0  ;;  %v1097_v41 = vpop.f32.mrb[15].mxu1  ;;  %v1635_v46 = vsel %vm1379_vm9, %v3317_v27, %v1507_v33 }
 0x166   : > { %vm1377_vm12 = vcmp.gt.f32.partialorder %v1094_v32, 0.0  ;;  %vm1380_vm13 = vcmp.gt.f32.partialorder %v3318_v37, 0.0  ;;  %v1508_v42 = vmul.f32 0.2, %v3318_v37  ;;  %vm1314_vm14 = vcmp.gt.f32.partialorder %v841_v40, 0.0 }
 0x167   : > { %v1572_v43 = vsel %vm1316_vm11, %v3254_v36, %v1444_v39  ;;  %v1442_v44 = vmul.f32 0.2, %v841_v40  ;;  %vm1378_vm15 = vcmp.gt.f32.partialorder %v1097_v41, 0.0  ;;  %v1506_v45 = vmul.f32 0.2, %v1097_v41 }
 0x168   : > { %v1569_v47 = vsel %vm1313_vm10, %v838_v31, %v1441_v34  ;;  %v2806_v48 = vpack.c.bf16 %v1572_v43, %v1571_v38  ;;  %v1636_v49 = vsel %vm1380_vm13, %v3318_v37, %v1508_v42  ;;  %v1633_v50 = vsel %vm1377_vm12, %v1094_v32, %v1505_v35 }
 0x169   : > { %v2966_v51 = vpack.c.bf16 %v1636_v49, %v1635_v46  ;;  %v1570_v52 = vsel %vm1314_vm14, %v841_v40, %v1442_v44  ;;  %v1634_v53 = vsel %vm1378_vm15, %v1097_v41, %v1506_v45  ;;  %v3257_v54 = vpop.f32.mrb[16].mxu0  ;;  %v3321_v55 = vpop.f32.mrb[16].mxu1 }
 0x16a   : > { %3094 = vst [vmem:[%s3895_s15 + $0x38] sm:$0xff] %v2806_v48   ;;  %v2801_v56 = vpack.c.bf16 %v1570_v52, %v1569_v47  ;;  %v2961_v57 = vpack.c.bf16 %v1634_v53, %v1633_v50  ;;  %vm1319_vm0 = vcmp.gt.f32.partialorder %v3257_v54, 0.0  ;;  %v1447_v58 = vmul.f32 0.2, %v3257_v54  ;;  %v854_v59 = vpop.f32.mrb[17].mxu0  ;;  %v1110_v60 = vpop.f32.mrb[17].mxu1 }
 0x16b   : > { %3126 = vst [vmem:[%s3895_s15 + $0x138] sm:$0xff] %v2966_v51   ;;  %vm1383_vm1 = vcmp.gt.f32.partialorder %v3321_v55, 0.0  ;;  %v1511_v61 = vmul.f32 0.2, %v3321_v55  ;;  %v1445_v62 = vmul.f32 0.2, %v854_v59 }
 0x16c   : > { %3093 = vst [vmem:[%s3895_s15 + $0x30] sm:$0xff] %v2801_v56   ;;  %3125 = vst [vmem:[%s3895_s15 + $0x130] sm:$0xff] %v2961_v57   ;;  %v1509_v63 = vmul.f32 0.2, %v1110_v60  ;;  %v3258_v0 = vpop.f32.mrb[18].mxu0  ;;  %v3322_v1 = vpop.f32.mrb[18].mxu1  ;;  %v1575_v2 = vsel %vm1319_vm0, %v3257_v54, %v1447_v58 }
 0x16d   : > { %vm1317_vm2 = vcmp.gt.f32.partialorder %v854_v59, 0.0  ;;  %vm1320_vm3 = vcmp.gt.f32.partialorder %v3258_v0, 0.0  ;;  %v1448_v3 = vmul.f32 0.2, %v3258_v0  ;;  %v857_v4 = vpop.f32.mrb[19].mxu0  ;;  %v1113_v5 = vpop.f32.mrb[19].mxu1  ;;  %v1639_v10 = vsel %vm1383_vm1, %v3321_v55, %v1511_v61 }
 0x16e   : > { %vm1381_vm4 = vcmp.gt.f32.partialorder %v1110_v60, 0.0  ;;  %vm1384_vm5 = vcmp.gt.f32.partialorder %v3322_v1, 0.0  ;;  %v1512_v6 = vmul.f32 0.2, %v3322_v1  ;;  %vm1318_vm6 = vcmp.gt.f32.partialorder %v857_v4, 0.0 }
 0x16f   : > { %v1576_v7 = vsel %vm1320_vm3, %v3258_v0, %v1448_v3  ;;  %v1446_v8 = vmul.f32 0.2, %v857_v4  ;;  %vm1382_vm7 = vcmp.gt.f32.partialorder %v1113_v5, 0.0  ;;  %v1510_v9 = vmul.f32 0.2, %v1113_v5 }
 0x170   : > { %v1573_v11 = vsel %vm1317_vm2, %v854_v59, %v1445_v62  ;;  %v2816_v12 = vpack.c.bf16 %v1576_v7, %v1575_v2  ;;  %v1640_v13 = vsel %vm1384_vm5, %v3322_v1, %v1512_v6  ;;  %v1637_v14 = vsel %vm1381_vm4, %v1110_v60, %v1509_v63 }
 0x171   : > { %v2976_v15 = vpack.c.bf16 %v1640_v13, %v1639_v10  ;;  %v1574_v16 = vsel %vm1318_vm6, %v857_v4, %v1446_v8  ;;  %v1638_v17 = vsel %vm1382_vm7, %v1113_v5, %v1510_v9  ;;  %v3261_v18 = vpop.f32.mrb[20].mxu0  ;;  %v3325_v19 = vpop.f32.mrb[20].mxu1 }
 0x172   : > { %3096 = vst [vmem:[%s3895_s15 + $0x48] sm:$0xff] %v2816_v12   ;;  %v2811_v20 = vpack.c.bf16 %v1574_v16, %v1573_v11  ;;  %v2971_v21 = vpack.c.bf16 %v1638_v17, %v1637_v14  ;;  %vm1323_vm8 = vcmp.gt.f32.partialorder %v3261_v18, 0.0  ;;  %v1451_v22 = vmul.f32 0.2, %v3261_v18  ;;  %v870_v23 = vpop.f32.mrb[21].mxu0  ;;  %v1126_v24 = vpop.f32.mrb[21].mxu1 }
 0x173   : > { %3128 = vst [vmem:[%s3895_s15 + $0x148] sm:$0xff] %v2976_v15   ;;  %vm1387_vm9 = vcmp.gt.f32.partialorder %v3325_v19, 0.0  ;;  %v1515_v25 = vmul.f32 0.2, %v3325_v19  ;;  %v1449_v26 = vmul.f32 0.2, %v870_v23 }
 0x174   : > { %3095 = vst [vmem:[%s3895_s15 + $0x40] sm:$0xff] %v2811_v20   ;;  %3127 = vst [vmem:[%s3895_s15 + $0x140] sm:$0xff] %v2971_v21   ;;  %v1513_v27 = vmul.f32 0.2, %v1126_v24  ;;  %v3262_v28 = vpop.f32.mrb[22].mxu0  ;;  %v3326_v29 = vpop.f32.mrb[22].mxu1  ;;  %v1579_v30 = vsel %vm1323_vm8, %v3261_v18, %v1451_v22 }
 0x175   : > { %vm1321_vm10 = vcmp.gt.f32.partialorder %v870_v23, 0.0  ;;  %vm1324_vm11 = vcmp.gt.f32.partialorder %v3262_v28, 0.0  ;;  %v1452_v31 = vmul.f32 0.2, %v3262_v28  ;;  %v873_v32 = vpop.f32.mrb[23].mxu0  ;;  %v1129_v33 = vpop.f32.mrb[23].mxu1  ;;  %v1643_v38 = vsel %vm1387_vm9, %v3325_v19, %v1515_v25 }
 0x176   : > { %vm1385_vm12 = vcmp.gt.f32.partialorder %v1126_v24, 0.0  ;;  %vm1388_vm13 = vcmp.gt.f32.partialorder %v3326_v29, 0.0  ;;  %v1516_v34 = vmul.f32 0.2, %v3326_v29  ;;  %vm1322_vm14 = vcmp.gt.f32.partialorder %v873_v32, 0.0 }
 0x177   : > { %v1580_v35 = vsel %vm1324_vm11, %v3262_v28, %v1452_v31  ;;  %v1450_v36 = vmul.f32 0.2, %v873_v32  ;;  %vm1386_vm15 = vcmp.gt.f32.partialorder %v1129_v33, 0.0  ;;  %v1514_v37 = vmul.f32 0.2, %v1129_v33 }
 0x178   : > { %v1577_v39 = vsel %vm1321_vm10, %v870_v23, %v1449_v26  ;;  %v2826_v40 = vpack.c.bf16 %v1580_v35, %v1579_v30  ;;  %v1644_v41 = vsel %vm1388_vm13, %v3326_v29, %v1516_v34  ;;  %v1641_v42 = vsel %vm1385_vm12, %v1126_v24, %v1513_v27 }
 0x179   : > { %v2986_v43 = vpack.c.bf16 %v1644_v41, %v1643_v38  ;;  %v1578_v44 = vsel %vm1322_vm14, %v873_v32, %v1450_v36  ;;  %v1642_v45 = vsel %vm1386_vm15, %v1129_v33, %v1514_v37  ;;  %v3265_v46 = vpop.f32.mrb[24].mxu0  ;;  %v3329_v47 = vpop.f32.mrb[24].mxu1 }
 0x17a   : > { %3098 = vst [vmem:[%s3895_s15 + $0x58] sm:$0xff] %v2826_v40   ;;  %v2821_v48 = vpack.c.bf16 %v1578_v44, %v1577_v39  ;;  %v2981_v49 = vpack.c.bf16 %v1642_v45, %v1641_v42  ;;  %vm1327_vm0 = vcmp.gt.f32.partialorder %v3265_v46, 0.0  ;;  %v1455_v50 = vmul.f32 0.2, %v3265_v46  ;;  %v886_v51 = vpop.f32.mrb[25].mxu0  ;;  %v1142_v52 = vpop.f32.mrb[25].mxu1 }
 0x17b   : > { %3130 = vst [vmem:[%s3895_s15 + $0x158] sm:$0xff] %v2986_v43   ;;  %vm1391_vm1 = vcmp.gt.f32.partialorder %v3329_v47, 0.0  ;;  %v1519_v53 = vmul.f32 0.2, %v3329_v47  ;;  %v1453_v54 = vmul.f32 0.2, %v886_v51 }
 0x17c   : > { %3097 = vst [vmem:[%s3895_s15 + $0x50] sm:$0xff] %v2821_v48   ;;  %3129 = vst [vmem:[%s3895_s15 + $0x150] sm:$0xff] %v2981_v49   ;;  %v1517_v55 = vmul.f32 0.2, %v1142_v52  ;;  %v3266_v56 = vpop.f32.mrb[26].mxu0  ;;  %v3330_v57 = vpop.f32.mrb[26].mxu1  ;;  %v1583_v58 = vsel %vm1327_vm0, %v3265_v46, %v1455_v50 }
 0x17d   : > { %vm1325_vm2 = vcmp.gt.f32.partialorder %v886_v51, 0.0  ;;  %vm1328_vm3 = vcmp.gt.f32.partialorder %v3266_v56, 0.0  ;;  %v1456_v59 = vmul.f32 0.2, %v3266_v56  ;;  %v889_v60 = vpop.f32.mrb[27].mxu0  ;;  %v1145_v61 = vpop.f32.mrb[27].mxu1  ;;  %v1647_v2 = vsel %vm1391_vm1, %v3329_v47, %v1519_v53 }
 0x17e   : > { %vm1389_vm4 = vcmp.gt.f32.partialorder %v1142_v52, 0.0  ;;  %vm1392_vm5 = vcmp.gt.f32.partialorder %v3330_v57, 0.0  ;;  %v1520_v62 = vmul.f32 0.2, %v3330_v57  ;;  %vm1326_vm6 = vcmp.gt.f32.partialorder %v889_v60, 0.0 }
 0x17f   : > { %v1584_v63 = vsel %vm1328_vm3, %v3266_v56, %v1456_v59  ;;  %v1454_v0 = vmul.f32 0.2, %v889_v60  ;;  %vm1390_vm7 = vcmp.gt.f32.partialorder %v1145_v61, 0.0  ;;  %v1518_v1 = vmul.f32 0.2, %v1145_v61 }
 0x180   : > { %v1581_v3 = vsel %vm1325_vm2, %v886_v51, %v1453_v54  ;;  %v2836_v4 = vpack.c.bf16 %v1584_v63, %v1583_v58  ;;  %v1648_v5 = vsel %vm1392_vm5, %v3330_v57, %v1520_v62  ;;  %v1645_v6 = vsel %vm1389_vm4, %v1142_v52, %v1517_v55 }
 0x181   : > { %v2996_v7 = vpack.c.bf16 %v1648_v5, %v1647_v2  ;;  %v1582_v8 = vsel %vm1326_vm6, %v889_v60, %v1454_v0  ;;  %v1646_v9 = vsel %vm1390_vm7, %v1145_v61, %v1518_v1  ;;  %v3269_v10 = vpop.f32.mrb[28].mxu0  ;;  %v3333_v11 = vpop.f32.mrb[28].mxu1 }
 0x182   : > { %3100 = vst [vmem:[%s3895_s15 + $0x68] sm:$0xff] %v2836_v4   ;;  %v2831_v12 = vpack.c.bf16 %v1582_v8, %v1581_v3  ;;  %v2991_v13 = vpack.c.bf16 %v1646_v9, %v1645_v6  ;;  %vm1331_vm8 = vcmp.gt.f32.partialorder %v3269_v10, 0.0  ;;  %v1459_v14 = vmul.f32 0.2, %v3269_v10  ;;  %v902_v15 = vpop.f32.mrb[29].mxu0  ;;  %v1158_v16 = vpop.f32.mrb[29].mxu1 }
 0x183   : > { %3132 = vst [vmem:[%s3895_s15 + $0x168] sm:$0xff] %v2996_v7   ;;  %vm1395_vm9 = vcmp.gt.f32.partialorder %v3333_v11, 0.0  ;;  %v1523_v17 = vmul.f32 0.2, %v3333_v11  ;;  %v1457_v18 = vmul.f32 0.2, %v902_v15 }
 0x184   : > { %3099 = vst [vmem:[%s3895_s15 + $0x60] sm:$0xff] %v2831_v12   ;;  %3131 = vst [vmem:[%s3895_s15 + $0x160] sm:$0xff] %v2991_v13   ;;  %v1521_v19 = vmul.f32 0.2, %v1158_v16  ;;  %v3270_v20 = vpop.f32.mrb[30].mxu0  ;;  %v3334_v21 = vpop.f32.mrb[30].mxu1  ;;  %v1587_v22 = vsel %vm1331_vm8, %v3269_v10, %v1459_v14 }
 0x185   : > { %vm1329_vm10 = vcmp.gt.f32.partialorder %v902_v15, 0.0  ;;  %vm1332_vm11 = vcmp.gt.f32.partialorder %v3270_v20, 0.0  ;;  %v1460_v23 = vmul.f32 0.2, %v3270_v20  ;;  %v905_v24 = vpop.f32.mrb[31].mxu0  ;;  %v1161_v25 = vpop.f32.mrb[31].mxu1  ;;  %v1651_v30 = vsel %vm1395_vm9, %v3333_v11, %v1523_v17 }
 0x186   : > { %vm1393_vm12 = vcmp.gt.f32.partialorder %v1158_v16, 0.0  ;;  %vm1396_vm13 = vcmp.gt.f32.partialorder %v3334_v21, 0.0  ;;  %v1524_v26 = vmul.f32 0.2, %v3334_v21  ;;  %vm1330_vm14 = vcmp.gt.f32.partialorder %v905_v24, 0.0 }
 0x187   : > { %v1588_v27 = vsel %vm1332_vm11, %v3270_v20, %v1460_v23  ;;  %v1458_v28 = vmul.f32 0.2, %v905_v24  ;;  %vm1394_vm15 = vcmp.gt.f32.partialorder %v1161_v25, 0.0  ;;  %v1522_v29 = vmul.f32 0.2, %v1161_v25 }
 0x188   : > { %v1585_v31 = vsel %vm1329_vm10, %v902_v15, %v1457_v18  ;;  %v2846_v32 = vpack.c.bf16 %v1588_v27, %v1587_v22  ;;  %v1652_v33 = vsel %vm1396_vm13, %v3334_v21, %v1524_v26  ;;  %v1649_v34 = vsel %vm1393_vm12, %v1158_v16, %v1521_v19 }
 0x189   : > { %v3006_v35 = vpack.c.bf16 %v1652_v33, %v1651_v30  ;;  %v1586_v36 = vsel %vm1330_vm14, %v905_v24, %v1458_v28  ;;  %v1650_v37 = vsel %vm1394_vm15, %v1161_v25, %v1522_v29  ;;  %v3273_v38 = vpop.f32.mrb[32].mxu0  ;;  %v3337_v39 = vpop.f32.mrb[32].mxu1 }
 0x18a   : > { %3102 = vst [vmem:[%s3895_s15 + $0x78] sm:$0xff] %v2846_v32   ;;  %v2841_v40 = vpack.c.bf16 %v1586_v36, %v1585_v31  ;;  %v3001_v41 = vpack.c.bf16 %v1650_v37, %v1649_v34  ;;  %vm1335_vm0 = vcmp.gt.f32.partialorder %v3273_v38, 0.0  ;;  %v1463_v42 = vmul.f32 0.2, %v3273_v38  ;;  %v918_v43 = vpop.f32.mrb[33].mxu0  ;;  %v1174_v44 = vpop.f32.mrb[33].mxu1 }
 0x18b   : > { %3134 = vst [vmem:[%s3895_s15 + $0x178] sm:$0xff] %v3006_v35   ;;  %vm1399_vm1 = vcmp.gt.f32.partialorder %v3337_v39, 0.0  ;;  %v1527_v45 = vmul.f32 0.2, %v3337_v39  ;;  %v1461_v46 = vmul.f32 0.2, %v918_v43 }
 0x18c   : > { %3101 = vst [vmem:[%s3895_s15 + $0x70] sm:$0xff] %v2841_v40   ;;  %3133 = vst [vmem:[%s3895_s15 + $0x170] sm:$0xff] %v3001_v41   ;;  %v1525_v47 = vmul.f32 0.2, %v1174_v44  ;;  %v3274_v48 = vpop.f32.mrb[34].mxu0  ;;  %v3338_v49 = vpop.f32.mrb[34].mxu1  ;;  %v1591_v50 = vsel %vm1335_vm0, %v3273_v38, %v1463_v42 }
 0x18d   : > { %vm1333_vm2 = vcmp.gt.f32.partialorder %v918_v43, 0.0  ;;  %vm1336_vm3 = vcmp.gt.f32.partialorder %v3274_v48, 0.0  ;;  %v1464_v51 = vmul.f32 0.2, %v3274_v48  ;;  %v921_v52 = vpop.f32.mrb[35].mxu0  ;;  %v1177_v53 = vpop.f32.mrb[35].mxu1  ;;  %v1655_v58 = vsel %vm1399_vm1, %v3337_v39, %v1527_v45 }
 0x18e   : > { %vm1397_vm4 = vcmp.gt.f32.partialorder %v1174_v44, 0.0  ;;  %vm1400_vm5 = vcmp.gt.f32.partialorder %v3338_v49, 0.0  ;;  %v1528_v54 = vmul.f32 0.2, %v3338_v49  ;;  %vm1334_vm6 = vcmp.gt.f32.partialorder %v921_v52, 0.0 }
 0x18f   : > { %v1592_v55 = vsel %vm1336_vm3, %v3274_v48, %v1464_v51  ;;  %v1462_v56 = vmul.f32 0.2, %v921_v52  ;;  %vm1398_vm7 = vcmp.gt.f32.partialorder %v1177_v53, 0.0  ;;  %v1526_v57 = vmul.f32 0.2, %v1177_v53 }
 0x190   : > { %v1589_v59 = vsel %vm1333_vm2, %v918_v43, %v1461_v46  ;;  %v2856_v60 = vpack.c.bf16 %v1592_v55, %v1591_v50  ;;  %v1656_v61 = vsel %vm1400_vm5, %v3338_v49, %v1528_v54  ;;  %v1653_v62 = vsel %vm1397_vm4, %v1174_v44, %v1525_v47 }
 0x191   : > { %v3016_v63 = vpack.c.bf16 %v1656_v61, %v1655_v58  ;;  %v1590_v0 = vsel %vm1334_vm6, %v921_v52, %v1462_v56  ;;  %v1654_v1 = vsel %vm1398_vm7, %v1177_v53, %v1526_v57  ;;  %v3277_v2 = vpop.f32.mrb[36].mxu0  ;;  %v3341_v3 = vpop.f32.mrb[36].mxu1 }
 0x192   : > { %3104 = vst [vmem:[%s3895_s15 + $0x88] sm:$0xff] %v2856_v60   ;;  %v2851_v4 = vpack.c.bf16 %v1590_v0, %v1589_v59  ;;  %v3011_v5 = vpack.c.bf16 %v1654_v1, %v1653_v62  ;;  %vm1339_vm8 = vcmp.gt.f32.partialorder %v3277_v2, 0.0  ;;  %v1467_v6 = vmul.f32 0.2, %v3277_v2  ;;  %v934_v7 = vpop.f32.mrb[37].mxu0  ;;  %v1190_v8 = vpop.f32.mrb[37].mxu1 }
 0x193   : > { %3136 = vst [vmem:[%s3895_s15 + $0x188] sm:$0xff] %v3016_v63   ;;  %vm1403_vm9 = vcmp.gt.f32.partialorder %v3341_v3, 0.0  ;;  %v1531_v9 = vmul.f32 0.2, %v3341_v3  ;;  %v1465_v10 = vmul.f32 0.2, %v934_v7 }
 0x194   : > { %3103 = vst [vmem:[%s3895_s15 + $0x80] sm:$0xff] %v2851_v4   ;;  %3135 = vst [vmem:[%s3895_s15 + $0x180] sm:$0xff] %v3011_v5   ;;  %v1529_v11 = vmul.f32 0.2, %v1190_v8  ;;  %v3278_v12 = vpop.f32.mrb[38].mxu0  ;;  %v3342_v13 = vpop.f32.mrb[38].mxu1  ;;  %v1595_v14 = vsel %vm1339_vm8, %v3277_v2, %v1467_v6 }
 0x195   : > { %vm1337_vm10 = vcmp.gt.f32.partialorder %v934_v7, 0.0  ;;  %vm1340_vm11 = vcmp.gt.f32.partialorder %v3278_v12, 0.0  ;;  %v1468_v15 = vmul.f32 0.2, %v3278_v12  ;;  %v937_v16 = vpop.f32.mrb[39].mxu0  ;;  %v1193_v17 = vpop.f32.mrb[39].mxu1  ;;  %v1659_v22 = vsel %vm1403_vm9, %v3341_v3, %v1531_v9 }
 0x196   : > { %vm1401_vm12 = vcmp.gt.f32.partialorder %v1190_v8, 0.0  ;;  %vm1404_vm13 = vcmp.gt.f32.partialorder %v3342_v13, 0.0  ;;  %v1532_v18 = vmul.f32 0.2, %v3342_v13  ;;  %vm1338_vm14 = vcmp.gt.f32.partialorder %v937_v16, 0.0 }
 0x197   : > { %v1596_v19 = vsel %vm1340_vm11, %v3278_v12, %v1468_v15  ;;  %v1466_v20 = vmul.f32 0.2, %v937_v16  ;;  %vm1402_vm15 = vcmp.gt.f32.partialorder %v1193_v17, 0.0  ;;  %v1530_v21 = vmul.f32 0.2, %v1193_v17 }
 0x198   : > { %v1593_v23 = vsel %vm1337_vm10, %v934_v7, %v1465_v10  ;;  %v2866_v24 = vpack.c.bf16 %v1596_v19, %v1595_v14  ;;  %v1660_v25 = vsel %vm1404_vm13, %v3342_v13, %v1532_v18  ;;  %v1657_v26 = vsel %vm1401_vm12, %v1190_v8, %v1529_v11 }
 0x199   : > { %v3026_v27 = vpack.c.bf16 %v1660_v25, %v1659_v22  ;;  %v1594_v28 = vsel %vm1338_vm14, %v937_v16, %v1466_v20  ;;  %v1658_v29 = vsel %vm1402_vm15, %v1193_v17, %v1530_v21  ;;  %v3281_v30 = vpop.f32.mrb[40].mxu0  ;;  %v3345_v31 = vpop.f32.mrb[40].mxu1 }
 0x19a   : > { %3106 = vst [vmem:[%s3895_s15 + $0x98] sm:$0xff] %v2866_v24   ;;  %v2861_v32 = vpack.c.bf16 %v1594_v28, %v1593_v23  ;;  %v3021_v33 = vpack.c.bf16 %v1658_v29, %v1657_v26  ;;  %vm1343_vm0 = vcmp.gt.f32.partialorder %v3281_v30, 0.0  ;;  %v1471_v34 = vmul.f32 0.2, %v3281_v30  ;;  %v950_v35 = vpop.f32.mrb[41].mxu0  ;;  %v1206_v36 = vpop.f32.mrb[41].mxu1 }
 0x19b   : > { %3138 = vst [vmem:[%s3895_s15 + $0x198] sm:$0xff] %v3026_v27   ;;  %vm1407_vm1 = vcmp.gt.f32.partialorder %v3345_v31, 0.0  ;;  %v1535_v37 = vmul.f32 0.2, %v3345_v31  ;;  %v1469_v38 = vmul.f32 0.2, %v950_v35 }
 0x19c   : > { %3105 = vst [vmem:[%s3895_s15 + $0x90] sm:$0xff] %v2861_v32   ;;  %3137 = vst [vmem:[%s3895_s15 + $0x190] sm:$0xff] %v3021_v33   ;;  %v1533_v39 = vmul.f32 0.2, %v1206_v36  ;;  %v3282_v40 = vpop.f32.mrb[42].mxu0  ;;  %v3346_v41 = vpop.f32.mrb[42].mxu1  ;;  %v1599_v42 = vsel %vm1343_vm0, %v3281_v30, %v1471_v34 }
 0x19d   : > { %vm1341_vm2 = vcmp.gt.f32.partialorder %v950_v35, 0.0  ;;  %vm1344_vm3 = vcmp.gt.f32.partialorder %v3282_v40, 0.0  ;;  %v1472_v43 = vmul.f32 0.2, %v3282_v40  ;;  %v953_v44 = vpop.f32.mrb[43].mxu0  ;;  %v1209_v45 = vpop.f32.mrb[43].mxu1  ;;  %v1663_v50 = vsel %vm1407_vm1, %v3345_v31, %v1535_v37 }
 0x19e   : > { %vm1405_vm4 = vcmp.gt.f32.partialorder %v1206_v36, 0.0  ;;  %vm1408_vm5 = vcmp.gt.f32.partialorder %v3346_v41, 0.0  ;;  %v1536_v46 = vmul.f32 0.2, %v3346_v41  ;;  %vm1342_vm6 = vcmp.gt.f32.partialorder %v953_v44, 0.0 }
 0x19f   : > { %v1600_v47 = vsel %vm1344_vm3, %v3282_v40, %v1472_v43  ;;  %v1470_v48 = vmul.f32 0.2, %v953_v44  ;;  %vm1406_vm7 = vcmp.gt.f32.partialorder %v1209_v45, 0.0  ;;  %v1534_v49 = vmul.f32 0.2, %v1209_v45 }
 0x1a0   : > { %v1597_v51 = vsel %vm1341_vm2, %v950_v35, %v1469_v38  ;;  %v2876_v52 = vpack.c.bf16 %v1600_v47, %v1599_v42  ;;  %v1664_v53 = vsel %vm1408_vm5, %v3346_v41, %v1536_v46  ;;  %v1661_v54 = vsel %vm1405_vm4, %v1206_v36, %v1533_v39 }
 0x1a1   : > { %v3036_v55 = vpack.c.bf16 %v1664_v53, %v1663_v50  ;;  %v1598_v56 = vsel %vm1342_vm6, %v953_v44, %v1470_v48  ;;  %v1662_v57 = vsel %vm1406_vm7, %v1209_v45, %v1534_v49  ;;  %v3285_v58 = vpop.f32.mrb[44].mxu0  ;;  %v3349_v59 = vpop.f32.mrb[44].mxu1 }
 0x1a2   : > { %3108 = vst [vmem:[%s3895_s15 + $0xa8] sm:$0xff] %v2876_v52   ;;  %v2871_v60 = vpack.c.bf16 %v1598_v56, %v1597_v51  ;;  %v3031_v61 = vpack.c.bf16 %v1662_v57, %v1661_v54  ;;  %vm1347_vm8 = vcmp.gt.f32.partialorder %v3285_v58, 0.0  ;;  %v1475_v62 = vmul.f32 0.2, %v3285_v58  ;;  %v966_v63 = vpop.f32.mrb[45].mxu0  ;;  %v1222_v0 = vpop.f32.mrb[45].mxu1 }
 0x1a3   : > { %3140 = vst [vmem:[%s3895_s15 + $0x1a8] sm:$0xff] %v3036_v55   ;;  %vm1411_vm9 = vcmp.gt.f32.partialorder %v3349_v59, 0.0  ;;  %v1539_v1 = vmul.f32 0.2, %v3349_v59  ;;  %v1473_v2 = vmul.f32 0.2, %v966_v63 }
 0x1a4   : > { %3107 = vst [vmem:[%s3895_s15 + $0xa0] sm:$0xff] %v2871_v60   ;;  %3139 = vst [vmem:[%s3895_s15 + $0x1a0] sm:$0xff] %v3031_v61   ;;  %v1537_v3 = vmul.f32 0.2, %v1222_v0  ;;  %v3286_v4 = vpop.f32.mrb[46].mxu0  ;;  %v3350_v5 = vpop.f32.mrb[46].mxu1  ;;  %v1603_v6 = vsel %vm1347_vm8, %v3285_v58, %v1475_v62 }
 0x1a5   : > { %vm1345_vm10 = vcmp.gt.f32.partialorder %v966_v63, 0.0  ;;  %vm1348_vm11 = vcmp.gt.f32.partialorder %v3286_v4, 0.0  ;;  %v1476_v7 = vmul.f32 0.2, %v3286_v4  ;;  %v969_v8 = vpop.f32.mrb[47].mxu0  ;;  %v1225_v9 = vpop.f32.mrb[47].mxu1  ;;  %v1667_v14 = vsel %vm1411_vm9, %v3349_v59, %v1539_v1 }
 0x1a6   : > { %vm1409_vm12 = vcmp.gt.f32.partialorder %v1222_v0, 0.0  ;;  %vm1412_vm13 = vcmp.gt.f32.partialorder %v3350_v5, 0.0  ;;  %v1540_v10 = vmul.f32 0.2, %v3350_v5  ;;  %vm1346_vm14 = vcmp.gt.f32.partialorder %v969_v8, 0.0 }
 0x1a7   : > { %v1604_v11 = vsel %vm1348_vm11, %v3286_v4, %v1476_v7  ;;  %v1474_v12 = vmul.f32 0.2, %v969_v8  ;;  %vm1410_vm15 = vcmp.gt.f32.partialorder %v1225_v9, 0.0  ;;  %v1538_v13 = vmul.f32 0.2, %v1225_v9 }
 0x1a8   : > { %v1601_v15 = vsel %vm1345_vm10, %v966_v63, %v1473_v2  ;;  %v2886_v16 = vpack.c.bf16 %v1604_v11, %v1603_v6  ;;  %v1668_v17 = vsel %vm1412_vm13, %v3350_v5, %v1540_v10  ;;  %v1665_v18 = vsel %vm1409_vm12, %v1222_v0, %v1537_v3 }
 0x1a9   : > { %v3046_v19 = vpack.c.bf16 %v1668_v17, %v1667_v14  ;;  %v1602_v20 = vsel %vm1346_vm14, %v969_v8, %v1474_v12  ;;  %v1666_v21 = vsel %vm1410_vm15, %v1225_v9, %v1538_v13  ;;  %v3289_v22 = vpop.f32.mrb[48].mxu0  ;;  %v3353_v23 = vpop.f32.mrb[48].mxu1 }
 0x1aa   : > { %3110 = vst [vmem:[%s3895_s15 + $0xb8] sm:$0xff] %v2886_v16   ;;  %v2881_v24 = vpack.c.bf16 %v1602_v20, %v1601_v15  ;;  %v3041_v25 = vpack.c.bf16 %v1666_v21, %v1665_v18  ;;  %vm1351_vm0 = vcmp.gt.f32.partialorder %v3289_v22, 0.0  ;;  %v1479_v26 = vmul.f32 0.2, %v3289_v22  ;;  %v982_v27 = vpop.f32.mrb[49].mxu0  ;;  %v1238_v28 = vpop.f32.mrb[49].mxu1 }
 0x1ab   : > { %3142 = vst [vmem:[%s3895_s15 + $0x1b8] sm:$0xff] %v3046_v19   ;;  %vm1415_vm1 = vcmp.gt.f32.partialorder %v3353_v23, 0.0  ;;  %v1543_v29 = vmul.f32 0.2, %v3353_v23  ;;  %v1477_v30 = vmul.f32 0.2, %v982_v27 }
 0x1ac   : > { %3109 = vst [vmem:[%s3895_s15 + $0xb0] sm:$0xff] %v2881_v24   ;;  %3141 = vst [vmem:[%s3895_s15 + $0x1b0] sm:$0xff] %v3041_v25   ;;  %v1541_v31 = vmul.f32 0.2, %v1238_v28  ;;  %v3290_v32 = vpop.f32.mrb[50].mxu0  ;;  %v3354_v33 = vpop.f32.mrb[50].mxu1  ;;  %v1607_v34 = vsel %vm1351_vm0, %v3289_v22, %v1479_v26 }
 0x1ad   : > { %vm1349_vm2 = vcmp.gt.f32.partialorder %v982_v27, 0.0  ;;  %vm1352_vm3 = vcmp.gt.f32.partialorder %v3290_v32, 0.0  ;;  %v1480_v35 = vmul.f32 0.2, %v3290_v32  ;;  %v985_v36 = vpop.f32.mrb[51].mxu0  ;;  %v1241_v37 = vpop.f32.mrb[51].mxu1  ;;  %v1671_v42 = vsel %vm1415_vm1, %v3353_v23, %v1543_v29 }
 0x1ae   : > { %vm1413_vm4 = vcmp.gt.f32.partialorder %v1238_v28, 0.0  ;;  %vm1416_vm5 = vcmp.gt.f32.partialorder %v3354_v33, 0.0  ;;  %v1544_v38 = vmul.f32 0.2, %v3354_v33  ;;  %vm1350_vm6 = vcmp.gt.f32.partialorder %v985_v36, 0.0 }
 0x1af   : > { %v1608_v39 = vsel %vm1352_vm3, %v3290_v32, %v1480_v35  ;;  %v1478_v40 = vmul.f32 0.2, %v985_v36  ;;  %vm1414_vm7 = vcmp.gt.f32.partialorder %v1241_v37, 0.0  ;;  %v1542_v41 = vmul.f32 0.2, %v1241_v37 }
 0x1b0   : > { %v1605_v43 = vsel %vm1349_vm2, %v982_v27, %v1477_v30  ;;  %v2896_v44 = vpack.c.bf16 %v1608_v39, %v1607_v34  ;;  %v1672_v45 = vsel %vm1416_vm5, %v3354_v33, %v1544_v38  ;;  %v1669_v46 = vsel %vm1413_vm4, %v1238_v28, %v1541_v31 }
 0x1b1   : > { %v3056_v47 = vpack.c.bf16 %v1672_v45, %v1671_v42  ;;  %v1606_v48 = vsel %vm1350_vm6, %v985_v36, %v1478_v40  ;;  %v1670_v49 = vsel %vm1414_vm7, %v1241_v37, %v1542_v41  ;;  %v3293_v50 = vpop.f32.mrb[52].mxu0  ;;  %v3357_v51 = vpop.f32.mrb[52].mxu1 }
 0x1b2   : > { %3112 = vst [vmem:[%s3895_s15 + $0xc8] sm:$0xff] %v2896_v44   ;;  %v2891_v52 = vpack.c.bf16 %v1606_v48, %v1605_v43  ;;  %v3051_v53 = vpack.c.bf16 %v1670_v49, %v1669_v46  ;;  %vm1355_vm8 = vcmp.gt.f32.partialorder %v3293_v50, 0.0  ;;  %v1483_v54 = vmul.f32 0.2, %v3293_v50  ;;  %v998_v55 = vpop.f32.mrb[53].mxu0  ;;  %v1254_v56 = vpop.f32.mrb[53].mxu1 }
 0x1b3   : > { %3144 = vst [vmem:[%s3895_s15 + $0x1c8] sm:$0xff] %v3056_v47   ;;  %vm1419_vm9 = vcmp.gt.f32.partialorder %v3357_v51, 0.0  ;;  %v1547_v57 = vmul.f32 0.2, %v3357_v51  ;;  %v1481_v58 = vmul.f32 0.2, %v998_v55 }
 0x1b4   : > { %3111 = vst [vmem:[%s3895_s15 + $0xc0] sm:$0xff] %v2891_v52   ;;  %3143 = vst [vmem:[%s3895_s15 + $0x1c0] sm:$0xff] %v3051_v53   ;;  %v1545_v59 = vmul.f32 0.2, %v1254_v56  ;;  %v3294_v60 = vpop.f32.mrb[54].mxu0  ;;  %v3358_v61 = vpop.f32.mrb[54].mxu1  ;;  %v1611_v62 = vsel %vm1355_vm8, %v3293_v50, %v1483_v54 }
 0x1b5   : > { %vm1353_vm10 = vcmp.gt.f32.partialorder %v998_v55, 0.0  ;;  %vm1356_vm11 = vcmp.gt.f32.partialorder %v3294_v60, 0.0  ;;  %v1484_v63 = vmul.f32 0.2, %v3294_v60  ;;  %v1001_v0 = vpop.f32.mrb[55].mxu0  ;;  %v1257_v1 = vpop.f32.mrb[55].mxu1  ;;  %v1675_v6 = vsel %vm1419_vm9, %v3357_v51, %v1547_v57 }
 0x1b6   : > { %vm1417_vm12 = vcmp.gt.f32.partialorder %v1254_v56, 0.0  ;;  %vm1420_vm13 = vcmp.gt.f32.partialorder %v3358_v61, 0.0  ;;  %v1548_v2 = vmul.f32 0.2, %v3358_v61  ;;  %vm1354_vm14 = vcmp.gt.f32.partialorder %v1001_v0, 0.0 }
 0x1b7   : > { %v1612_v3 = vsel %vm1356_vm11, %v3294_v60, %v1484_v63  ;;  %v1482_v4 = vmul.f32 0.2, %v1001_v0  ;;  %vm1418_vm15 = vcmp.gt.f32.partialorder %v1257_v1, 0.0  ;;  %v1546_v5 = vmul.f32 0.2, %v1257_v1 }
 0x1b8   : > { %v1609_v7 = vsel %vm1353_vm10, %v998_v55, %v1481_v58  ;;  %v2906_v8 = vpack.c.bf16 %v1612_v3, %v1611_v62  ;;  %v1676_v9 = vsel %vm1420_vm13, %v3358_v61, %v1548_v2  ;;  %v1673_v10 = vsel %vm1417_vm12, %v1254_v56, %v1545_v59 }
 0x1b9   : > { %v3066_v11 = vpack.c.bf16 %v1676_v9, %v1675_v6  ;;  %v1610_v12 = vsel %vm1354_vm14, %v1001_v0, %v1482_v4  ;;  %v1674_v13 = vsel %vm1418_vm15, %v1257_v1, %v1546_v5  ;;  %v3297_v14 = vpop.f32.mrb[56].mxu0  ;;  %v3361_v15 = vpop.f32.mrb[56].mxu1 }
 0x1ba   : > { %3114 = vst [vmem:[%s3895_s15 + $0xd8] sm:$0xff] %v2906_v8   ;;  %v2901_v16 = vpack.c.bf16 %v1610_v12, %v1609_v7  ;;  %v3061_v17 = vpack.c.bf16 %v1674_v13, %v1673_v10  ;;  %vm1359_vm0 = vcmp.gt.f32.partialorder %v3297_v14, 0.0  ;;  %v1487_v18 = vmul.f32 0.2, %v3297_v14  ;;  %v1014_v19 = vpop.f32.mrb[57].mxu0  ;;  %v1270_v20 = vpop.f32.mrb[57].mxu1 }
 0x1bb   : > { %3146 = vst [vmem:[%s3895_s15 + $0x1d8] sm:$0xff] %v3066_v11   ;;  %vm1423_vm1 = vcmp.gt.f32.partialorder %v3361_v15, 0.0  ;;  %v1551_v21 = vmul.f32 0.2, %v3361_v15  ;;  %v1485_v22 = vmul.f32 0.2, %v1014_v19 }
 0x1bc   : > { %3113 = vst [vmem:[%s3895_s15 + $0xd0] sm:$0xff] %v2901_v16   ;;  %3145 = vst [vmem:[%s3895_s15 + $0x1d0] sm:$0xff] %v3061_v17   ;;  %v1549_v23 = vmul.f32 0.2, %v1270_v20  ;;  %v3298_v24 = vpop.f32.mrb[58].mxu0  ;;  %v3362_v25 = vpop.f32.mrb[58].mxu1  ;;  %v1615_v26 = vsel %vm1359_vm0, %v3297_v14, %v1487_v18 }
 0x1bd   : > { %vm1357_vm2 = vcmp.gt.f32.partialorder %v1014_v19, 0.0  ;;  %vm1360_vm3 = vcmp.gt.f32.partialorder %v3298_v24, 0.0  ;;  %v1488_v27 = vmul.f32 0.2, %v3298_v24  ;;  %v1017_v28 = vpop.f32.mrb[59].mxu0  ;;  %v1273_v29 = vpop.f32.mrb[59].mxu1  ;;  %v1679_v34 = vsel %vm1423_vm1, %v3361_v15, %v1551_v21 }
 0x1be   : > { %vm1421_vm4 = vcmp.gt.f32.partialorder %v1270_v20, 0.0  ;;  %vm1424_vm5 = vcmp.gt.f32.partialorder %v3362_v25, 0.0  ;;  %v1552_v30 = vmul.f32 0.2, %v3362_v25  ;;  %vm1358_vm6 = vcmp.gt.f32.partialorder %v1017_v28, 0.0 }
 0x1bf   : > { %v1616_v31 = vsel %vm1360_vm3, %v3298_v24, %v1488_v27  ;;  %v1486_v32 = vmul.f32 0.2, %v1017_v28  ;;  %vm1422_vm7 = vcmp.gt.f32.partialorder %v1273_v29, 0.0  ;;  %v1550_v33 = vmul.f32 0.2, %v1273_v29 }
 0x1c0   : > { %v1613_v35 = vsel %vm1357_vm2, %v1014_v19, %v1485_v22  ;;  %v2916_v36 = vpack.c.bf16 %v1616_v31, %v1615_v26  ;;  %v1680_v37 = vsel %vm1424_vm5, %v3362_v25, %v1552_v30  ;;  %v1677_v38 = vsel %vm1421_vm4, %v1270_v20, %v1549_v23 }
 0x1c1   : > { %v3076_v39 = vpack.c.bf16 %v1680_v37, %v1679_v34  ;;  %v1614_v40 = vsel %vm1358_vm6, %v1017_v28, %v1486_v32  ;;  %v1678_v41 = vsel %vm1422_vm7, %v1273_v29, %v1550_v33  ;;  %v3301_v42 = vpop.f32.mrb[60].mxu0  ;;  %v3365_v43 = vpop.f32.mrb[60].mxu1 }
 0x1c2   : > { %3116 = vst [vmem:[%s3895_s15 + $0xe8] sm:$0xff] %v2916_v36   ;;  %v2911_v44 = vpack.c.bf16 %v1614_v40, %v1613_v35  ;;  %v3071_v45 = vpack.c.bf16 %v1678_v41, %v1677_v38  ;;  %vm1363_vm8 = vcmp.gt.f32.partialorder %v3301_v42, 0.0  ;;  %v1491_v46 = vmul.f32 0.2, %v3301_v42  ;;  %v1030_v47 = vpop.f32.mrb[61].mxu0  ;;  %v1286_v48 = vpop.f32.mrb[61].mxu1 }
 0x1c3   : > { %3148 = vst [vmem:[%s3895_s15 + $0x1e8] sm:$0xff] %v3076_v39   ;;  %vm1427_vm9 = vcmp.gt.f32.partialorder %v3365_v43, 0.0  ;;  %v1555_v49 = vmul.f32 0.2, %v3365_v43  ;;  %v1489_v50 = vmul.f32 0.2, %v1030_v47 }
 0x1c4   : > { %3115 = vst [vmem:[%s3895_s15 + $0xe0] sm:$0xff] %v2911_v44   ;;  %3147 = vst [vmem:[%s3895_s15 + $0x1e0] sm:$0xff] %v3071_v45   ;;  %v1553_v51 = vmul.f32 0.2, %v1286_v48  ;;  %v3302_v52 = vpop.f32.mrb[62].mxu0  ;;  %v3366_v53 = vpop.f32.mrb[62].mxu1  ;;  %v1619_v54 = vsel %vm1363_vm8, %v3301_v42, %v1491_v46 }
 0x1c5   : > { %vm1361_vm10 = vcmp.gt.f32.partialorder %v1030_v47, 0.0  ;;  %vm1364_vm11 = vcmp.gt.f32.partialorder %v3302_v52, 0.0  ;;  %v1492_v55 = vmul.f32 0.2, %v3302_v52  ;;  %v1033_v56 = vpop.f32.mrb[63].mxu0  ;;  %v1289_v57 = vpop.f32.mrb[63].mxu1  ;;  %v1683_v62 = vsel %vm1427_vm9, %v3365_v43, %v1555_v49 }
 0x1c6   : > { %vm1425_vm12 = vcmp.gt.f32.partialorder %v1286_v48, 0.0  ;;  %vm1428_vm13 = vcmp.gt.f32.partialorder %v3366_v53, 0.0  ;;  %v1556_v58 = vmul.f32 0.2, %v3366_v53  ;;  %vm1362_vm14 = vcmp.gt.f32.partialorder %v1033_v56, 0.0 }
 0x1c7   : > { %v1620_v59 = vsel %vm1364_vm11, %v3302_v52, %v1492_v55  ;;  %v1490_v60 = vmul.f32 0.2, %v1033_v56  ;;  %vm1426_vm15 = vcmp.gt.f32.partialorder %v1289_v57, 0.0  ;;  %v1554_v61 = vmul.f32 0.2, %v1289_v57 }
 0x1c8   : > { %v1617_v63 = vsel %vm1361_vm10, %v1030_v47, %v1489_v50  ;;  %v2926_v0 = vpack.c.bf16 %v1620_v59, %v1619_v54  ;;  %v1684_v1 = vsel %vm1428_vm13, %v3366_v53, %v1556_v58  ;;  %v1681_v2 = vsel %vm1425_vm12, %v1286_v48, %v1553_v51 }
 0x1c9   : > { %v3086_v3 = vpack.c.bf16 %v1684_v1, %v1683_v62  ;;  %v1618_v4 = vsel %vm1362_vm14, %v1033_v56, %v1490_v60  ;;  %v1682_v5 = vsel %vm1426_vm15, %v1289_v57, %v1554_v61 }
 0x1ca   : > { %3118 = vst [vmem:[%s3895_s15 + $0xf8] sm:$0xff] %v2926_v0   ;;  %v2921_v6 = vpack.c.bf16 %v1618_v4, %v1617_v63  ;;  %v3081_v7 = vpack.c.bf16 %v1682_v5, %v1681_v2 }
 0x1cb   : > { %3150 = vst [vmem:[%s3895_s15 + $0x1f8] sm:$0xff] %v3086_v3  }
 0x1cc   : > { %3117 = vst [vmem:[%s3895_s15 + $0xf0] sm:$0xff] %v2921_v6   ;;  %3149 = vst [vmem:[%s3895_s15 + $0x1f0] sm:$0xff] %v3081_v7  }
 0x1cd   : > { %3587 = shalt.err (!%p3584_p7)
}
 0x1ce   : > { %s3588_s20 = scalar_lea.hbm %s3979_s22, 8192  ;;  %s3592_s25 = scalar_lea.hbm %s4031_s2, 16384 }
 0x1cf   : > { %p3589_p9 = scmp.ne.s32.totalorder %s3979_s22, %s3588_s20  ;;  %p3593_p5 = scmp.lt.u32.totalorder %s3979_s22, %s4031_s2 }
 0x1d0   : > { %p3594_p11 = scmp.lt.u32.totalorder %s3592_s25, %s3588_s20  ;;  %p3596_p4 = scmp.lt.u32.totalorder %s3588_s20, %s3979_s22 }
 0x1d1   : > { %p3590_p1 = pnand %p3589_p9, %p3762_p12 }
 0x1d2   : > { %p3595_p2 = por %p3594_p11, %p3593_p5 }
 0x1d3   : > { %p3591_p0 = pneg %p3590_p1 }
 0x1d4   : > { %p3597_p6 = por %p3596_p4, %p3595_p2 }
 0x1d6   : > { %p3598_p8 = pnand %p3597_p6, %p3591_p0 }
 0x1d8   : > { %3601 = shalt.err (!%p3598_p8)
}
 0x1d9   : > { %s3651_s30 = smov 64   ;;  %s3652_s23 = smov 4  }
 0x1da   : > { %3389 = dma.vmem_to_hbm [thread:$0]  (%p3762_p12), %s3981_s4, 8192, %s3979_s22, %s2326_s28, %s3651_s30, %s3651_s30, %s3652_s23  }
 0x1db PF: > { %s2354_s15 = sand.u32 1, %s3632_s9   ;;  %p4046_p10 = scmp.ne.s32.totalorder %s4036_s16, 0 }
 0x1dc   : > { %p4047_p13 = scmp.ge.s32.totalorder %s3644_s12, 2  ;;  %s2355_s17 = scalar_lea.sflag [#allocation4], %s2354_s15 }
 0x1de   : > { %p3400_p3 = pnand %p4047_p13, %p4046_p10 }
 0x1e0   : > { %3627 = dma.done.wait (!%p3400_p3), %s2355_s17, 8192  }
 0x1e1   : > { %3629 = vsyncadd (!%p3400_p3), %s2355_s17, 4294959104  ;;  %p16_p7 = scmp.ge.s32.totalorder %s3724_s21, 4   ;;  %s4048_s9 = smov %s3636_s10 }
 0x1e2   : > { %s4049_s10 = smov %s3640_s11  ;;  %s4050_s11 = smov %s3758_s8 }
 0x1e3   : > { %s4051_s12 = smov %s3724_s21  ;;  %18 = sbr.rel (!%p16_p7) target bundleno = 6 (0x6), region = 77 }
 0x1ea   :  { %2360 = vsyncpa [#allocation3], 1 }
 0x1eb   :  { %2362 = vsyncpa [#allocation3 + $0x1], 1 }
 0x1ec   :  { %2363 = vsyncpa [#allocation6], 1 }
 0x1ed   :  { %2364 = vsyncpa [#allocation4], 1 }
 0x1ee   :  { %2366 = vsyncpa [#allocation4 + $0x1], 1 }

// kernel: anime_discriminator_forward.10
= control target key start
LH: loop header
LB: loop body
LE: loop exit
PB: predicated region body
PF: predicated region fallthrough
CT: control target
= control target key end

     0   :  { %10 = vsyncpa [#allocation3], 0  ;;  %s2038_s0 = inlined_call_operand.hbm [shape: bf16[512,128], index: 0, kind: input, shape index: {}]   ;;  %s2039_s1 = inlined_call_operand.hbm [shape: f32[1,128], index: 1, kind: input, shape index: {}]   ;;  %s2040_s2 = inlined_call_operand.hbm [shape: f32[1,128], index: 2, kind: input, shape index: {}]   ;;  %s2041_s3 = inlined_call_operand.hbm [shape: f32[1,128], index: 3, kind: input, shape index: {}]   ;;  %s2042_s4 = inlined_call_operand.hbm [shape: f32[1,128], index: 4, kind: input, shape index: {}]   ;;  %s2043_s5 = inlined_call_operand.hbm [shape: bf16[512,128], index: 5, kind: output, shape index: {}]  }
   0x1   :  { %11 = vsyncpa [#allocation6], 0 }
   0x2   :  { %12 = vsyncpa [#allocation9], 0 }
   0x3   :  { %13 = vsyncpa [#allocation4], 0  ;;  %s1522_s18 = smov [#allocation5]   ;;  %s1523_s20 = smov [#allocation8]  }
   0x4   :  { %s32_s19 = sshll.u32 %s1522_s18, 4  ;;  %s52_s21 = sshll.u32 %s1523_s20, 4  ;;  %s33_s19 = int_to_ptr.vmem [resolvable:$true] %s32_s19  ;;  %s53_s21 = int_to_ptr.vmem [resolvable:$true] %s52_s21 }
   0x5   :  { %s1382_s24 = scalar_lea.hbm %s2039_s1, 16 }
   0x6   :  { %p1383_p0 = scmp.ne.s32.totalorder %s2039_s1, %s1382_s24  ;;  %p1386_p1 = scmp.lt.u32.totalorder %s1382_s24, %s2039_s1 }
   0x8   :  { %p1388_p2 = pnand %p1386_p1, %p1383_p0 }
   0xa   :  { %1391 = shalt.err (!%p1388_p2)
}
   0xb   :  { %s1392_s29 = scalar_lea.vmem %s33_s19, 16  ;;  %s1396_s30 = scalar_lea.vmem %s33_s19, 32 }
   0xc   :  { %p1393_p3 = scmp.ne.s32.totalorder %s33_s19, %s1392_s29  ;;  %p1397_p4 = scmp.lt.s32.totalorder %s33_s19, %s33_s19 }
   0xd   :  { %p1398_p5 = scmp.lt.s32.totalorder %s1396_s30, %s1392_s29 }
   0xf   :  { %p1399_p6 = por %p1398_p5, %p1397_p4 }
  0x11   :  { %p1400_p7 = pnand %p1399_p6, %p1393_p3 }
  0x13   :  { %1403 = shalt.err (!%p1400_p7)
}
  0x14   :  { %35 = dma.hbm_to_vmem [thread:$0]  %s2039_s1, 16, %s33_s19, [#allocation6]  }
  0x15   :  { %s1404_s10 = scalar_lea.hbm %s2041_s3, 16 }
  0x16   :  { %p1405_p8 = scmp.ne.s32.totalorder %s2041_s3, %s1404_s10  ;;  %p1408_p9 = scmp.lt.u32.totalorder %s1404_s10, %s2041_s3 }
  0x18   :  { %p1410_p10 = pnand %p1408_p9, %p1405_p8 }
  0x1a   :  { %1413 = shalt.err (!%p1410_p10)
}
  0x1b   :  { %s1414_s15 = scalar_lea.vmem %s53_s21, 16  ;;  %s1418_s16 = scalar_lea.vmem %s53_s21, 32 }
  0x1c   :  { %p1415_p11 = scmp.ne.s32.totalorder %s53_s21, %s1414_s15  ;;  %p1419_p12 = scmp.lt.s32.totalorder %s53_s21, %s53_s21 }
  0x1d   :  { %p1420_p13 = scmp.lt.s32.totalorder %s1418_s16, %s1414_s15 }
  0x1f   :  { %p1421_p0 = por %p1420_p13, %p1419_p12 }
  0x21   :  { %p1422_p1 = pnand %p1421_p0, %p1415_p11 }
  0x23   :  { %1425 = shalt.err (!%p1422_p1)
}
  0x24   :  { %55 = dma.hbm_to_vmem [thread:$0]  %s2041_s3, 16, %s53_s21, [#allocation9]  }
  0x25   :  { %s1524_s18 = smov [#allocation2]   ;;  %s1426_s23 = scalar_lea.hbm %s2038_s0, 4096 }
  0x26   :  { %s19_s19 = sshll.u32 %s1524_s18, 4  ;;  %p1427_p2 = scmp.ne.s32.totalorder %s2038_s0, %s1426_s23  ;;  %s20_s19 = int_to_ptr.vmem [resolvable:$true] %s19_s19 }
  0x27   :  { %p1430_p3 = scmp.lt.u32.totalorder %s1426_s23, %s2038_s0 }
  0x29   :  { %p1432_p4 = pnand %p1430_p3, %p1427_p2 }
  0x2b   :  { %1435 = shalt.err (!%p1432_p4)
}
  0x2c   :  { %s1436_s28 = scalar_lea.vmem %s20_s19, 4096  ;;  %p1441_p6 = scmp.lt.s32.totalorder %s20_s19, %s20_s19 }
  0x2d   :  { %p1437_p5 = scmp.ne.s32.totalorder %s20_s19, %s1436_s28  ;;  %p1442_p7 = scmp.lt.s32.totalorder %s1436_s28, %s1436_s28 }
  0x2f   :  { %p1443_p8 = por %p1442_p7, %p1441_p6 }
  0x31   :  { %p1444_p9 = pnand %p1443_p8, %p1437_p5 }
  0x33   :  { %1447 = shalt.err (!%p1444_p9)
}
  0x34   :  { %s1525_s3 = smov 64   ;;  %s1526_s21 = smov 4  }
  0x35   :  { %25 = dma.hbm_to_vmem [thread:$0]  %s2038_s0, 4096, %s20_s19, [#allocation3], %s1525_s3, %s1525_s3, %s1526_s21  }
  0x36   :  { %s1527_s6 = smov [#allocation7]   ;;  %s1528_s8 = smov [#allocation10]  }
  0x37   :  { %s42_s7 = sshll.u32 %s1527_s6, 4  ;;  %s62_s9 = sshll.u32 %s1528_s8, 4  ;;  %s43_s7 = int_to_ptr.vmem [resolvable:$true] %s42_s7  ;;  %s63_s9 = int_to_ptr.vmem [resolvable:$true] %s62_s9 }
  0x38   :  { %s1448_s12 = scalar_lea.hbm %s2040_s2, 16 }
  0x39   :  { %p1449_p10 = scmp.ne.s32.totalorder %s2040_s2, %s1448_s12  ;;  %p1452_p11 = scmp.lt.u32.totalorder %s1448_s12, %s2040_s2 }
  0x3b   :  { %p1454_p12 = pnand %p1452_p11, %p1449_p10 }
  0x3d   :  { %1457 = shalt.err (!%p1454_p12)
}
  0x3e   :  { %s1458_s0 = scalar_lea.vmem %s43_s7, 16  ;;  %s1462_s1 = scalar_lea.vmem %s43_s7, 32 }
  0x3f   :  { %p1459_p13 = scmp.ne.s32.totalorder %s43_s7, %s1458_s0  ;;  %p1463_p0 = scmp.lt.s32.totalorder %s43_s7, %s43_s7 }
  0x40   :  { %p1464_p1 = scmp.lt.s32.totalorder %s1462_s1, %s1458_s0 }
  0x42   :  { %p1465_p2 = por %p1464_p1, %p1463_p0 }
  0x44   :  { %p1466_p3 = pnand %p1465_p2, %p1459_p13 }
  0x46   :  { %1469 = shalt.err (!%p1466_p3)
}
  0x47   :  { %45 = dma.hbm_to_vmem [thread:$0]  %s2040_s2, 16, %s43_s7, [#allocation6]  }
  0x48   :  { %s1470_s22 = scalar_lea.hbm %s2042_s4, 16 }
  0x49   :  { %p1471_p4 = scmp.ne.s32.totalorder %s2042_s4, %s1470_s22  ;;  %p1474_p5 = scmp.lt.u32.totalorder %s1470_s22, %s2042_s4 }
  0x4b   :  { %p1476_p6 = pnand %p1474_p5, %p1471_p4 }
  0x4d   :  { %1479 = shalt.err (!%p1476_p6)
}
  0x4e   :  { %s1480_s27 = scalar_lea.vmem %s63_s9, 16  ;;  %s1484_s28 = scalar_lea.vmem %s63_s9, 32 }
  0x4f   :  { %p1481_p7 = scmp.ne.s32.totalorder %s63_s9, %s1480_s27  ;;  %p1485_p8 = scmp.lt.s32.totalorder %s63_s9, %s63_s9 }
  0x50   :  { %p1486_p9 = scmp.lt.s32.totalorder %s1484_s28, %s1480_s27 }
  0x52   :  { %p1487_p10 = por %p1486_p9, %p1485_p8 }
  0x54   :  { %p1488_p11 = pnand %p1487_p10, %p1481_p7 }
  0x56   :  { %1491 = shalt.err (!%p1488_p11)
}
  0x57   :  { %65 = dma.hbm_to_vmem [thread:$0]  %s2042_s4, 16, %s63_s9, [#allocation9]  }
  0x58   :  { %1514 = dma.done.wait [#allocation3], 4096  }
  0x59   :  { %1515 = vsyncadd [#allocation3], 4294963200 }
  0x5a   :  { %1516 = dma.done.wait [#allocation6], 32  }
  0x5b   :  { %1517 = vsyncadd [#allocation6], 4294967264 }
  0x5c   :  { %1518 = dma.done.wait [#allocation9], 32  }
  0x5d   :  { %1519 = vsyncadd [#allocation9], 4294967264  ;;  %v81_v0 = vld [vmem:[#allocation5] sm:$0x1]  ;;  %v83_v1 = vld [vmem:[#allocation7] sm:$0x1]  ;;  %v224_v2 = vlaneseq }
  0x5e   :  { %v1623_v3 = vmul.f32 0.001953125, %v81_v0  ;;  %v84_v4 = vmul.f32 0.001953125, %v83_v1  ;;  %v1629_v8 = vld [vmem:[#allocation2] sm:$0xff]   ;;  %v1631_v9 = vld [vmem:[#allocation2 + $0x8] sm:$0xff]   ;;  %v1633_v11 = vld [vmem:[#allocation2 + $0x10] sm:$0xff]   ;;  %s1529_s4 = smov [#allocation11]  }
  0x5f   :  { %v1627_v6 = vshrl.u32 %v224_v2, 7  ;;  %v1635_v12 = vld [vmem:[#allocation2 + $0x18] sm:$0xff]   ;;  %v1024_v13 = vunpack.c.l.bf16 %v1629_v8  ;;  %v1639_v15 = vld [vmem:[#allocation2 + $0x20] sm:$0xff]   ;;  %v1641_v16 = vld [vmem:[#allocation2 + $0x28] sm:$0xff]   ;;  %v1025_v18 = vunpack.c.h.bf16 %v1629_v8  ;;  %v1028_v19 = vunpack.c.l.bf16 %v1631_v9  ;;  %s880_s30 = sshll.u32 %s1529_s4, 4  ;;  %s881_s30 = int_to_ptr.vmem [resolvable:$true] %s880_s30 }
  0x60   :  { %v85_v5 = vmul.f32 %v1623_v3, %v1623_v3  ;;  %v1029_v20 = vunpack.c.h.bf16 %v1631_v9  ;;  %v1646_v21 = vld [vmem:[#allocation2 + $0x30] sm:$0xff]   ;;  %v1648_v22 = vld [vmem:[#allocation2 + $0x38] sm:$0xff]   ;;  %v1032_v23 = vunpack.c.l.bf16 %v1633_v11  ;;  %v1033_v24 = vunpack.c.h.bf16 %v1633_v11  ;;  %v1654_v27 = vld [vmem:[#allocation2 + $0x40] sm:$0xff]   ;;  %s1492_s6 = scalar_lea.vmem %s881_s30, 4096  ;;  %p1497_p13 = scmp.lt.s32.totalorder %s881_s30, %s881_s30 }
  0x61   :  { %v226_v14 = vsub.s32 0, %v1627_v6  ;;  %v1036_v25 = vunpack.c.l.bf16 %v1635_v12  ;;  %v1037_v26 = vunpack.c.h.bf16 %v1635_v12  ;;  %v1656_v28 = vld [vmem:[#allocation2 + $0x48] sm:$0xff]   ;;  %v1040_v29 = vunpack.c.l.bf16 %v1639_v15  ;;  %v1661_v32 = vld [vmem:[#allocation2 + $0x50] sm:$0xff]   ;;  %v1663_v33 = vld [vmem:[#allocation2 + $0x58] sm:$0xff]   ;;  %p1493_p12 = scmp.ne.s32.totalorder %s881_s30, %s1492_s6  ;;  %p1498_p0 = scmp.lt.s32.totalorder %s1492_s6, %s1492_s6 }
  0x62   :  { %v86_v7 = vsub.f32 %v84_v4, %v85_v5  ;;  %v1041_v30 = vunpack.c.h.bf16 %v1639_v15  ;;  %v1044_v31 = vunpack.c.l.bf16 %v1641_v16  ;;  %v1045_v34 = vunpack.c.h.bf16 %v1641_v16  ;;  %v1669_v38 = vld [vmem:[#allocation2 + $0x60] sm:$0xff]   ;;  %v1671_v39 = vld [vmem:[#allocation2 + $0x68] sm:$0xff]   ;;  %v1677_v44 = vld [vmem:[#allocation2 + $0x70] sm:$0xff]  }
  0x63   :  { %v1048_v35 = vunpack.c.l.bf16 %v1646_v21  ;;  %v1049_v36 = vunpack.c.h.bf16 %v1646_v21  ;;  %v1052_v37 = vunpack.c.l.bf16 %v1648_v22  ;;  %v1053_v40 = vunpack.c.h.bf16 %v1648_v22  ;;  %v1679_v45 = vld [vmem:[#allocation2 + $0x78] sm:$0xff]   ;;  %v1685_v50 = vld [vmem:[#allocation2 + $0x80] sm:$0xff]   ;;  %v1687_v51 = vld [vmem:[#allocation2 + $0x88] sm:$0xff]   ;;  %p1499_p1 = por %p1498_p0, %p1497_p13 }
  0x64   :  { %v87_v10 = vmax.f32 %v86_v7, 0.0  ;;  %v1056_v41 = vunpack.c.l.bf16 %v1654_v27  ;;  %v1693_v56 = vld [vmem:[#allocation2 + $0x90] sm:$0xff]   ;;  %v1695_v57 = vld [vmem:[#allocation2 + $0x98] sm:$0xff]   ;;  %v1701_v62 = vld [vmem:[#allocation2 + $0xa0] sm:$0xff]   ;;  %v2046_v22 = vunpack.c.h.bf16 %v1656_v28 }
  0x65   :  { %v1703_v63 = vld [vmem:[#allocation2 + $0xa8] sm:$0xff]   ;;  %v1709_v5 = vld [vmem:[#allocation2 + $0xb0] sm:$0xff]   ;;  %v1711_v7 = vld [vmem:[#allocation2 + $0xb8] sm:$0xff]   ;;  %p1500_p2 = pnand %p1499_p1, %p1493_p12 }
  0x66   :  { %v89_v17 = vadd.f32 1e-05, %v87_v10  ;;  %v1717_v59 = vld [vmem:[#allocation2 + $0xc0] sm:$0xff]   ;;  %v1719_v0 = vld [vmem:[#allocation2 + $0xc8] sm:$0xff]   ;;  %v1725_v10 = vld [vmem:[#allocation2 + $0xd0] sm:$0xff]  }
  0x67   :  { %v88_v1 = vld [vmem:[#allocation8] sm:$0x1]  ;;  %v1731_v53 = vld [vmem:[#allocation2 + $0xd8] sm:$0xff]   ;;  %v1744_v47 = vld [vmem:[#allocation2 + $0xf0] sm:$0xff]  }
  0x68   :  { %1380 = vrsqrt.f32 %v89_v17  ;;  %v1733_v52 = vld [vmem:[#allocation2 + $0xe0] sm:$0xff]   ;;  %v1739_v17 = vld [vmem:[#allocation2 + $0xe8] sm:$0xff]   ;;  %v1746_v46 = vld [vmem:[#allocation2 + $0xf8] sm:$0xff]   ;;  %v1144_v60 = vunpack.c.l.bf16 %v1744_v47 }
  0x69   :  { %v92_v4 = vld [vmem:[#allocation10] sm:$0x1]  ;;  %v1137_v43 = vunpack.c.h.bf16 %v1733_v52  ;;  %v1140_v48 = vunpack.c.l.bf16 %v1739_v17 }
  0x72   :  { %v1381_v2 = vpop.eup %1380 }
  0x73   :  { %v91_v61 = vmul.f32 %v1381_v2, %v88_v1 }
  0x75   :  { %v93_v1 = vmul.f32 %v91_v61, %v1623_v3  ;;  %v1755_v2 = vrot.slane %v91_v61, %v226_v14 }
  0x77   :  { %v94_v42 = vsub.f32 %v92_v4, %v93_v1  ;;  %v229_v3 = vmul.f32 %v1024_v13, %v1755_v2  ;;  %v230_v61 = vmul.f32 %v1025_v18, %v1755_v2  ;;  %v231_v54 = vmul.f32 %v1028_v19, %v1755_v2 }
  0x78   :  { %v232_v58 = vmul.f32 %v1029_v20, %v1755_v2  ;;  %v233_v4 = vmul.f32 %v1032_v23, %v1755_v2  ;;  %v234_v13 = vmul.f32 %v1033_v24, %v1755_v2  ;;  %v235_v8 = vmul.f32 %v1036_v25, %v1755_v2 }
  0x79   :  { %v1786_v18 = vrot.slane %v94_v42, %v226_v14  ;;  %v236_v9 = vmul.f32 %v1037_v26, %v1755_v2  ;;  %v237_v19 = vmul.f32 %v1040_v29, %v1755_v2  ;;  %v238_v11 = vmul.f32 %v1041_v30, %v1755_v2 }
  0x7a   :  { %v239_v20 = vmul.f32 %v1044_v31, %v1755_v2  ;;  %v240_v6 = vmul.f32 %v1045_v34, %v1755_v2  ;;  %v241_v12 = vmul.f32 %v1048_v35, %v1755_v2  ;;  %v242_v14 = vmul.f32 %v1049_v36, %v1755_v2 }
  0x7b   :  { %v299_v23 = vadd.f32 %v1786_v18, %v229_v3  ;;  %v300_v15 = vadd.f32 %v1786_v18, %v230_v61  ;;  %v301_v24 = vadd.f32 %v1786_v18, %v231_v54  ;;  %v302_v25 = vadd.f32 %v1786_v18, %v232_v58 }
  0x7c   :  { %v303_v26 = vadd.f32 %v1786_v18, %v233_v4  ;;  %v304_v16 = vadd.f32 %v1786_v18, %v234_v13  ;;  %v305_v29 = vadd.f32 %v1786_v18, %v235_v8  ;;  %v306_v30 = vadd.f32 %v1786_v18, %v236_v9 }
  0x7d   :  { %vm363_vm0 = vcmp.gt.f32.partialorder %v299_v23, 0.0  ;;  %vm364_vm1 = vcmp.gt.f32.partialorder %v300_v15, 0.0  ;;  %v427_v21 = vmul.f32 0.2, %v299_v23  ;;  %v428_v31 = vmul.f32 0.2, %v300_v15 }
  0x7e   :  { %vm365_vm2 = vcmp.gt.f32.partialorder %v301_v24, 0.0  ;;  %vm366_vm3 = vcmp.gt.f32.partialorder %v302_v25, 0.0  ;;  %v429_v34 = vmul.f32 0.2, %v301_v24  ;;  %v430_v35 = vmul.f32 0.2, %v302_v25 }
  0x7f   :  { %v491_v36 = vsel %vm363_vm0, %v299_v23, %v427_v21  ;;  %v492_v42 = vsel %vm364_vm1, %v300_v15, %v428_v31  ;;  %vm367_vm4 = vcmp.gt.f32.partialorder %v303_v26, 0.0  ;;  %vm368_vm5 = vcmp.gt.f32.partialorder %v304_v16, 0.0 }
  0x80   :  { %v1153_v54 = vpack.c.bf16 %v492_v42, %v491_v36  ;;  %v493_v58 = vsel %vm365_vm2, %v301_v24, %v429_v34  ;;  %v494_v1 = vsel %vm366_vm3, %v302_v25, %v430_v35  ;;  %v431_v3 = vmul.f32 0.2, %v303_v26 }
  0x81   :  { %v1158_v61 = vpack.c.bf16 %v494_v1, %v493_v58  ;;  %v432_v4 = vmul.f32 0.2, %v304_v16  ;;  %vm369_vm6 = vcmp.gt.f32.partialorder %v305_v29, 0.0  ;;  %vm370_vm7 = vcmp.gt.f32.partialorder %v306_v30, 0.0 }
  0x82   :  { %1154 = vst [vmem:[#allocation11] sm:$0xff] %v1153_v54   ;;  %v495_v13 = vsel %vm367_vm4, %v303_v26, %v431_v3  ;;  %v433_v8 = vmul.f32 0.2, %v305_v29  ;;  %v434_v9 = vmul.f32 0.2, %v306_v30  ;;  %v307_v49 = vadd.f32 %v1786_v18, %v237_v19 }
  0x83   :  { %1341 = vst [vmem:[#allocation11 + $0x8] sm:$0xff] %v1158_v61   ;;  %v496_v55 = vsel %vm368_vm5, %v304_v16, %v432_v4  ;;  %v308_v23 = vadd.f32 %v1786_v18, %v238_v11  ;;  %v309_v15 = vadd.f32 %v1786_v18, %v239_v20  ;;  %v310_v24 = vadd.f32 %v1786_v18, %v240_v6 }
  0x84   :  { %v1163_v25 = vpack.c.bf16 %v496_v55, %v495_v13  ;;  %v497_v21 = vsel %vm369_vm6, %v305_v29, %v433_v8  ;;  %v498_v31 = vsel %vm370_vm7, %v306_v30, %v434_v9  ;;  %vm371_vm8 = vcmp.gt.f32.partialorder %v307_v49, 0.0 }
  0x85   :  { %v1168_v34 = vpack.c.bf16 %v498_v31, %v497_v21  ;;  %vm372_vm9 = vcmp.gt.f32.partialorder %v308_v23, 0.0  ;;  %v435_v35 = vmul.f32 0.2, %v307_v49  ;;  %v436_v26 = vmul.f32 0.2, %v308_v23 }
  0x86   :  { %1342 = vst [vmem:[#allocation11 + $0x10] sm:$0xff] %v1163_v25   ;;  %vm373_vm10 = vcmp.gt.f32.partialorder %v309_v15, 0.0  ;;  %vm374_vm11 = vcmp.gt.f32.partialorder %v310_v24, 0.0  ;;  %v437_v19 = vmul.f32 0.2, %v309_v15  ;;  %v311_v20 = vadd.f32 %v1786_v18, %v241_v12 }
  0x87   :  { %v438_v36 = vmul.f32 0.2, %v310_v24  ;;  %1343 = vst [vmem:[#allocation11 + $0x18] sm:$0xff] %v1168_v34   ;;  %v499_v16 = vsel %vm371_vm8, %v307_v49, %v435_v35  ;;  %v500_v11 = vsel %vm372_vm9, %v308_v23, %v436_v26  ;;  %v312_v6 = vadd.f32 %v1786_v18, %v242_v14 }
  0x88   :  { %v1173_v55 = vpack.c.bf16 %v500_v11, %v499_v16  ;;  %v501_v29 = vsel %vm373_vm10, %v309_v15, %v437_v19  ;;  %v243_v42 = vmul.f32 %v1052_v37, %v1755_v2  ;;  %vm375_vm12 = vcmp.gt.f32.partialorder %v311_v20, 0.0 }
  0x89   :  { %v502_v30 = vsel %vm374_vm11, %v310_v24, %v438_v36  ;;  %vm376_vm13 = vcmp.gt.f32.partialorder %v312_v6, 0.0  ;;  %v439_v58 = vmul.f32 0.2, %v311_v20  ;;  %v440_v1 = vmul.f32 0.2, %v312_v6 }
  0x8a   :  { %v1178_v54 = vpack.c.bf16 %v502_v30, %v501_v29  ;;  %1344 = vst [vmem:[#allocation11 + $0x20] sm:$0xff] %v1173_v55   ;;  %v244_v49 = vmul.f32 %v1053_v40, %v1755_v2  ;;  %v313_v12 = vadd.f32 %v1786_v18, %v243_v42  ;;  %v245_v14 = vmul.f32 %v1056_v41, %v1755_v2 }
  0x8b   :  { %v503_v3 = vsel %vm375_vm12, %v311_v20, %v439_v58  ;;  %v2044_v37 = vunpack.c.h.bf16 %v1654_v27  ;;  %v2045_v4 = vunpack.c.l.bf16 %v1656_v28  ;;  %v248_v40 = vmul.f32 %v2046_v22, %v1755_v2 }
  0x8c   :  { %1345 = vst [vmem:[#allocation11 + $0x28] sm:$0xff] %v1178_v54   ;;  %v504_v8 = vsel %vm376_vm13, %v312_v6, %v440_v1  ;;  %v314_v9 = vadd.f32 %v1786_v18, %v244_v49  ;;  %vm377_vm14 = vcmp.gt.f32.partialorder %v313_v12, 0.0  ;;  %v441_v23 = vmul.f32 0.2, %v313_v12 }
  0x8d   :  { %v246_v61 = vmul.f32 %v2044_v37, %v1755_v2  ;;  %v247_v13 = vmul.f32 %v2045_v4, %v1755_v2  ;;  %v1183_v41 = vpack.c.bf16 %v504_v8, %v503_v3  ;;  %v315_v15 = vadd.f32 %v1786_v18, %v245_v14 }
  0x8e   :  { %vm378_vm15 = vcmp.gt.f32.partialorder %v314_v9, 0.0  ;;  %v442_v25 = vmul.f32 0.2, %v314_v9  ;;  %v505_v21 = vsel %vm377_vm14, %v313_v12, %v441_v23  ;;  %v318_v31 = vadd.f32 %v1786_v18, %v248_v40 }
  0x8f   :  { %v316_v24 = vadd.f32 %v1786_v18, %v246_v61  ;;  %v317_v27 = vadd.f32 %v1786_v18, %v247_v13  ;;  %1346 = vst [vmem:[#allocation11 + $0x30] sm:$0xff] %v1183_v41   ;;  %vm379_vm0 = vcmp.gt.f32.partialorder %v315_v15, 0.0  ;;  %v443_v28 = vmul.f32 0.2, %v315_v15 }
  0x90   :  { %v506_v35 = vsel %vm378_vm15, %v314_v9, %v442_v25  ;;  %vm382_vm3 = vcmp.gt.f32.partialorder %v318_v31, 0.0  ;;  %v446_v11 = vmul.f32 0.2, %v318_v31  ;;  %v2047_v55 = vunpack.c.l.bf16 %v1661_v32 }
  0x91   :  { %vm380_vm1 = vcmp.gt.f32.partialorder %v316_v24, 0.0  ;;  %v444_v34 = vmul.f32 0.2, %v316_v24  ;;  %vm381_vm2 = vcmp.gt.f32.partialorder %v317_v27, 0.0  ;;  %v445_v26 = vmul.f32 0.2, %v317_v27 }
  0x92   :  { %v1188_v19 = vpack.c.bf16 %v506_v35, %v505_v21  ;;  %v507_v36 = vsel %vm379_vm0, %v315_v15, %v443_v28  ;;  %v249_v29 = vmul.f32 %v2047_v55, %v1755_v2  ;;  %v2048_v30 = vunpack.c.h.bf16 %v1661_v32 }
  0x93   :  { %v508_v16 = vsel %vm380_vm1, %v316_v24, %v444_v34  ;;  %v509_v6 = vsel %vm381_vm2, %v317_v27, %v445_v26  ;;  %v510_v54 = vsel %vm382_vm3, %v318_v31, %v446_v11  ;;  %v2049_v58 = vunpack.c.l.bf16 %v1663_v33 }
  0x94   :  { %v1193_v20 = vpack.c.bf16 %v508_v16, %v507_v36  ;;  %v250_v42 = vmul.f32 %v2048_v30, %v1755_v2  ;;  %1347 = vst [vmem:[#allocation11 + $0x38] sm:$0xff] %v1188_v19   ;;  %v2050_v49 = vunpack.c.h.bf16 %v1663_v33  ;;  %v2051_v14 = vunpack.c.l.bf16 %v1669_v38 }
  0x95   :  { %v251_v1 = vmul.f32 %v2049_v58, %v1755_v2  ;;  %v1198_v37 = vpack.c.bf16 %v510_v54, %v509_v6  ;;  %v319_v61 = vadd.f32 %v1786_v18, %v249_v29  ;;  %v2052_v4 = vunpack.c.h.bf16 %v1669_v38 }
  0x96   :  { %v252_v12 = vmul.f32 %v2050_v49, %v1755_v2  ;;  %v253_v3 = vmul.f32 %v2051_v14, %v1755_v2  ;;  %1348 = vst [vmem:[#allocation11 + $0x40] sm:$0xff] %v1193_v20   ;;  %v320_v32 = vadd.f32 %v1786_v18, %v250_v42  ;;  %v2053_v8 = vunpack.c.l.bf16 %v1671_v39 }
  0x97   :  { %v254_v13 = vmul.f32 %v2052_v4, %v1755_v2  ;;  %v321_v22 = vadd.f32 %v1786_v18, %v251_v1  ;;  %1349 = vst [vmem:[#allocation11 + $0x48] sm:$0xff] %v1198_v37   ;;  %vm383_vm4 = vcmp.gt.f32.partialorder %v319_v61, 0.0  ;;  %v447_v23 = vmul.f32 0.2, %v319_v61 }
  0x98   :  { %v322_v40 = vadd.f32 %v1786_v18, %v252_v12  ;;  %v323_v33 = vadd.f32 %v1786_v18, %v253_v3  ;;  %v255_v9 = vmul.f32 %v2053_v8, %v1755_v2  ;;  %vm384_vm5 = vcmp.gt.f32.partialorder %v320_v32, 0.0 }
  0x99   :  { %v448_v41 = vmul.f32 0.2, %v320_v32  ;;  %vm385_vm6 = vcmp.gt.f32.partialorder %v321_v22, 0.0  ;;  %v449_v15 = vmul.f32 0.2, %v321_v22  ;;  %v511_v24 = vsel %vm383_vm4, %v319_v61, %v447_v23 }
  0x9a   :  { %vm386_vm7 = vcmp.gt.f32.partialorder %v322_v40, 0.0  ;;  %v450_v38 = vmul.f32 0.2, %v322_v40  ;;  %v324_v25 = vadd.f32 %v1786_v18, %v254_v13  ;;  %vm387_vm8 = vcmp.gt.f32.partialorder %v323_v33, 0.0 }
  0x9b   :  { %v512_v27 = vsel %vm384_vm5, %v320_v32, %v448_v41  ;;  %v513_v31 = vsel %vm385_vm6, %v321_v22, %v449_v15  ;;  %v451_v34 = vmul.f32 0.2, %v323_v33  ;;  %v2054_v19 = vunpack.c.h.bf16 %v1671_v39 }
  0x9c   :  { %v1203_v21 = vpack.c.bf16 %v512_v27, %v511_v24  ;;  %v514_v28 = vsel %vm386_vm7, %v322_v40, %v450_v38  ;;  %vm388_vm9 = vcmp.gt.f32.partialorder %v324_v25, 0.0  ;;  %v452_v26 = vmul.f32 0.2, %v324_v25 }
  0x9d   :  { %v1208_v35 = vpack.c.bf16 %v514_v28, %v513_v31  ;;  %v256_v36 = vmul.f32 %v2054_v19, %v1755_v2  ;;  %v515_v16 = vsel %vm387_vm8, %v323_v33, %v451_v34  ;;  %v325_v11 = vadd.f32 %v1786_v18, %v255_v9 }
  0x9e   :  { %1350 = vst [vmem:[#allocation11 + $0x50] sm:$0xff] %v1203_v21   ;;  %v2055_v20 = vunpack.c.l.bf16 %v1677_v44  ;;  %v2056_v55 = vunpack.c.h.bf16 %v1677_v44  ;;  %v516_v30 = vsel %vm388_vm9, %v324_v25, %v452_v26  ;;  %v2057_v39 = vunpack.c.l.bf16 %v1679_v45 }
  0x9f   :  { %1351 = vst [vmem:[#allocation11 + $0x58] sm:$0xff] %v1208_v35   ;;  %v326_v42 = vadd.f32 %v1786_v18, %v256_v36  ;;  %v2058_v58 = vunpack.c.h.bf16 %v1679_v45  ;;  %v1213_v49 = vpack.c.bf16 %v516_v30, %v515_v16  ;;  %vm389_vm10 = vcmp.gt.f32.partialorder %v325_v11, 0.0 }
  0xa0   :  { %v257_v6 = vmul.f32 %v2055_v20, %v1755_v2  ;;  %v258_v29 = vmul.f32 %v2056_v55, %v1755_v2  ;;  %v259_v54 = vmul.f32 %v2057_v39, %v1755_v2  ;;  %v453_v12 = vmul.f32 0.2, %v325_v11 }
  0xa1   :  { %v260_v1 = vmul.f32 %v2058_v58, %v1755_v2  ;;  %vm390_vm11 = vcmp.gt.f32.partialorder %v326_v42, 0.0  ;;  %v454_v44 = vmul.f32 0.2, %v326_v42  ;;  %1352 = vst [vmem:[#allocation11 + $0x60] sm:$0xff] %v1213_v49   ;;  %v2059_v23 = vunpack.c.l.bf16 %v1685_v50 }
  0xa2   :  { %v327_v14 = vadd.f32 %v1786_v18, %v257_v6  ;;  %v328_v3 = vadd.f32 %v1786_v18, %v258_v29  ;;  %v329_v37 = vadd.f32 %v1786_v18, %v259_v54  ;;  %v517_v61 = vsel %vm389_vm10, %v325_v11, %v453_v12 }
  0xa3   :  { %v330_v4 = vadd.f32 %v1786_v18, %v260_v1  ;;  %v518_v13 = vsel %vm390_vm11, %v326_v42, %v454_v44  ;;  %v261_v41 = vmul.f32 %v2059_v23, %v1755_v2  ;;  %v2060_v15 = vunpack.c.h.bf16 %v1685_v50 }
  0xa4   :  { %vm391_vm12 = vcmp.gt.f32.partialorder %v327_v14, 0.0  ;;  %v455_v32 = vmul.f32 0.2, %v327_v14  ;;  %vm392_vm13 = vcmp.gt.f32.partialorder %v328_v3, 0.0  ;;  %v456_v45 = vmul.f32 0.2, %v328_v3 }
  0xa5   :  { %vm393_vm14 = vcmp.gt.f32.partialorder %v329_v37, 0.0  ;;  %v1218_v22 = vpack.c.bf16 %v518_v13, %v517_v61  ;;  %vm394_vm15 = vcmp.gt.f32.partialorder %v330_v4, 0.0  ;;  %v457_v33 = vmul.f32 0.2, %v329_v37 }
  0xa6   :  { %v519_v40 = vsel %vm391_vm12, %v327_v14, %v455_v32  ;;  %v520_v8 = vsel %vm392_vm13, %v328_v3, %v456_v45  ;;  %v458_v9 = vmul.f32 0.2, %v330_v4  ;;  %v262_v38 = vmul.f32 %v2060_v15, %v1755_v2 }
  0xa7   :  { %1353 = vst [vmem:[#allocation11 + $0x68] sm:$0xff] %v1218_v22   ;;  %v1223_v24 = vpack.c.bf16 %v520_v8, %v519_v40  ;;  %v521_v27 = vsel %vm393_vm14, %v329_v37, %v457_v33  ;;  %v2061_v25 = vunpack.c.l.bf16 %v1687_v51  ;;  %v2062_v31 = vunpack.c.h.bf16 %v1687_v51 }
  0xa8   :  { %v522_v34 = vsel %vm394_vm15, %v330_v4, %v458_v9  ;;  %v331_v35 = vadd.f32 %v1786_v18, %v261_v41  ;;  %v332_v26 = vadd.f32 %v1786_v18, %v262_v38  ;;  %v2063_v50 = vunpack.c.l.bf16 %v1693_v56 }
  0xa9   :  { %v263_v21 = vmul.f32 %v2061_v25, %v1755_v2  ;;  %v264_v28 = vmul.f32 %v2062_v31, %v1755_v2  ;;  %1354 = vst [vmem:[#allocation11 + $0x70] sm:$0xff] %v1223_v24   ;;  %v1228_v36 = vpack.c.bf16 %v522_v34, %v521_v27  ;;  %v2064_v20 = vunpack.c.h.bf16 %v1693_v56 }
  0xaa   :  { %v265_v19 = vmul.f32 %v2063_v50, %v1755_v2  ;;  %vm395_vm0 = vcmp.gt.f32.partialorder %v331_v35, 0.0  ;;  %vm396_vm1 = vcmp.gt.f32.partialorder %v332_v26, 0.0  ;;  %v459_v6 = vmul.f32 0.2, %v331_v35 }
  0xab   :  { %v333_v16 = vadd.f32 %v1786_v18, %v263_v21  ;;  %v334_v11 = vadd.f32 %v1786_v18, %v264_v28  ;;  %v266_v51 = vmul.f32 %v2064_v20, %v1755_v2  ;;  %v460_v55 = vmul.f32 0.2, %v332_v26  ;;  %1355 = vst [vmem:[#allocation11 + $0x78] sm:$0xff] %v1228_v36  }
  0xac   :  { %v523_v42 = vsel %vm395_vm0, %v331_v35, %v459_v6  ;;  %v335_v54 = vadd.f32 %v1786_v18, %v265_v19  ;;  %v2065_v56 = vunpack.c.l.bf16 %v1695_v57  ;;  %v2066_v61 = vunpack.c.h.bf16 %v1695_v57 }
  0xad   :  { %vm397_vm2 = vcmp.gt.f32.partialorder %v333_v16, 0.0  ;;  %vm398_vm3 = vcmp.gt.f32.partialorder %v334_v11, 0.0  ;;  %v461_v29 = vmul.f32 0.2, %v333_v16  ;;  %v462_v30 = vmul.f32 0.2, %v334_v11 }
  0xae   :  { %v524_v39 = vsel %vm396_vm1, %v332_v26, %v460_v55  ;;  %v336_v58 = vadd.f32 %v1786_v18, %v266_v51  ;;  %v267_v14 = vmul.f32 %v2065_v56, %v1755_v2  ;;  %vm399_vm4 = vcmp.gt.f32.partialorder %v335_v54, 0.0 }
  0xaf   :  { %v1233_v1 = vpack.c.bf16 %v524_v39, %v523_v42  ;;  %v525_v49 = vsel %vm397_vm2, %v333_v16, %v461_v29  ;;  %v526_v12 = vsel %vm398_vm3, %v334_v11, %v462_v30  ;;  %v463_v3 = vmul.f32 0.2, %v335_v54 }
  0xb0   :  { %v1238_v44 = vpack.c.bf16 %v526_v12, %v525_v49  ;;  %vm400_vm5 = vcmp.gt.f32.partialorder %v336_v58, 0.0  ;;  %v464_v37 = vmul.f32 0.2, %v336_v58  ;;  %v268_v32 = vmul.f32 %v2066_v61, %v1755_v2 }
  0xb1   :  { %1356 = vst [vmem:[#allocation11 + $0x80] sm:$0xff] %v1233_v1   ;;  %v337_v4 = vadd.f32 %v1786_v18, %v267_v14  ;;  %v2067_v13 = vunpack.c.l.bf16 %v1701_v62  ;;  %v527_v22 = vsel %vm399_vm4, %v335_v54, %v463_v3  ;;  %v2068_v40 = vunpack.c.h.bf16 %v1701_v62 }
  0xb2   :  { %1357 = vst [vmem:[#allocation11 + $0x88] sm:$0xff] %v1238_v44   ;;  %v2069_v8 = vunpack.c.l.bf16 %v1703_v63  ;;  %v2070_v57 = vunpack.c.h.bf16 %v1703_v63  ;;  %v528_v41 = vsel %vm400_vm5, %v336_v58, %v464_v37  ;;  %v338_v15 = vadd.f32 %v1786_v18, %v268_v32 }
  0xb3   :  { %v269_v45 = vmul.f32 %v2067_v13, %v1755_v2  ;;  %v270_v33 = vmul.f32 %v2068_v40, %v1755_v2  ;;  %vm401_vm6 = vcmp.gt.f32.partialorder %v337_v4, 0.0  ;;  %v465_v38 = vmul.f32 0.2, %v337_v4 }
  0xb4   :  { %v271_v9 = vmul.f32 %v2069_v8, %v1755_v2  ;;  %v272_v23 = vmul.f32 %v2070_v57, %v1755_v2  ;;  %v1243_v24 = vpack.c.bf16 %v528_v41, %v527_v22  ;;  %vm402_vm7 = vcmp.gt.f32.partialorder %v338_v15, 0.0 }
  0xb5   :  { %v339_v27 = vadd.f32 %v1786_v18, %v269_v45  ;;  %v340_v25 = vadd.f32 %v1786_v18, %v270_v33  ;;  %v466_v21 = vmul.f32 0.2, %v338_v15  ;;  %v529_v31 = vsel %vm401_vm6, %v337_v4, %v465_v38 }
  0xb6   :  { %v341_v62 = vadd.f32 %v1786_v18, %v271_v9  ;;  %v342_v28 = vadd.f32 %v1786_v18, %v272_v23  ;;  %1358 = vst [vmem:[#allocation11 + $0x90] sm:$0xff] %v1243_v24   ;;  %v2071_v51 = vunpack.c.l.bf16 %v1709_v5  ;;  %v2072_v55 = vunpack.c.h.bf16 %v1709_v5 }
  0xb7   :  { %vm403_vm8 = vcmp.gt.f32.partialorder %v339_v27, 0.0  ;;  %vm404_vm9 = vcmp.gt.f32.partialorder %v340_v25, 0.0  ;;  %v467_v63 = vmul.f32 0.2, %v339_v27  ;;  %v468_v34 = vmul.f32 0.2, %v340_v25 }
  0xb8   :  { %v530_v35 = vsel %vm402_vm7, %v338_v15, %v466_v21  ;;  %vm405_vm10 = vcmp.gt.f32.partialorder %v341_v62, 0.0  ;;  %vm406_vm11 = vcmp.gt.f32.partialorder %v342_v28, 0.0  ;;  %v469_v26 = vmul.f32 0.2, %v341_v62 }
  0xb9   :  { %v1248_v50 = vpack.c.bf16 %v530_v35, %v529_v31  ;;  %v531_v19 = vsel %vm403_vm8, %v339_v27, %v467_v63  ;;  %v532_v36 = vsel %vm404_vm9, %v340_v25, %v468_v34  ;;  %v470_v16 = vmul.f32 0.2, %v342_v28 }
  0xba   :  { %v1253_v11 = vpack.c.bf16 %v532_v36, %v531_v19  ;;  %v533_v20 = vsel %vm405_vm10, %v341_v62, %v469_v26  ;;  %v273_v6 = vmul.f32 %v2071_v51, %v1755_v2  ;;  %v274_v29 = vmul.f32 %v2072_v55, %v1755_v2 }
  0xbb   :  { %1359 = vst [vmem:[#allocation11 + $0x98] sm:$0xff] %v1248_v50   ;;  %v534_v30 = vsel %vm406_vm11, %v342_v28, %v470_v16  ;;  %v2073_v42 = vunpack.c.l.bf16 %v1711_v7  ;;  %v2074_v54 = vunpack.c.h.bf16 %v1711_v7  ;;  %v2075_v1 = vunpack.c.l.bf16 %v1717_v59 }
  0xbc   :  { %1360 = vst [vmem:[#allocation11 + $0xa0] sm:$0xff] %v1253_v11   ;;  %v1258_v12 = vpack.c.bf16 %v534_v30, %v533_v20  ;;  %v343_v56 = vadd.f32 %v1786_v18, %v273_v6  ;;  %v344_v5 = vadd.f32 %v1786_v18, %v274_v29  ;;  %v2076_v14 = vunpack.c.h.bf16 %v1717_v59 }
  0xbd   :  { %v275_v39 = vmul.f32 %v2073_v42, %v1755_v2  ;;  %v276_v58 = vmul.f32 %v2074_v54, %v1755_v2  ;;  %v277_v49 = vmul.f32 %v2075_v1, %v1755_v2  ;;  %v2077_v61 = vunpack.c.l.bf16 %v1719_v0 }
  0xbe   :  { %v278_v44 = vmul.f32 %v2076_v14, %v1755_v2  ;;  %1361 = vst [vmem:[#allocation11 + $0xa8] sm:$0xff] %v1258_v12   ;;  %vm407_vm12 = vcmp.gt.f32.partialorder %v343_v56, 0.0  ;;  %vm408_vm13 = vcmp.gt.f32.partialorder %v344_v5, 0.0  ;;  %v471_v4 = vmul.f32 0.2, %v343_v56 }
  0xbf   :  { %v345_v3 = vadd.f32 %v1786_v18, %v275_v39  ;;  %v346_v37 = vadd.f32 %v1786_v18, %v276_v58  ;;  %v347_v7 = vadd.f32 %v1786_v18, %v277_v49  ;;  %v279_v32 = vmul.f32 %v2077_v61, %v1755_v2 }
  0xc0   :  { %v472_v13 = vmul.f32 0.2, %v344_v5  ;;  %v535_v22 = vsel %vm407_vm12, %v343_v56, %v471_v4  ;;  %v348_v33 = vadd.f32 %v1786_v18, %v278_v44  ;;  %v2078_v38 = vunpack.c.h.bf16 %v1719_v0 }
  0xc1   :  { %vm409_vm14 = vcmp.gt.f32.partialorder %v345_v3, 0.0  ;;  %vm410_vm15 = vcmp.gt.f32.partialorder %v346_v37, 0.0  ;;  %v473_v45 = vmul.f32 0.2, %v345_v3  ;;  %v474_v59 = vmul.f32 0.2, %v346_v37 }
  0xc2   :  { %v536_v40 = vsel %vm408_vm13, %v344_v5, %v472_v13  ;;  %vm411_vm0 = vcmp.gt.f32.partialorder %v347_v7, 0.0  ;;  %v475_v23 = vmul.f32 0.2, %v347_v7  ;;  %vm412_vm1 = vcmp.gt.f32.partialorder %v348_v33, 0.0 }
  0xc3   :  { %v1263_v8 = vpack.c.bf16 %v536_v40, %v535_v22  ;;  %v537_v9 = vsel %vm409_vm14, %v345_v3, %v473_v45  ;;  %v538_v57 = vsel %vm410_vm15, %v346_v37, %v474_v59  ;;  %v476_v15 = vmul.f32 0.2, %v348_v33 }
  0xc4   :  { %v1268_v41 = vpack.c.bf16 %v538_v57, %v537_v9  ;;  %v280_v24 = vmul.f32 %v2078_v38, %v1755_v2  ;;  %v539_v27 = vsel %vm411_vm0, %v347_v7, %v475_v23  ;;  %v349_v25 = vadd.f32 %v1786_v18, %v279_v32 }
  0xc5   :  { %1362 = vst [vmem:[#allocation11 + $0xb0] sm:$0xff] %v1263_v8   ;;  %v2079_v62 = vunpack.c.l.bf16 %v1725_v10  ;;  %v2080_v31 = vunpack.c.h.bf16 %v1725_v10  ;;  %v540_v63 = vsel %vm412_vm1, %v348_v33, %v476_v15  ;;  %v2081_v0 = vunpack.c.l.bf16 %v1731_v53 }
  0xc6   :  { %1363 = vst [vmem:[#allocation11 + $0xb8] sm:$0xff] %v1268_v41   ;;  %v350_v34 = vadd.f32 %v1786_v18, %v280_v24  ;;  %v2082_v26 = vunpack.c.h.bf16 %v1731_v53  ;;  %v1273_v19 = vpack.c.bf16 %v540_v63, %v539_v27  ;;  %vm413_vm2 = vcmp.gt.f32.partialorder %v349_v25, 0.0 }
  0xc7   :  { %v281_v21 = vmul.f32 %v2079_v62, %v1755_v2  ;;  %v282_v28 = vmul.f32 %v2080_v31, %v1755_v2  ;;  %v283_v35 = vmul.f32 %v2081_v0, %v1755_v2  ;;  %v477_v36 = vmul.f32 0.2, %v349_v25 }
  0xc8   :  { %v284_v50 = vmul.f32 %v2082_v26, %v1755_v2  ;;  %vm414_vm3 = vcmp.gt.f32.partialorder %v350_v34, 0.0  ;;  %v478_v10 = vmul.f32 0.2, %v350_v34  ;;  %1364 = vst [vmem:[#allocation11 + $0xc0] sm:$0xff] %v1273_v19   ;;  %v2083_v1 = vunpack.c.l.bf16 %v1733_v52 }
  0xc9   :  { %v351_v16 = vadd.f32 %v1786_v18, %v281_v21  ;;  %v352_v11 = vadd.f32 %v1786_v18, %v282_v28  ;;  %v353_v20 = vadd.f32 %v1786_v18, %v283_v35  ;;  %v541_v51 = vsel %vm413_vm2, %v349_v25, %v477_v36 }
  0xca   :  { %v354_v55 = vadd.f32 %v1786_v18, %v284_v50  ;;  %v542_v29 = vsel %vm414_vm3, %v350_v34, %v478_v10  ;;  %v285_v49 = vmul.f32 %v2083_v1, %v1755_v2  ;;  %v286_v12 = vmul.f32 %v1137_v43, %v1755_v2 }
  0xcb   :  { %vm415_vm4 = vcmp.gt.f32.partialorder %v351_v16, 0.0  ;;  %v479_v6 = vmul.f32 0.2, %v351_v16  ;;  %vm416_vm5 = vcmp.gt.f32.partialorder %v352_v11, 0.0  ;;  %v480_v53 = vmul.f32 0.2, %v352_v11 }
  0xcc   :  { %vm417_vm6 = vcmp.gt.f32.partialorder %v353_v20, 0.0  ;;  %v1278_v30 = vpack.c.bf16 %v542_v29, %v541_v51  ;;  %vm418_vm7 = vcmp.gt.f32.partialorder %v354_v55, 0.0  ;;  %v481_v39 = vmul.f32 0.2, %v353_v20 }
  0xcd   :  { %v543_v42 = vsel %vm415_vm4, %v351_v16, %v479_v6  ;;  %v544_v54 = vsel %vm416_vm5, %v352_v11, %v480_v53  ;;  %v482_v58 = vmul.f32 0.2, %v354_v55  ;;  %v287_v14 = vmul.f32 %v1140_v48, %v1755_v2 }
  0xce   :  { %1365 = vst [vmem:[#allocation11 + $0xc8] sm:$0xff] %v1278_v30   ;;  %v1283_v56 = vpack.c.bf16 %v544_v54, %v543_v42  ;;  %v545_v5 = vsel %vm417_vm6, %v353_v20, %v481_v39  ;;  %v2084_v44 = vunpack.c.h.bf16 %v1739_v17  ;;  %v355_v7 = vadd.f32 %v1786_v18, %v285_v49 }
  0xcf   :  { %v546_v37 = vsel %vm418_vm7, %v354_v55, %v482_v58  ;;  %v356_v61 = vadd.f32 %v1786_v18, %v286_v12  ;;  %v289_v43 = vmul.f32 %v1144_v60, %v1755_v2  ;;  %v357_v32 = vadd.f32 %v1786_v18, %v287_v14 }
  0xd0   :  { %v288_v3 = vmul.f32 %v2084_v44, %v1755_v2  ;;  %1366 = vst [vmem:[#allocation11 + $0xd0] sm:$0xff] %v1283_v56   ;;  %v1288_v52 = vpack.c.bf16 %v546_v37, %v545_v5  ;;  %v2085_v48 = vunpack.c.h.bf16 %v1744_v47  ;;  %vm419_vm8 = vcmp.gt.f32.partialorder %v355_v7, 0.0 }
  0xd1   :  { %vm420_vm9 = vcmp.gt.f32.partialorder %v356_v61, 0.0  ;;  %v483_v13 = vmul.f32 0.2, %v355_v7  ;;  %v484_v45 = vmul.f32 0.2, %v356_v61  ;;  %vm421_vm10 = vcmp.gt.f32.partialorder %v357_v32, 0.0 }
  0xd2   :  { %v358_v4 = vadd.f32 %v1786_v18, %v288_v3  ;;  %v290_v17 = vmul.f32 %v2085_v48, %v1755_v2  ;;  %1367 = vst [vmem:[#allocation11 + $0xd8] sm:$0xff] %v1288_v52   ;;  %v485_v59 = vmul.f32 0.2, %v357_v32  ;;  %v359_v33 = vadd.f32 %v1786_v18, %v289_v43 }
  0xd3   :  { %v547_v60 = vsel %vm419_vm8, %v355_v7, %v483_v13  ;;  %v548_v40 = vsel %vm420_vm9, %v356_v61, %v484_v45  ;;  %v2086_v47 = vunpack.c.l.bf16 %v1746_v46  ;;  %v2087_v27 = vunpack.c.h.bf16 %v1746_v46 }
  0xd4   :  { %vm422_vm11 = vcmp.gt.f32.partialorder %v358_v4, 0.0  ;;  %v486_v22 = vmul.f32 0.2, %v358_v4  ;;  %v360_v8 = vadd.f32 %v1786_v18, %v290_v17  ;;  %v1293_v9 = vpack.c.bf16 %v548_v40, %v547_v60 }
  0xd5   :  { %v549_v57 = vsel %vm421_vm10, %v357_v32, %v485_v59  ;;  %v291_v41 = vmul.f32 %v2086_v47, %v1755_v2  ;;  %vm423_vm12 = vcmp.gt.f32.partialorder %v359_v33, 0.0  ;;  %v487_v38 = vmul.f32 0.2, %v359_v33 }
  0xd6   :  { %v550_v23 = vsel %vm422_vm11, %v358_v4, %v486_v22  ;;  %vm424_vm13 = vcmp.gt.f32.partialorder %v360_v8, 0.0  ;;  %1368 = vst [vmem:[#allocation11 + $0xe0] sm:$0xff] %v1293_v9   ;;  %v488_v24 = vmul.f32 0.2, %v360_v8  ;;  %v292_v25 = vmul.f32 %v2087_v27, %v1755_v2 }
  0xd7   :  { %v1298_v15 = vpack.c.bf16 %v550_v23, %v549_v57  ;;  %v361_v62 = vadd.f32 %v1786_v18, %v291_v41  ;;  %v551_v21 = vsel %vm423_vm12, %v359_v33, %v487_v38 }
  0xd8   :  { %v552_v31 = vsel %vm424_vm13, %v360_v8, %v488_v24  ;;  %v362_v28 = vadd.f32 %v1786_v18, %v292_v25 }
  0xd9   :  { %1369 = vst [vmem:[#allocation11 + $0xe8] sm:$0xff] %v1298_v15   ;;  %vm425_vm14 = vcmp.gt.f32.partialorder %v361_v62, 0.0  ;;  %v489_v63 = vmul.f32 0.2, %v361_v62  ;;  %v1303_v34 = vpack.c.bf16 %v552_v31, %v551_v21 }
  0xda   :  { %vm426_vm15 = vcmp.gt.f32.partialorder %v362_v28, 0.0  ;;  %v490_v0 = vmul.f32 0.2, %v362_v28 }
  0xdb   :  { %v553_v35 = vsel %vm425_vm14, %v361_v62, %v489_v63  ;;  %1370 = vst [vmem:[#allocation11 + $0xf0] sm:$0xff] %v1303_v34  }
  0xdc   :  { %v554_v26 = vsel %vm426_vm15, %v362_v28, %v490_v0 }
  0xdd   :  { %v1308_v50 = vpack.c.bf16 %v554_v26, %v553_v35 }
  0xdf   :  { %1371 = vst [vmem:[#allocation11 + $0xf8] sm:$0xff] %v1308_v50  }
  0xe0   :  { %1503 = shalt.err (!%p1500_p2)
}
  0xe1   :  { %s1504_s9 = scalar_lea.hbm %s2043_s5, 4096 }
  0xe2   :  { %p1505_p3 = scmp.ne.s32.totalorder %s2043_s5, %s1504_s9  ;;  %p1508_p4 = scmp.lt.u32.totalorder %s1504_s9, %s2043_s5 }
  0xe4   :  { %p1510_p5 = pnand %p1508_p4, %p1505_p3 }
  0xe6   :  { %1513 = shalt.err (!%p1510_p5)
}
  0xe7   :  { %886 = dma.vmem_to_hbm [thread:$0]  %s881_s30, 4096, %s2043_s5, [#allocation4], %s1525_s3, %s1525_s3, %s1526_s21  }
  0xe8   :  { %1520 = dma.done.wait [#allocation4], 4096  }
  0xe9   :  { %1521 = vsyncadd [#allocation4], 4294963200 }
  0xea   :  { %890 = vsyncpa [#allocation3], 1 }
  0xeb   :  { %891 = vsyncpa [#allocation6], 1 }
  0xec   :  { %892 = vsyncpa [#allocation9], 1 }
  0xed   :  { %893 = vsyncpa [#allocation4], 1 }

// kernel: anime_discriminator_forward.11
= control target key start
LH: loop header
LB: loop body
LE: loop exit
PB: predicated region body
PF: predicated region fallthrough
CT: control target
= control target key end

     0   :  { %10 = vsyncpa [#allocation3], 0  ;;  %s1046_s0 = inlined_call_operand.hbm [shape: bf16[128,256], index: 0, kind: input, shape index: {}]   ;;  %s1047_s1 = inlined_call_operand.hbm [shape: bf16[256,128], index: 1, kind: input, shape index: {}]   ;;  %s1048_s2 = inlined_call_operand.hbm [shape: bf16[128,128], index: 2, kind: output, shape index: {0}]   ;;  %s1049_s3 = inlined_call_operand.hbm [shape: f32[8,128], index: 3, kind: output, shape index: {1}]   ;;  %s1050_s4 = inlined_call_operand.hbm [shape: f32[8,128], index: 4, kind: output, shape index: {2}]  }
   0x1   :  { %11 = vsyncpa [#allocation6], 0 }
   0x2   :  { %12 = vsyncpa [#allocation4], 0 }
   0x3   :  { %13 = vsyncpa [#allocation9], 0  ;;  %s914_s15 = smov [#allocation2]   ;;  %s796_s19 = scalar_lea.hbm %s1046_s0, 2048 }
   0x4   :  { %s19_s16 = sshll.u32 %s914_s15, 4  ;;  %p797_p0 = scmp.ne.s32.totalorder %s1046_s0, %s796_s19  ;;  %s20_s16 = int_to_ptr.vmem [resolvable:$true] %s19_s16 }
   0x5   :  { %p800_p1 = scmp.lt.u32.totalorder %s796_s19, %s1046_s0 }
   0x7   :  { %p802_p2 = pnand %p800_p1, %p797_p0 }
   0x9   :  { %805 = shalt.err (!%p802_p2)
}
   0xa   :  { %s806_s24 = scalar_lea.vmem %s20_s16, 2048  ;;  %p811_p4 = scmp.lt.s32.totalorder %s20_s16, %s20_s16 }
   0xb   :  { %p807_p3 = scmp.ne.s32.totalorder %s20_s16, %s806_s24  ;;  %p812_p5 = scmp.lt.s32.totalorder %s806_s24, %s806_s24 }
   0xd   :  { %p813_p6 = por %p812_p5, %p811_p4 }
   0xf   :  { %p814_p7 = pnand %p813_p6, %p807_p3 }
  0x11   :  { %817 = shalt.err (!%p814_p7)
}
  0x12   :  { %s915_s25 = smov 128   ;;  %s916_s26 = smov 8  }
  0x13   :  { %25 = dma.hbm_to_vmem [thread:$0]  %s1046_s0, 2048, %s20_s16, [#allocation3], %s915_s25, %s915_s25, %s916_s26  }
  0x14   :  { %s917_s29 = smov [#allocation5]   ;;  %s818_s7 = scalar_lea.hbm %s1047_s1, 2048 }
  0x15   :  { %s31_s30 = sshll.u32 %s917_s29, 4  ;;  %p819_p8 = scmp.ne.s32.totalorder %s1047_s1, %s818_s7  ;;  %s32_s30 = int_to_ptr.vmem [resolvable:$true] %s31_s30 }
  0x16   :  { %p822_p9 = scmp.lt.u32.totalorder %s818_s7, %s1047_s1 }
  0x18   :  { %p824_p10 = pnand %p822_p9, %p819_p8 }
  0x1a   :  { %827 = shalt.err (!%p824_p10)
}
  0x1b   :  { %s828_s12 = scalar_lea.vmem %s32_s30, 2048  ;;  %p833_p12 = scmp.lt.s32.totalorder %s32_s30, %s32_s30 }
  0x1c   :  { %p829_p11 = scmp.ne.s32.totalorder %s32_s30, %s828_s12  ;;  %p834_p13 = scmp.lt.s32.totalorder %s828_s12, %s828_s12 }
  0x1e   :  { %p835_p0 = por %p834_p13, %p833_p12 }
  0x20   :  { %p836_p1 = pnand %p835_p0, %p829_p11 }
  0x22   :  { %839 = shalt.err (!%p836_p1)
}
  0x23   :  { %s918_s0 = smov 64   ;;  %s919_s13 = smov 4  }
  0x24   :  { %37 = dma.hbm_to_vmem [thread:$0]  %s1047_s1, 2048, %s32_s30, [#allocation6], %s918_s0, %s918_s0, %s919_s13  }
  0x25   :  { %906 = dma.done.wait [#allocation3], 2048  }
  0x26   :  { %907 = vsyncadd [#allocation3], 4294965248 }
  0x27   :  { %908 = dma.done.wait [#allocation6], 2048  }
  0x28   :  { %909 = vsyncadd [#allocation6], 4294965248  ;;  %v756_v0 = vld [vmem:[#allocation5 + $0x40] sm:$0xff]   ;;  %v758_v2 = vld [vmem:[#allocation5 + $0x48] sm:$0xff]   ;;  %s920_s1 = smov [#allocation7]  }
  0x29   :  { %v757_v1 = vld [vmem:[#allocation5] sm:$0xff]   ;;  %667 = vmatprep.subr.bf16.mxu0 %v756_v0  ;;  %731 = vmatprep.subr.bf16.mxu1 %v756_v0  ;;  %v759_v3 = vld [vmem:[#allocation5 + $0x8] sm:$0xff]   ;;  %v760_v4 = vld [vmem:[#allocation5 + $0x50] sm:$0xff]   ;;  %s516_s16 = sshll.u32 %s920_s1, 4  ;;  %s517_s16 = int_to_ptr.vmem [resolvable:$true] %s516_s16 }
  0x2a   :  { %668 = vmatpush3.bf16.msra.mxu0 %v757_v1  ;;  %739 = vmatpush3.bf16.msra.mxu1 %v757_v1  ;;  %v761_v5 = vld [vmem:[#allocation5 + $0x10] sm:$0xff]   ;;  %v762_v6 = vld [vmem:[#allocation5 + $0x58] sm:$0xff]   ;;  %v764_v8 = vld [vmem:[#allocation5 + $0x60] sm:$0xff]   ;;  %s840_s17 = scalar_lea.vmem %s517_s16, 1024  ;;  %p845_p3 = scmp.lt.s32.totalorder %s517_s16, %s517_s16 }
  0x2b   :  { %669 = vmatprep.subr.bf16.mxu0 %v758_v2  ;;  %732 = vmatprep.subr.bf16.mxu1 %v758_v2  ;;  %v763_v7 = vld [vmem:[#allocation5 + $0x18] sm:$0xff]   ;;  %v765_v9 = vld [vmem:[#allocation5 + $0x20] sm:$0xff]   ;;  %v766_v10 = vld [vmem:[#allocation5 + $0x68] sm:$0xff]   ;;  %p841_p2 = scmp.ne.s32.totalorder %s517_s16, %s840_s17  ;;  %p846_p4 = scmp.lt.s32.totalorder %s840_s17, %s840_s17 }
  0x2c   :  { %v774_v11 = vld [vmem:[#allocation2 + $0x4] ss:$8 sps:$4 sm:$0xff]   ;;  %v768_v14 = vld [vmem:[#allocation5 + $0x70] sm:$0xff]   ;;  %v770_v16 = vld [vmem:[#allocation5 + $0x78] sm:$0xff]  }
  0x2d   :  { %v767_v12 = vld [vmem:[#allocation5 + $0x28] sm:$0xff]   ;;  %301 = vmatprep.mubr.bf16.mxu0 %v774_v11  ;;  %v769_v15 = vld [vmem:[#allocation5 + $0x30] sm:$0xff]   ;;  %v771_v17 = vld [vmem:[#allocation5 + $0x38] sm:$0xff]   ;;  %p847_p5 = por %p846_p4, %p845_p3 }
  0x2e   :  { %670 = vmatpush3.bf16.msra.mxu0 %v759_v3  ;;  %740 = vmatpush3.bf16.msra.mxu1 %v759_v3  ;;  %v780_v13 = vld [vmem:[#allocation2 + $0x44] ss:$8 sps:$4 sm:$0xff]   ;;  %v772_v18 = vld [vmem:[#allocation2] ss:$8 sps:$4 sm:$0xff]   ;;  %v775_v20 = vld [vmem:[#allocation2 + $0x14] ss:$8 sps:$4 sm:$0xff]  }
  0x2f   :  { %671 = vmatprep.subr.bf16.mxu0 %v760_v4  ;;  %733 = vmatprep.subr.bf16.mxu1 %v760_v4  ;;  %v778_v19 = vld [vmem:[#allocation2 + $0x40] ss:$8 sps:$4 sm:$0xff]   ;;  %v784_v21 = vld [vmem:[#allocation2 + $0x54] ss:$8 sps:$4 sm:$0xff]   ;;  %v777_v22 = vld [vmem:[#allocation2 + $0x10] ss:$8 sps:$4 sm:$0xff]   ;;  %p848_p6 = pnand %p847_p5, %p841_p2 }
  0x30   :  { %333 = vmatprep.mubr.bf16.mxu1 %v780_v13  ;;  %v786_v23 = vld [vmem:[#allocation2 + $0x50] ss:$8 sps:$4 sm:$0xff]   ;;  %v781_v24 = vld [vmem:[#allocation2 + $0x24] ss:$8 sps:$4 sm:$0xff]   ;;  %v783_v26 = vld [vmem:[#allocation2 + $0x20] ss:$8 sps:$4 sm:$0xff]  }
  0x31   :  { %v790_v25 = vld [vmem:[#allocation2 + $0x64] ss:$8 sps:$4 sm:$0xff]   ;;  %v792_v27 = vld [vmem:[#allocation2 + $0x60] ss:$8 sps:$4 sm:$0xff]   ;;  %v787_v28 = vld [vmem:[#allocation2 + $0x34] ss:$8 sps:$4 sm:$0xff]  }
  0x32   :  { %672 = vmatpush3.bf16.msra.mxu0 %v761_v5  ;;  %741 = vmatpush3.bf16.msra.mxu1 %v761_v5  ;;  %v793_v29 = vld [vmem:[#allocation2 + $0x74] ss:$8 sps:$4 sm:$0xff]   ;;  %v789_v30 = vld [vmem:[#allocation2 + $0x30] ss:$8 sps:$4 sm:$0xff]  }
  0x33   :  { %673 = vmatprep.subr.bf16.mxu0 %v762_v6  ;;  %734 = vmatprep.subr.bf16.mxu1 %v762_v6  ;;  %v795_v31 = vld [vmem:[#allocation2 + $0x70] ss:$8 sps:$4 sm:$0xff]  }
  0x36   :  { %674 = vmatpush3.bf16.msra.mxu0 %v763_v7  ;;  %742 = vmatpush3.bf16.msra.mxu1 %v763_v7 }
  0x37   :  { %675 = vmatprep.subr.bf16.mxu0 %v764_v8  ;;  %735 = vmatprep.subr.bf16.mxu1 %v764_v8 }
  0x3a   :  { %676 = vmatpush3.bf16.msra.mxu0 %v765_v9  ;;  %743 = vmatpush3.bf16.msra.mxu1 %v765_v9 }
  0x3b   :  { %677 = vmatprep.subr.bf16.mxu0 %v766_v10  ;;  %736 = vmatprep.subr.bf16.mxu1 %v766_v10 }
  0x3e   :  { %678 = vmatpush3.bf16.msra.mxu0 %v767_v12  ;;  %744 = vmatpush3.bf16.msra.mxu1 %v767_v12 }
  0x3f   :  { %679 = vmatprep.subr.bf16.mxu0 %v768_v14  ;;  %737 = vmatprep.subr.bf16.mxu1 %v768_v14 }
  0x42   :  { %680 = vmatpush3.bf16.msra.mxu0 %v769_v15  ;;  %745 = vmatpush3.bf16.msra.mxu1 %v769_v15 }
  0x43   :  { %681 = vmatprep.subr.bf16.mxu0 %v770_v16  ;;  %738 = vmatprep.subr.bf16.mxu1 %v770_v16 }
  0x46   :  { %682 = vmatpush3.bf16.msra.mxu0 %v771_v17  ;;  %746 = vmatpush3.bf16.msra.mxu1 %v771_v17 }
  0x49   :  { %302 = vmatmul.mubr.bf16.vlgmr.msra.gmra.mrb[0].mxu0 %v772_v18  ;;  %334 = vmatmul.mubr.bf16.vlgmr.msra.gmra.mrb[0].mxu1 %v778_v19 }
  0x4a   :  { %309 = vmatprep.mubr.bf16.mxu0 %v775_v20  ;;  %341 = vmatprep.mubr.bf16.mxu1 %v784_v21 }
  0x51   :  { %310 = vmatmul.mubr.bf16.gmra.mrb[4].mxu0 %v777_v22  ;;  %342 = vmatmul.mubr.bf16.gmra.mrb[4].mxu1 %v786_v23 }
  0x52   :  { %317 = vmatprep.mubr.bf16.mxu0 %v781_v24  ;;  %349 = vmatprep.mubr.bf16.mxu1 %v790_v25 }
  0x59   :  { %318 = vmatmul.mubr.bf16.gmra.mrb[8].mxu0 %v783_v26  ;;  %350 = vmatmul.mubr.bf16.gmra.mrb[8].mxu1 %v792_v27 }
  0x5a   :  { %325 = vmatprep.mubr.bf16.mxu0 %v787_v28  ;;  %357 = vmatprep.mubr.bf16.mxu1 %v793_v29 }
  0x61   :  { %326 = vmatmul.mubr.bf16.gmra.mrb[12].mxu0 %v789_v30  ;;  %358 = vmatmul.mubr.bf16.gmra.mrb[12].mxu1 %v795_v31 }
 0x11c   :  { %v683_v32 = vpop.f32.mrb[0].mxu0  ;;  %v707_v33 = vpop.f32.mrb[0].mxu1 }
 0x11d   :  { %v684_v34 = vpop.f32.mrb[1].mxu0  ;;  %v708_v35 = vpop.f32.mrb[1].mxu1 }
 0x11e   :  { %v685_v36 = vadd.f32 %v684_v34, %v683_v32  ;;  %v686_v37 = vpop.f32.mrb[2].mxu0  ;;  %v975_v38 = vadd.f32 %v708_v35, %v707_v33  ;;  %v710_v39 = vpop.f32.mrb[2].mxu1 }
 0x11f   :  { %v687_v40 = vpop.f32.mrb[3].mxu0  ;;  %v711_v41 = vpop.f32.mrb[3].mxu1 }
 0x120   :  { %v688_v42 = vadd.f32 %v687_v40, %v686_v37  ;;  %v977_v43 = vadd.f32 %v711_v41, %v710_v39  ;;  %v467_v44 = vmul.f32 %v685_v36, %v685_v36 }
 0x122   :  { %v623_v45 = vpack.c.bf16 %v688_v42, %v685_v36  ;;  %v446_v46 = vadd.f32 %v688_v42, %v685_v36  ;;  %v468_v47 = vmul.f32 %v688_v42, %v688_v42  ;;  %v643_v48 = vpack.c.bf16 %v977_v43, %v975_v38 }
 0x124   :  { %624 = vst [vmem:[#allocation7] sm:$0xff] %v623_v45   ;;  %v483_v49 = vadd.f32 %v468_v47, %v467_v44  ;;  %v689_v50 = vpop.f32.mrb[4].mxu0  ;;  %663 = vst [vmem:[#allocation7 + $0x20] sm:$0xff] %v643_v48   ;;  %v713_v51 = vpop.f32.mrb[4].mxu1  ;;  %v475_v47 = vmul.f32 %v975_v38, %v975_v38 }
 0x125   :  { %v690_v52 = vpop.f32.mrb[5].mxu0  ;;  %v714_v53 = vpop.f32.mrb[5].mxu1 }
 0x126   :  { %v691_v54 = vadd.f32 %v690_v52, %v689_v50  ;;  %v692_v55 = vpop.f32.mrb[6].mxu0  ;;  %v981_v56 = vadd.f32 %v714_v53, %v713_v51  ;;  %v716_v57 = vpop.f32.mrb[6].mxu1  ;;  %v476_v50 = vmul.f32 %v977_v43, %v977_v43 }
 0x127   :  { %v693_v58 = vpop.f32.mrb[7].mxu0  ;;  %v717_v59 = vpop.f32.mrb[7].mxu1 }
 0x128   :  { %v447_v60 = vadd.f32 %v691_v54, %v446_v46  ;;  %v469_v61 = vmul.f32 %v691_v54, %v691_v54  ;;  %v694_v62 = vadd.f32 %v693_v58, %v692_v55  ;;  %v983_v63 = vadd.f32 %v717_v59, %v716_v57 }
 0x12a   :  { %v484_v0 = vadd.f32 %v483_v49, %v469_v61  ;;  %v628_v1 = vpack.c.bf16 %v694_v62, %v691_v54  ;;  %v448_v2 = vadd.f32 %v694_v62, %v447_v60  ;;  %v470_v3 = vmul.f32 %v694_v62, %v694_v62 }
 0x12b   :  { %v648_v4 = vpack.c.bf16 %v983_v63, %v981_v56 }
 0x12c   :  { %660 = vst [vmem:[#allocation7 + $0x8] sm:$0xff] %v628_v1   ;;  %v485_v5 = vadd.f32 %v484_v0, %v470_v3  ;;  %v695_v6 = vpop.f32.mrb[8].mxu0  ;;  %v719_v7 = vpop.f32.mrb[8].mxu1 }
 0x12d   :  { %v696_v8 = vpop.f32.mrb[9].mxu0  ;;  %664 = vst [vmem:[#allocation7 + $0x28] sm:$0xff] %v648_v4   ;;  %v720_v9 = vpop.f32.mrb[9].mxu1 }
 0x12e   :  { %v697_v10 = vadd.f32 %v696_v8, %v695_v6  ;;  %v698_v11 = vpop.f32.mrb[10].mxu0  ;;  %v987_v12 = vadd.f32 %v720_v9, %v719_v7  ;;  %v722_v13 = vpop.f32.mrb[10].mxu1 }
 0x12f   :  { %v699_v14 = vpop.f32.mrb[11].mxu0  ;;  %v723_v15 = vpop.f32.mrb[11].mxu1 }
 0x130   :  { %v449_v16 = vadd.f32 %v697_v10, %v448_v2  ;;  %v471_v17 = vmul.f32 %v697_v10, %v697_v10  ;;  %v700_v18 = vadd.f32 %v699_v14, %v698_v11  ;;  %v724_v19 = vadd.f32 %v723_v15, %v722_v13 }
 0x132   :  { %v486_v20 = vadd.f32 %v485_v5, %v471_v17  ;;  %v633_v21 = vpack.c.bf16 %v700_v18, %v697_v10  ;;  %v450_v22 = vadd.f32 %v700_v18, %v449_v16  ;;  %v472_v23 = vmul.f32 %v700_v18, %v700_v18 }
 0x133   :  { %v653_v24 = vpack.c.bf16 %v724_v19, %v987_v12 }
 0x134   :  { %661 = vst [vmem:[#allocation7 + $0x10] sm:$0xff] %v633_v21   ;;  %v487_v25 = vadd.f32 %v486_v20, %v472_v23  ;;  %v701_v26 = vpop.f32.mrb[12].mxu0  ;;  %v725_v27 = vpop.f32.mrb[12].mxu1 }
 0x135   :  { %v702_v28 = vpop.f32.mrb[13].mxu0  ;;  %665 = vst [vmem:[#allocation7 + $0x30] sm:$0xff] %v653_v24   ;;  %v726_v29 = vpop.f32.mrb[13].mxu1 }
 0x136   :  { %v703_v30 = vadd.f32 %v702_v28, %v701_v26  ;;  %v704_v31 = vpop.f32.mrb[14].mxu0  ;;  %v727_v32 = vadd.f32 %v726_v29, %v725_v27  ;;  %v728_v33 = vpop.f32.mrb[14].mxu1 }
 0x137   :  { %v705_v34 = vpop.f32.mrb[15].mxu0  ;;  %v729_v35 = vpop.f32.mrb[15].mxu1 }
 0x138   :  { %v451_v36 = vadd.f32 %v703_v30, %v450_v22  ;;  %v473_v37 = vmul.f32 %v703_v30, %v703_v30  ;;  %v706_v39 = vadd.f32 %v705_v34, %v704_v31  ;;  %v730_v40 = vadd.f32 %v729_v35, %v728_v33 }
 0x13a   :  { %v488_v41 = vadd.f32 %v487_v25, %v473_v37  ;;  %v638_v42 = vpack.c.bf16 %v706_v39, %v703_v30  ;;  %v452_v44 = vadd.f32 %v706_v39, %v451_v36  ;;  %v474_v45 = vmul.f32 %v706_v39, %v706_v39 }
 0x13b   :  { %v658_v46 = vpack.c.bf16 %v730_v40, %v727_v32 }
 0x13c   :  { %662 = vst [vmem:[#allocation7 + $0x18] sm:$0xff] %v638_v42   ;;  %v453_v48 = vadd.f32 %v975_v38, %v452_v44  ;;  %v489_v49 = vadd.f32 %v488_v41, %v474_v45 }
 0x13d   :  { %666 = vst [vmem:[#allocation7 + $0x38] sm:$0xff] %v658_v46  }
 0x13e   :  { %v454_v51 = vadd.f32 %v977_v43, %v453_v48  ;;  %v490_v52 = vadd.f32 %v489_v49, %v475_v47 }
 0x13f   :  { %851 = shalt.err (!%p848_p6)
}
 0x140   :  { %s852_s20 = scalar_lea.hbm %s1048_s2, 1024 }
 0x141   :  { %p853_p7 = scmp.ne.s32.totalorder %s1048_s2, %s852_s20  ;;  %p856_p8 = scmp.lt.u32.totalorder %s852_s20, %s1048_s2 }
 0x143   :  { %p858_p9 = pnand %p856_p8, %p853_p7 }
 0x145   :  { %861 = shalt.err (!%p858_p9)
}
 0x146   :  { %522 = dma.vmem_to_hbm [thread:$0]  %s517_s16, 1024, %s1048_s2, [#allocation4], %s918_s0, %s918_s0, %s919_s13   ;;  %v477_v38 = vmul.f32 %v981_v56, %v981_v56  ;;  %v491_v43 = vadd.f32 %v490_v52, %v476_v50  ;;  %v455_v53 = vadd.f32 %v981_v56, %v454_v51  ;;  %v478_v54 = vmul.f32 %v983_v63, %v983_v63 }
 0x147   :  { %v479_v59 = vmul.f32 %v987_v12, %v987_v12  ;;  %v480_v0 = vmul.f32 %v724_v19, %v724_v19  ;;  %v481_v1 = vmul.f32 %v727_v32, %v727_v32  ;;  %v482_v5 = vmul.f32 %v730_v40, %v730_v40  ;;  %s921_s2 = smov [#allocation8]   ;;  %s922_s28 = smov [#allocation10]  }
 0x148   :  { %v456_v55 = vadd.f32 %v983_v63, %v455_v53  ;;  %v492_v57 = vadd.f32 %v491_v43, %v477_v38  ;;  %v504_v8 = vlaneseq  ;;  %s529_s27 = sshll.u32 %s921_s2, 4  ;;  %s539_s29 = sshll.u32 %s922_s28, 4  ;;  %s530_s27 = int_to_ptr.vmem [resolvable:$true] %s529_s27  ;;  %s540_s29 = int_to_ptr.vmem [resolvable:$true] %s539_s29 }
 0x149   :  { %s862_s30 = scalar_lea.vmem %s530_s27, 128  ;;  %p867_p11 = scmp.lt.s32.totalorder %s530_s27, %s530_s27 }
 0x14a   :  { %v457_v58 = vadd.f32 %v987_v12, %v456_v55  ;;  %v493_v60 = vadd.f32 %v492_v57, %v478_v54  ;;  %v505_v13 = vshrl.u32 %v504_v8, 7  ;;  %p863_p10 = scmp.ne.s32.totalorder %s530_s27, %s862_s30  ;;  %p868_p12 = scmp.lt.s32.totalorder %s862_s30, %s862_s30 }
 0x14c   :  { %v494_v61 = vadd.f32 %v493_v60, %v479_v59  ;;  %v458_v62 = vadd.f32 %v724_v19, %v457_v58  ;;  %vm506_vm0 = vcmp.eq.s32.totalorder %v505_v13, 0  ;;  %p869_p13 = por %p868_p12, %p867_p11 }
 0x14e   :  { %v495_v2 = vadd.f32 %v494_v61, %v480_v0  ;;  %v459_v3 = vadd.f32 %v727_v32, %v458_v62  ;;  %p870_p0 = pnand %p869_p13, %p863_p10 }
 0x150   :  { %v496_v4 = vadd.f32 %v495_v2, %v481_v1  ;;  %v460_v56 = vadd.f32 %v730_v40, %v459_v3 }
 0x152   :  { %v461_v6 = vrot.slane %v460_v56, 4  ;;  %v497_v7 = vadd.f32 %v496_v4, %v482_v5 }
 0x154   :  { %v462_v63 = vadd.f32 %v461_v6, %v460_v56  ;;  %v498_v9 = vrot.slane %v497_v7, 4 }
 0x156   :  { %v499_v10 = vadd.f32 %v498_v9, %v497_v7  ;;  %v463_v11 = vrot.slane %v462_v63, 2 }
 0x158   :  { %v464_v14 = vadd.f32 %v463_v11, %v462_v63  ;;  %v500_v12 = vrot.slane %v499_v10, 2 }
 0x15a   :  { %v465_v15 = vrot.slane %v464_v14, 1  ;;  %v501_v16 = vadd.f32 %v500_v12, %v499_v10 }
 0x15c   :  { %v466_v17 = vadd.f32 %v465_v15, %v464_v14  ;;  %v502_v18 = vrot.slane %v501_v16, 1 }
 0x15e   :  { %v507_v19 = vsel %vm506_vm0, %v466_v17, 0.0  ;;  %v503_v20 = vadd.f32 %v502_v18, %v501_v16 }
 0x15f   :  { %508 = vst [vmem:[#allocation8] sm:$0xff] %v507_v19 }
 0x160   :  { %873 = shalt.err (!%p870_p0)
}
 0x161   :  { %s874_s7 = scalar_lea.hbm %s1049_s3, 128 }
 0x162   :  { %p875_p1 = scmp.ne.s32.totalorder %s1049_s3, %s874_s7  ;;  %p878_p2 = scmp.lt.u32.totalorder %s874_s7, %s1049_s3 }
 0x164   :  { %p880_p3 = pnand %p878_p2, %p875_p1 }
 0x166   :  { %883 = shalt.err (!%p880_p3)
}
 0x167   :  { %532 = dma.vmem_to_hbm [thread:$0]  %s530_s27, 128, %s1049_s3, [#allocation9]   ;;  %v509_v21 = vsel %vm506_vm0, %v503_v20, 0.0 }
 0x168   :  { %510 = vst [vmem:[#allocation10] sm:$0xff] %v509_v21  ;;  %s884_s13 = scalar_lea.vmem %s540_s29, 128  ;;  %p889_p5 = scmp.lt.s32.totalorder %s540_s29, %s540_s29 }
 0x169   :  { %p885_p4 = scmp.ne.s32.totalorder %s540_s29, %s884_s13  ;;  %p890_p6 = scmp.lt.s32.totalorder %s884_s13, %s884_s13 }
 0x16b   :  { %p891_p7 = por %p890_p6, %p889_p5 }
 0x16d   :  { %p892_p8 = pnand %p891_p7, %p885_p4 }
 0x16f   :  { %895 = shalt.err (!%p892_p8)
}
 0x170   :  { %s896_s1 = scalar_lea.hbm %s1050_s4, 128 }
 0x171   :  { %p897_p9 = scmp.ne.s32.totalorder %s1050_s4, %s896_s1  ;;  %p900_p10 = scmp.lt.u32.totalorder %s896_s1, %s1050_s4 }
 0x173   :  { %p902_p11 = pnand %p900_p10, %p897_p9 }
 0x175   :  { %905 = shalt.err (!%p902_p11)
}
 0x176   :  { %542 = dma.vmem_to_hbm [thread:$0]  %s540_s29, 128, %s1050_s4, [#allocation9]  }
 0x177   :  { %910 = dma.done.wait [#allocation4], 1024  }
 0x178   :  { %911 = vsyncadd [#allocation4], 4294966272 }
 0x179   :  { %912 = dma.done.wait [#allocation9], 256  }
 0x17a   :  { %913 = vsyncadd [#allocation9], 4294967040 }
 0x17b   :  { %552 = vsyncpa [#allocation3], 1 }
 0x17c   :  { %553 = vsyncpa [#allocation6], 1 }
 0x17d   :  { %554 = vsyncpa [#allocation4], 1 }
 0x17e   :  { %555 = vsyncpa [#allocation9], 1 }

// kernel: anime_discriminator_forward.12
= control target key start
LH: loop header
LB: loop body
LE: loop exit
PB: predicated region body
PF: predicated region fallthrough
CT: control target
= control target key end

     0   :  { %10 = vsyncpa [#allocation3], 0  ;;  %s746_s0 = inlined_call_operand.hbm [shape: bf16[128,128], index: 0, kind: input, shape index: {}]   ;;  %s747_s1 = inlined_call_operand.hbm [shape: f32[1,128], index: 1, kind: input, shape index: {}]   ;;  %s748_s2 = inlined_call_operand.hbm [shape: f32[1,128], index: 2, kind: input, shape index: {}]   ;;  %s749_s3 = inlined_call_operand.hbm [shape: f32[1,128], index: 3, kind: input, shape index: {}]   ;;  %s750_s4 = inlined_call_operand.hbm [shape: f32[1,128], index: 4, kind: input, shape index: {}]   ;;  %s751_s5 = inlined_call_operand.hbm [shape: bf16[128,128], index: 5, kind: output, shape index: {}]  }
   0x1   :  { %11 = vsyncpa [#allocation6], 0 }
   0x2   :  { %12 = vsyncpa [#allocation9], 0 }
   0x3   :  { %13 = vsyncpa [#allocation4], 0  ;;  %s586_s18 = smov [#allocation5]   ;;  %s587_s20 = smov [#allocation8]  }
   0x4   :  { %s32_s19 = sshll.u32 %s586_s18, 4  ;;  %s52_s21 = sshll.u32 %s587_s20, 4  ;;  %s33_s19 = int_to_ptr.vmem [resolvable:$true] %s32_s19  ;;  %s53_s21 = int_to_ptr.vmem [resolvable:$true] %s52_s21 }
   0x5   :  { %s446_s24 = scalar_lea.hbm %s747_s1, 16 }
   0x6   :  { %p447_p0 = scmp.ne.s32.totalorder %s747_s1, %s446_s24  ;;  %p450_p1 = scmp.lt.u32.totalorder %s446_s24, %s747_s1 }
   0x8   :  { %p452_p2 = pnand %p450_p1, %p447_p0 }
   0xa   :  { %455 = shalt.err (!%p452_p2)
}
   0xb   :  { %s456_s29 = scalar_lea.vmem %s33_s19, 16  ;;  %s460_s30 = scalar_lea.vmem %s33_s19, 32 }
   0xc   :  { %p457_p3 = scmp.ne.s32.totalorder %s33_s19, %s456_s29  ;;  %p461_p4 = scmp.lt.s32.totalorder %s33_s19, %s33_s19 }
   0xd   :  { %p462_p5 = scmp.lt.s32.totalorder %s460_s30, %s456_s29 }
   0xf   :  { %p463_p6 = por %p462_p5, %p461_p4 }
  0x11   :  { %p464_p7 = pnand %p463_p6, %p457_p3 }
  0x13   :  { %467 = shalt.err (!%p464_p7)
}
  0x14   :  { %35 = dma.hbm_to_vmem [thread:$0]  %s747_s1, 16, %s33_s19, [#allocation6]  }
  0x15   :  { %s468_s10 = scalar_lea.hbm %s749_s3, 16 }
  0x16   :  { %p469_p8 = scmp.ne.s32.totalorder %s749_s3, %s468_s10  ;;  %p472_p9 = scmp.lt.u32.totalorder %s468_s10, %s749_s3 }
  0x18   :  { %p474_p10 = pnand %p472_p9, %p469_p8 }
  0x1a   :  { %477 = shalt.err (!%p474_p10)
}
  0x1b   :  { %s478_s15 = scalar_lea.vmem %s53_s21, 16  ;;  %s482_s16 = scalar_lea.vmem %s53_s21, 32 }
  0x1c   :  { %p479_p11 = scmp.ne.s32.totalorder %s53_s21, %s478_s15  ;;  %p483_p12 = scmp.lt.s32.totalorder %s53_s21, %s53_s21 }
  0x1d   :  { %p484_p13 = scmp.lt.s32.totalorder %s482_s16, %s478_s15 }
  0x1f   :  { %p485_p0 = por %p484_p13, %p483_p12 }
  0x21   :  { %p486_p1 = pnand %p485_p0, %p479_p11 }
  0x23   :  { %489 = shalt.err (!%p486_p1)
}
  0x24   :  { %55 = dma.hbm_to_vmem [thread:$0]  %s749_s3, 16, %s53_s21, [#allocation9]  }
  0x25   :  { %s588_s18 = smov [#allocation2]   ;;  %s490_s23 = scalar_lea.hbm %s746_s0, 1024 }
  0x26   :  { %s19_s19 = sshll.u32 %s588_s18, 4  ;;  %p491_p2 = scmp.ne.s32.totalorder %s746_s0, %s490_s23  ;;  %s20_s19 = int_to_ptr.vmem [resolvable:$true] %s19_s19 }
  0x27   :  { %p494_p3 = scmp.lt.u32.totalorder %s490_s23, %s746_s0 }
  0x29   :  { %p496_p4 = pnand %p494_p3, %p491_p2 }
  0x2b   :  { %499 = shalt.err (!%p496_p4)
}
  0x2c   :  { %s500_s28 = scalar_lea.vmem %s20_s19, 1024  ;;  %p505_p6 = scmp.lt.s32.totalorder %s20_s19, %s20_s19 }
  0x2d   :  { %p501_p5 = scmp.ne.s32.totalorder %s20_s19, %s500_s28  ;;  %p506_p7 = scmp.lt.s32.totalorder %s500_s28, %s500_s28 }
  0x2f   :  { %p507_p8 = por %p506_p7, %p505_p6 }
  0x31   :  { %p508_p9 = pnand %p507_p8, %p501_p5 }
  0x33   :  { %511 = shalt.err (!%p508_p9)
}
  0x34   :  { %s589_s3 = smov 64   ;;  %s590_s21 = smov 4  }
  0x35   :  { %25 = dma.hbm_to_vmem [thread:$0]  %s746_s0, 1024, %s20_s19, [#allocation3], %s589_s3, %s589_s3, %s590_s21  }
  0x36   :  { %s591_s6 = smov [#allocation7]   ;;  %s592_s8 = smov [#allocation10]  }
  0x37   :  { %s42_s7 = sshll.u32 %s591_s6, 4  ;;  %s62_s9 = sshll.u32 %s592_s8, 4  ;;  %s43_s7 = int_to_ptr.vmem [resolvable:$true] %s42_s7  ;;  %s63_s9 = int_to_ptr.vmem [resolvable:$true] %s62_s9 }
  0x38   :  { %s512_s12 = scalar_lea.hbm %s748_s2, 16 }
  0x39   :  { %p513_p10 = scmp.ne.s32.totalorder %s748_s2, %s512_s12  ;;  %p516_p11 = scmp.lt.u32.totalorder %s512_s12, %s748_s2 }
  0x3b   :  { %p518_p12 = pnand %p516_p11, %p513_p10 }
  0x3d   :  { %521 = shalt.err (!%p518_p12)
}
  0x3e   :  { %s522_s0 = scalar_lea.vmem %s43_s7, 16  ;;  %s526_s1 = scalar_lea.vmem %s43_s7, 32 }
  0x3f   :  { %p523_p13 = scmp.ne.s32.totalorder %s43_s7, %s522_s0  ;;  %p527_p0 = scmp.lt.s32.totalorder %s43_s7, %s43_s7 }
  0x40   :  { %p528_p1 = scmp.lt.s32.totalorder %s526_s1, %s522_s0 }
  0x42   :  { %p529_p2 = por %p528_p1, %p527_p0 }
  0x44   :  { %p530_p3 = pnand %p529_p2, %p523_p13 }
  0x46   :  { %533 = shalt.err (!%p530_p3)
}
  0x47   :  { %45 = dma.hbm_to_vmem [thread:$0]  %s748_s2, 16, %s43_s7, [#allocation6]  }
  0x48   :  { %s534_s22 = scalar_lea.hbm %s750_s4, 16 }
  0x49   :  { %p535_p4 = scmp.ne.s32.totalorder %s750_s4, %s534_s22  ;;  %p538_p5 = scmp.lt.u32.totalorder %s534_s22, %s750_s4 }
  0x4b   :  { %p540_p6 = pnand %p538_p5, %p535_p4 }
  0x4d   :  { %543 = shalt.err (!%p540_p6)
}
  0x4e   :  { %s544_s27 = scalar_lea.vmem %s63_s9, 16  ;;  %s548_s28 = scalar_lea.vmem %s63_s9, 32 }
  0x4f   :  { %p545_p7 = scmp.ne.s32.totalorder %s63_s9, %s544_s27  ;;  %p549_p8 = scmp.lt.s32.totalorder %s63_s9, %s63_s9 }
  0x50   :  { %p550_p9 = scmp.lt.s32.totalorder %s548_s28, %s544_s27 }
  0x52   :  { %p551_p10 = por %p550_p9, %p549_p8 }
  0x54   :  { %p552_p11 = pnand %p551_p10, %p545_p7 }
  0x56   :  { %555 = shalt.err (!%p552_p11)
}
  0x57   :  { %65 = dma.hbm_to_vmem [thread:$0]  %s750_s4, 16, %s63_s9, [#allocation9]  }
  0x58   :  { %578 = dma.done.wait [#allocation3], 1024  }
  0x59   :  { %579 = vsyncadd [#allocation3], 4294966272 }
  0x5a   :  { %580 = dma.done.wait [#allocation6], 32  }
  0x5b   :  { %581 = vsyncadd [#allocation6], 4294967264 }
  0x5c   :  { %582 = dma.done.wait [#allocation9], 32  }
  0x5d   :  { %583 = vsyncadd [#allocation9], 4294967264  ;;  %v81_v0 = vld [vmem:[#allocation5] sm:$0x1]  ;;  %v83_v1 = vld [vmem:[#allocation7] sm:$0x1]  ;;  %v128_v8 = vlaneseq }
  0x5e   :  { %v82_v2 = vmul.f32 0.0078125, %v81_v0  ;;  %v84_v3 = vmul.f32 0.0078125, %v83_v1  ;;  %v351_v10 = vld [vmem:[#allocation2] sm:$0xff]   ;;  %v422_v11 = vld [vmem:[#allocation2 + $0x8] sm:$0xff]   ;;  %v423_v13 = vld [vmem:[#allocation2 + $0x10] sm:$0xff]   ;;  %s593_s4 = smov [#allocation11]  }
  0x5f   :  { %v129_v9 = vshrl.u32 %v128_v8, 7  ;;  %v88_v12 = vld [vmem:[#allocation8] sm:$0x1]  ;;  %v424_v15 = vld [vmem:[#allocation2 + $0x18] sm:$0xff]   ;;  %v352_v18 = vunpack.c.l.bf16 %v351_v10  ;;  %v353_v19 = vunpack.c.h.bf16 %v351_v10  ;;  %v356_v20 = vunpack.c.l.bf16 %v422_v11  ;;  %v426_v21 = vld [vmem:[#allocation2 + $0x28] sm:$0xff]   ;;  %s304_s30 = sshll.u32 %s593_s4, 4  ;;  %s305_s30 = int_to_ptr.vmem [resolvable:$true] %s304_s30 }
  0x60   :  { %v85_v4 = vmul.f32 %v82_v2, %v82_v2  ;;  %v425_v16 = vld [vmem:[#allocation2 + $0x20] sm:$0xff]   ;;  %v357_v23 = vunpack.c.h.bf16 %v422_v11  ;;  %v360_v24 = vunpack.c.l.bf16 %v423_v13  ;;  %v361_v25 = vunpack.c.h.bf16 %v423_v13  ;;  %v427_v26 = vld [vmem:[#allocation2 + $0x30] sm:$0xff]   ;;  %v687_v27 = vld [vmem:[#allocation2 + $0x38] sm:$0xff]   ;;  %s556_s6 = scalar_lea.vmem %s305_s30, 1024  ;;  %p561_p13 = scmp.lt.s32.totalorder %s305_s30, %s305_s30 }
  0x61   :  { %v130_v14 = vsub.s32 0, %v129_v9  ;;  %v92_v28 = vld [vmem:[#allocation10] sm:$0x1]  ;;  %v364_v29 = vunpack.c.l.bf16 %v424_v15  ;;  %v365_v30 = vunpack.c.h.bf16 %v424_v15  ;;  %v368_v31 = vunpack.c.l.bf16 %v425_v16  ;;  %p557_p12 = scmp.ne.s32.totalorder %s305_s30, %s556_s6  ;;  %p562_p0 = scmp.lt.s32.totalorder %s556_s6, %s556_s6 }
  0x62   :  { %v86_v5 = vsub.f32 %v84_v3, %v85_v4  ;;  %v369_v32 = vunpack.c.h.bf16 %v425_v16  ;;  %v372_v35 = vunpack.c.l.bf16 %v426_v21  ;;  %v373_v36 = vunpack.c.h.bf16 %v426_v21 }
  0x63   :  { %v376_v37 = vunpack.c.l.bf16 %v427_v26  ;;  %v377_v38 = vunpack.c.h.bf16 %v427_v26  ;;  %v380_v39 = vunpack.c.l.bf16 %v687_v27  ;;  %v381_v40 = vunpack.c.h.bf16 %v687_v27  ;;  %p563_p1 = por %p562_p0, %p561_p13 }
  0x64   :  { %v87_v6 = vmax.f32 %v86_v5, 0.0 }
  0x65   :  { %p564_p2 = pnand %p563_p1, %p557_p12 }
  0x66   :  { %v89_v7 = vadd.f32 1e-05, %v87_v6 }
  0x68   :  { %444 = vrsqrt.f32 %v89_v7 }
  0x72   :  { %v445_v17 = vpop.eup %444 }
  0x73   :  { %v91_v22 = vmul.f32 %v445_v17, %v88_v12 }
  0x75   :  { %v93_v33 = vmul.f32 %v91_v22, %v82_v2  ;;  %v689_v34 = vrot.slane %v91_v22, %v130_v14 }
  0x77   :  { %v94_v41 = vsub.f32 %v92_v28, %v93_v33  ;;  %v133_v42 = vmul.f32 %v352_v18, %v689_v34  ;;  %v134_v43 = vmul.f32 %v353_v19, %v689_v34  ;;  %v135_v44 = vmul.f32 %v356_v20, %v689_v34 }
  0x78   :  { %v136_v45 = vmul.f32 %v357_v23, %v689_v34  ;;  %v137_v46 = vmul.f32 %v360_v24, %v689_v34  ;;  %v138_v47 = vmul.f32 %v361_v25, %v689_v34  ;;  %v139_v48 = vmul.f32 %v364_v29, %v689_v34 }
  0x79   :  { %v700_v49 = vrot.slane %v94_v41, %v130_v14  ;;  %v140_v50 = vmul.f32 %v365_v30, %v689_v34  ;;  %v141_v51 = vmul.f32 %v368_v31, %v689_v34  ;;  %v142_v52 = vmul.f32 %v369_v32, %v689_v34 }
  0x7a   :  { %v143_v53 = vmul.f32 %v372_v35, %v689_v34  ;;  %v144_v54 = vmul.f32 %v373_v36, %v689_v34  ;;  %v145_v55 = vmul.f32 %v376_v37, %v689_v34  ;;  %v146_v56 = vmul.f32 %v377_v38, %v689_v34 }
  0x7b   :  { %v155_v57 = vadd.f32 %v700_v49, %v133_v42  ;;  %v156_v58 = vadd.f32 %v700_v49, %v134_v43  ;;  %v157_v59 = vadd.f32 %v700_v49, %v135_v44  ;;  %v158_v60 = vadd.f32 %v700_v49, %v136_v45 }
  0x7c   :  { %v159_v61 = vadd.f32 %v700_v49, %v137_v46  ;;  %v160_v62 = vadd.f32 %v700_v49, %v138_v47  ;;  %v161_v63 = vadd.f32 %v700_v49, %v139_v48  ;;  %v162_v0 = vadd.f32 %v700_v49, %v140_v50 }
  0x7d   :  { %vm171_vm0 = vcmp.gt.f32.partialorder %v155_v57, 0.0  ;;  %vm172_vm1 = vcmp.gt.f32.partialorder %v156_v58, 0.0  ;;  %v187_v1 = vmul.f32 0.2, %v155_v57  ;;  %v188_v2 = vmul.f32 0.2, %v156_v58 }
  0x7e   :  { %vm173_vm2 = vcmp.gt.f32.partialorder %v157_v59, 0.0  ;;  %vm174_vm3 = vcmp.gt.f32.partialorder %v158_v60, 0.0  ;;  %v189_v3 = vmul.f32 0.2, %v157_v59  ;;  %v190_v4 = vmul.f32 0.2, %v158_v60 }
  0x7f   :  { %v203_v5 = vsel %vm171_vm0, %v155_v57, %v187_v1  ;;  %v204_v6 = vsel %vm172_vm1, %v156_v58, %v188_v2  ;;  %vm175_vm4 = vcmp.gt.f32.partialorder %v159_v61, 0.0  ;;  %vm176_vm5 = vcmp.gt.f32.partialorder %v160_v62, 0.0 }
  0x80   :  { %v385_v7 = vpack.c.bf16 %v204_v6, %v203_v5  ;;  %v205_v8 = vsel %vm173_vm2, %v157_v59, %v189_v3  ;;  %v206_v9 = vsel %vm174_vm3, %v158_v60, %v190_v4  ;;  %v191_v10 = vmul.f32 0.2, %v159_v61 }
  0x81   :  { %v390_v11 = vpack.c.bf16 %v206_v9, %v205_v8  ;;  %v192_v12 = vmul.f32 0.2, %v160_v62  ;;  %vm177_vm6 = vcmp.gt.f32.partialorder %v161_v63, 0.0  ;;  %vm178_vm7 = vcmp.gt.f32.partialorder %v162_v0, 0.0 }
  0x82   :  { %386 = vst [vmem:[#allocation11] sm:$0xff] %v385_v7   ;;  %v207_v13 = vsel %vm175_vm4, %v159_v61, %v191_v10  ;;  %v193_v14 = vmul.f32 0.2, %v161_v63  ;;  %v194_v15 = vmul.f32 0.2, %v162_v0  ;;  %v163_v16 = vadd.f32 %v700_v49, %v141_v51 }
  0x83   :  { %429 = vst [vmem:[#allocation11 + $0x8] sm:$0xff] %v390_v11   ;;  %v208_v17 = vsel %vm176_vm5, %v160_v62, %v192_v12  ;;  %v164_v18 = vadd.f32 %v700_v49, %v142_v52  ;;  %v165_v19 = vadd.f32 %v700_v49, %v143_v53  ;;  %v166_v20 = vadd.f32 %v700_v49, %v144_v54 }
  0x84   :  { %v395_v21 = vpack.c.bf16 %v208_v17, %v207_v13  ;;  %v209_v22 = vsel %vm177_vm6, %v161_v63, %v193_v14  ;;  %v210_v23 = vsel %vm178_vm7, %v162_v0, %v194_v15  ;;  %vm179_vm8 = vcmp.gt.f32.partialorder %v163_v16, 0.0 }
  0x85   :  { %v400_v24 = vpack.c.bf16 %v210_v23, %v209_v22  ;;  %vm180_vm9 = vcmp.gt.f32.partialorder %v164_v18, 0.0  ;;  %v195_v25 = vmul.f32 0.2, %v163_v16  ;;  %v196_v26 = vmul.f32 0.2, %v164_v18 }
  0x86   :  { %430 = vst [vmem:[#allocation11 + $0x10] sm:$0xff] %v395_v21   ;;  %vm181_vm10 = vcmp.gt.f32.partialorder %v165_v19, 0.0  ;;  %vm182_vm11 = vcmp.gt.f32.partialorder %v166_v20, 0.0  ;;  %v197_v28 = vmul.f32 0.2, %v165_v19  ;;  %v167_v32 = vadd.f32 %v700_v49, %v145_v55 }
  0x87   :  { %v198_v29 = vmul.f32 0.2, %v166_v20  ;;  %431 = vst [vmem:[#allocation11 + $0x18] sm:$0xff] %v400_v24   ;;  %v211_v30 = vsel %vm179_vm8, %v163_v16, %v195_v25  ;;  %v212_v31 = vsel %vm180_vm9, %v164_v18, %v196_v26  ;;  %v168_v33 = vadd.f32 %v700_v49, %v146_v56 }
  0x88   :  { %v405_v35 = vpack.c.bf16 %v212_v31, %v211_v30  ;;  %v213_v36 = vsel %vm181_vm10, %v165_v19, %v197_v28  ;;  %v147_v38 = vmul.f32 %v380_v39, %v689_v34  ;;  %vm183_vm12 = vcmp.gt.f32.partialorder %v167_v32, 0.0 }
  0x89   :  { %v214_v37 = vsel %vm182_vm11, %v166_v20, %v198_v29  ;;  %vm184_vm13 = vcmp.gt.f32.partialorder %v168_v33, 0.0  ;;  %v199_v42 = vmul.f32 0.2, %v167_v32  ;;  %v200_v43 = vmul.f32 0.2, %v168_v33 }
  0x8a   :  { %v410_v41 = vpack.c.bf16 %v214_v37, %v213_v36  ;;  %432 = vst [vmem:[#allocation11 + $0x20] sm:$0xff] %v405_v35   ;;  %v148_v44 = vmul.f32 %v381_v40, %v689_v34  ;;  %v169_v45 = vadd.f32 %v700_v49, %v147_v38 }
  0x8b   :  { %v215_v46 = vsel %vm183_vm12, %v167_v32, %v199_v42  ;;  %v216_v47 = vsel %vm184_vm13, %v168_v33, %v200_v43 }
  0x8c   :  { %433 = vst [vmem:[#allocation11 + $0x28] sm:$0xff] %v410_v41   ;;  %v170_v48 = vadd.f32 %v700_v49, %v148_v44  ;;  %vm185_vm14 = vcmp.gt.f32.partialorder %v169_v45, 0.0  ;;  %v201_v50 = vmul.f32 0.2, %v169_v45  ;;  %v415_v39 = vpack.c.bf16 %v216_v47, %v215_v46 }
  0x8e   :  { %vm186_vm15 = vcmp.gt.f32.partialorder %v170_v48, 0.0  ;;  %v202_v51 = vmul.f32 0.2, %v170_v48  ;;  %v217_v52 = vsel %vm185_vm14, %v169_v45, %v201_v50  ;;  %434 = vst [vmem:[#allocation11 + $0x30] sm:$0xff] %v415_v39  }
  0x90   :  { %v218_v53 = vsel %vm186_vm15, %v170_v48, %v202_v51 }
  0x91   :  { %v420_v54 = vpack.c.bf16 %v218_v53, %v217_v52 }
  0x93   :  { %435 = vst [vmem:[#allocation11 + $0x38] sm:$0xff] %v420_v54  }
  0x94   :  { %567 = shalt.err (!%p564_p2)
}
  0x95   :  { %s568_s9 = scalar_lea.hbm %s751_s5, 1024 }
  0x96   :  { %p569_p3 = scmp.ne.s32.totalorder %s751_s5, %s568_s9  ;;  %p572_p4 = scmp.lt.u32.totalorder %s568_s9, %s751_s5 }
  0x98   :  { %p574_p5 = pnand %p572_p4, %p569_p3 }
  0x9a   :  { %577 = shalt.err (!%p574_p5)
}
  0x9b   :  { %310 = dma.vmem_to_hbm [thread:$0]  %s305_s30, 1024, %s751_s5, [#allocation4], %s589_s3, %s589_s3, %s590_s21  }
  0x9c   :  { %584 = dma.done.wait [#allocation4], 1024  }
  0x9d   :  { %585 = vsyncadd [#allocation4], 4294966272 }
  0x9e   :  { %314 = vsyncpa [#allocation3], 1 }
  0x9f   :  { %315 = vsyncpa [#allocation6], 1 }
  0xa0   :  { %316 = vsyncpa [#allocation9], 1 }
  0xa1   :  { %317 = vsyncpa [#allocation4], 1 }

// kernel: anime_discriminator_forward.14
= control target key start
LH: loop header
LB: loop body
LE: loop exit
PB: predicated region body
PF: predicated region fallthrough
CT: control target
= control target key end

     0   :  { %10 = vsyncpa [#allocation3], 0  ;;  %s468_s0 = inlined_call_operand.hbm [shape: bf16[32,128], index: 0, kind: input, shape index: {}]   ;;  %s469_s1 = inlined_call_operand.hbm [shape: f32[1,128], index: 1, kind: input, shape index: {}]   ;;  %s470_s2 = inlined_call_operand.hbm [shape: f32[1,128], index: 2, kind: input, shape index: {}]   ;;  %s471_s3 = inlined_call_operand.hbm [shape: f32[1,128], index: 3, kind: input, shape index: {}]   ;;  %s472_s4 = inlined_call_operand.hbm [shape: f32[1,128], index: 4, kind: input, shape index: {}]   ;;  %s473_s5 = inlined_call_operand.hbm [shape: bf16[32,128], index: 5, kind: output, shape index: {}]  }
   0x1   :  { %11 = vsyncpa [#allocation6], 0 }
   0x2   :  { %12 = vsyncpa [#allocation9], 0 }
   0x3   :  { %13 = vsyncpa [#allocation4], 0  ;;  %s352_s18 = smov [#allocation5]   ;;  %s353_s20 = smov [#allocation8]  }
   0x4   :  { %s32_s19 = sshll.u32 %s352_s18, 4  ;;  %s52_s21 = sshll.u32 %s353_s20, 4  ;;  %s33_s19 = int_to_ptr.vmem [resolvable:$true] %s32_s19  ;;  %s53_s21 = int_to_ptr.vmem [resolvable:$true] %s52_s21 }
   0x5   :  { %s212_s24 = scalar_lea.hbm %s469_s1, 16 }
   0x6   :  { %p213_p0 = scmp.ne.s32.totalorder %s469_s1, %s212_s24  ;;  %p216_p1 = scmp.lt.u32.totalorder %s212_s24, %s469_s1 }
   0x8   :  { %p218_p2 = pnand %p216_p1, %p213_p0 }
   0xa   :  { %221 = shalt.err (!%p218_p2)
}
   0xb   :  { %s222_s29 = scalar_lea.vmem %s33_s19, 16  ;;  %s226_s30 = scalar_lea.vmem %s33_s19, 32 }
   0xc   :  { %p223_p3 = scmp.ne.s32.totalorder %s33_s19, %s222_s29  ;;  %p227_p4 = scmp.lt.s32.totalorder %s33_s19, %s33_s19 }
   0xd   :  { %p228_p5 = scmp.lt.s32.totalorder %s226_s30, %s222_s29 }
   0xf   :  { %p229_p6 = por %p228_p5, %p227_p4 }
  0x11   :  { %p230_p7 = pnand %p229_p6, %p223_p3 }
  0x13   :  { %233 = shalt.err (!%p230_p7)
}
  0x14   :  { %35 = dma.hbm_to_vmem [thread:$0]  %s469_s1, 16, %s33_s19, [#allocation6]  }
  0x15   :  { %s234_s10 = scalar_lea.hbm %s471_s3, 16 }
  0x16   :  { %p235_p8 = scmp.ne.s32.totalorder %s471_s3, %s234_s10  ;;  %p238_p9 = scmp.lt.u32.totalorder %s234_s10, %s471_s3 }
  0x18   :  { %p240_p10 = pnand %p238_p9, %p235_p8 }
  0x1a   :  { %243 = shalt.err (!%p240_p10)
}
  0x1b   :  { %s244_s15 = scalar_lea.vmem %s53_s21, 16  ;;  %s248_s16 = scalar_lea.vmem %s53_s21, 32 }
  0x1c   :  { %p245_p11 = scmp.ne.s32.totalorder %s53_s21, %s244_s15  ;;  %p249_p12 = scmp.lt.s32.totalorder %s53_s21, %s53_s21 }
  0x1d   :  { %p250_p13 = scmp.lt.s32.totalorder %s248_s16, %s244_s15 }
  0x1f   :  { %p251_p0 = por %p250_p13, %p249_p12 }
  0x21   :  { %p252_p1 = pnand %p251_p0, %p245_p11 }
  0x23   :  { %255 = shalt.err (!%p252_p1)
}
  0x24   :  { %55 = dma.hbm_to_vmem [thread:$0]  %s471_s3, 16, %s53_s21, [#allocation9]  }
  0x25   :  { %s354_s18 = smov [#allocation2]   ;;  %s256_s23 = scalar_lea.hbm %s468_s0, 256 }
  0x26   :  { %s19_s19 = sshll.u32 %s354_s18, 4  ;;  %p257_p2 = scmp.ne.s32.totalorder %s468_s0, %s256_s23  ;;  %s20_s19 = int_to_ptr.vmem [resolvable:$true] %s19_s19 }
  0x27   :  { %p260_p3 = scmp.lt.u32.totalorder %s256_s23, %s468_s0 }
  0x29   :  { %p262_p4 = pnand %p260_p3, %p257_p2 }
  0x2b   :  { %265 = shalt.err (!%p262_p4)
}
  0x2c   :  { %s266_s28 = scalar_lea.vmem %s20_s19, 256  ;;  %p271_p6 = scmp.lt.s32.totalorder %s20_s19, %s20_s19 }
  0x2d   :  { %p267_p5 = scmp.ne.s32.totalorder %s20_s19, %s266_s28  ;;  %p272_p7 = scmp.lt.s32.totalorder %s266_s28, %s266_s28 }
  0x2f   :  { %p273_p8 = por %p272_p7, %p271_p6 }
  0x31   :  { %p274_p9 = pnand %p273_p8, %p267_p5 }
  0x33   :  { %277 = shalt.err (!%p274_p9)
}
  0x34   :  { %s355_s3 = smov 64   ;;  %s356_s21 = smov 4  }
  0x35   :  { %25 = dma.hbm_to_vmem [thread:$0]  %s468_s0, 256, %s20_s19, [#allocation3], %s355_s3, %s355_s3, %s356_s21  }
  0x36   :  { %s357_s6 = smov [#allocation7]   ;;  %s358_s8 = smov [#allocation10]  }
  0x37   :  { %s42_s7 = sshll.u32 %s357_s6, 4  ;;  %s62_s9 = sshll.u32 %s358_s8, 4  ;;  %s43_s7 = int_to_ptr.vmem [resolvable:$true] %s42_s7  ;;  %s63_s9 = int_to_ptr.vmem [resolvable:$true] %s62_s9 }
  0x38   :  { %s278_s12 = scalar_lea.hbm %s470_s2, 16 }
  0x39   :  { %p279_p10 = scmp.ne.s32.totalorder %s470_s2, %s278_s12  ;;  %p282_p11 = scmp.lt.u32.totalorder %s278_s12, %s470_s2 }
  0x3b   :  { %p284_p12 = pnand %p282_p11, %p279_p10 }
  0x3d   :  { %287 = shalt.err (!%p284_p12)
}
  0x3e   :  { %s288_s0 = scalar_lea.vmem %s43_s7, 16  ;;  %s292_s1 = scalar_lea.vmem %s43_s7, 32 }
  0x3f   :  { %p289_p13 = scmp.ne.s32.totalorder %s43_s7, %s288_s0  ;;  %p293_p0 = scmp.lt.s32.totalorder %s43_s7, %s43_s7 }
  0x40   :  { %p294_p1 = scmp.lt.s32.totalorder %s292_s1, %s288_s0 }
  0x42   :  { %p295_p2 = por %p294_p1, %p293_p0 }
  0x44   :  { %p296_p3 = pnand %p295_p2, %p289_p13 }
  0x46   :  { %299 = shalt.err (!%p296_p3)
}
  0x47   :  { %45 = dma.hbm_to_vmem [thread:$0]  %s470_s2, 16, %s43_s7, [#allocation6]  }
  0x48   :  { %s300_s22 = scalar_lea.hbm %s472_s4, 16 }
  0x49   :  { %p301_p4 = scmp.ne.s32.totalorder %s472_s4, %s300_s22  ;;  %p304_p5 = scmp.lt.u32.totalorder %s300_s22, %s472_s4 }
  0x4b   :  { %p306_p6 = pnand %p304_p5, %p301_p4 }
  0x4d   :  { %309 = shalt.err (!%p306_p6)
}
  0x4e   :  { %s310_s27 = scalar_lea.vmem %s63_s9, 16  ;;  %s314_s28 = scalar_lea.vmem %s63_s9, 32 }
  0x4f   :  { %p311_p7 = scmp.ne.s32.totalorder %s63_s9, %s310_s27  ;;  %p315_p8 = scmp.lt.s32.totalorder %s63_s9, %s63_s9 }
  0x50   :  { %p316_p9 = scmp.lt.s32.totalorder %s314_s28, %s310_s27 }
  0x52   :  { %p317_p10 = por %p316_p9, %p315_p8 }
  0x54   :  { %p318_p11 = pnand %p317_p10, %p311_p7 }
  0x56   :  { %321 = shalt.err (!%p318_p11)
}
  0x57   :  { %65 = dma.hbm_to_vmem [thread:$0]  %s472_s4, 16, %s63_s9, [#allocation9]  }
  0x58   :  { %344 = dma.done.wait [#allocation3], 256  }
  0x59   :  { %345 = vsyncadd [#allocation3], 4294967040 }
  0x5a   :  { %346 = dma.done.wait [#allocation6], 32  }
  0x5b   :  { %347 = vsyncadd [#allocation6], 4294967264 }
  0x5c   :  { %348 = dma.done.wait [#allocation9], 32  }
  0x5d   :  { %349 = vsyncadd [#allocation9], 4294967264  ;;  %v81_v0 = vld [vmem:[#allocation5] sm:$0x1]  ;;  %v83_v1 = vld [vmem:[#allocation7] sm:$0x1]  ;;  %v104_v8 = vlaneseq }
  0x5e   :  { %v82_v2 = vmul.f32 0.03125, %v81_v0  ;;  %v84_v3 = vmul.f32 0.03125, %v83_v1  ;;  %v88_v10 = vld [vmem:[#allocation8] sm:$0x1]  ;;  %v183_v11 = vld [vmem:[#allocation2] sm:$0xff]   ;;  %v200_v12 = vld [vmem:[#allocation2 + $0x8] sm:$0xff]  }
  0x5f   :  { %v105_v9 = vshrl.u32 %v104_v8, 7  ;;  %v184_v16 = vunpack.c.l.bf16 %v183_v11  ;;  %v185_v17 = vunpack.c.h.bf16 %v183_v11  ;;  %v188_v18 = vunpack.c.l.bf16 %v200_v12  ;;  %v92_v19 = vld [vmem:[#allocation10] sm:$0x1]  ;;  %s359_s4 = smov [#allocation11]  }
  0x60   :  { %v85_v4 = vmul.f32 %v82_v2, %v82_v2  ;;  %v189_v20 = vunpack.c.h.bf16 %v200_v12  ;;  %s160_s30 = sshll.u32 %s359_s4, 4  ;;  %s161_s30 = int_to_ptr.vmem [resolvable:$true] %s160_s30 }
  0x61   :  { %v106_v13 = vsub.s32 0, %v105_v9  ;;  %s322_s6 = scalar_lea.vmem %s161_s30, 256  ;;  %p327_p13 = scmp.lt.s32.totalorder %s161_s30, %s161_s30 }
  0x62   :  { %v86_v5 = vsub.f32 %v84_v3, %v85_v4  ;;  %p323_p12 = scmp.ne.s32.totalorder %s161_s30, %s322_s6  ;;  %p328_p0 = scmp.lt.s32.totalorder %s322_s6, %s322_s6 }
  0x64   :  { %v87_v6 = vmax.f32 %v86_v5, 0.0  ;;  %p329_p1 = por %p328_p0, %p327_p13 }
  0x66   :  { %v89_v7 = vadd.f32 1e-05, %v87_v6  ;;  %p330_p2 = pnand %p329_p1, %p323_p12 }
  0x68   :  { %210 = vrsqrt.f32 %v89_v7 }
  0x72   :  { %v211_v14 = vpop.eup %210 }
  0x73   :  { %v91_v15 = vmul.f32 %v211_v14, %v88_v10 }
  0x75   :  { %v93_v21 = vmul.f32 %v91_v15, %v82_v2  ;;  %v107_v22 = vrot.slane %v91_v15, %v106_v13 }
  0x77   :  { %v94_v23 = vsub.f32 %v92_v19, %v93_v21  ;;  %v109_v24 = vmul.f32 %v184_v16, %v107_v22  ;;  %v110_v25 = vmul.f32 %v185_v17, %v107_v22  ;;  %v111_v26 = vmul.f32 %v188_v18, %v107_v22 }
  0x78   :  { %v112_v27 = vmul.f32 %v189_v20, %v107_v22 }
  0x79   :  { %v117_v28 = vrot.slane %v94_v23, %v106_v13 }
  0x7b   :  { %v119_v29 = vadd.f32 %v117_v28, %v109_v24  ;;  %v120_v30 = vadd.f32 %v117_v28, %v110_v25  ;;  %v121_v31 = vadd.f32 %v117_v28, %v111_v26  ;;  %v122_v32 = vadd.f32 %v117_v28, %v112_v27 }
  0x7d   :  { %vm123_vm0 = vcmp.gt.f32.partialorder %v119_v29, 0.0  ;;  %vm124_vm1 = vcmp.gt.f32.partialorder %v120_v30, 0.0  ;;  %v127_v33 = vmul.f32 0.2, %v119_v29  ;;  %v128_v34 = vmul.f32 0.2, %v120_v30 }
  0x7e   :  { %vm125_vm2 = vcmp.gt.f32.partialorder %v121_v31, 0.0  ;;  %vm126_vm3 = vcmp.gt.f32.partialorder %v122_v32, 0.0  ;;  %v129_v35 = vmul.f32 0.2, %v121_v31  ;;  %v130_v36 = vmul.f32 0.2, %v122_v32 }
  0x7f   :  { %v131_v37 = vsel %vm123_vm0, %v119_v29, %v127_v33  ;;  %v132_v38 = vsel %vm124_vm1, %v120_v30, %v128_v34 }
  0x80   :  { %v193_v39 = vpack.c.bf16 %v132_v38, %v131_v37  ;;  %v133_v40 = vsel %vm125_vm2, %v121_v31, %v129_v35  ;;  %v134_v41 = vsel %vm126_vm3, %v122_v32, %v130_v36 }
  0x81   :  { %v198_v42 = vpack.c.bf16 %v134_v41, %v133_v40 }
  0x82   :  { %194 = vst [vmem:[#allocation11] sm:$0xff] %v193_v39  }
  0x83   :  { %201 = vst [vmem:[#allocation11 + $0x8] sm:$0xff] %v198_v42  }
  0x84   :  { %333 = shalt.err (!%p330_p2)
}
  0x85   :  { %s334_s9 = scalar_lea.hbm %s473_s5, 256 }
  0x86   :  { %p335_p3 = scmp.ne.s32.totalorder %s473_s5, %s334_s9  ;;  %p338_p4 = scmp.lt.u32.totalorder %s334_s9, %s473_s5 }
  0x88   :  { %p340_p5 = pnand %p338_p4, %p335_p3 }
  0x8a   :  { %343 = shalt.err (!%p340_p5)
}
  0x8b   :  { %166 = dma.vmem_to_hbm [thread:$0]  %s161_s30, 256, %s473_s5, [#allocation4], %s355_s3, %s355_s3, %s356_s21  }
  0x8c   :  { %350 = dma.done.wait [#allocation4], 256  }
  0x8d   :  { %351 = vsyncadd [#allocation4], 4294967040 }
  0x8e   :  { %170 = vsyncpa [#allocation3], 1 }
  0x8f   :  { %171 = vsyncpa [#allocation6], 1 }
  0x90   :  { %172 = vsyncpa [#allocation9], 1 }
  0x91   :  { %173 = vsyncpa [#allocation4], 1 }

// kernel: anime_discriminator_forward.13
= control target key start
LH: loop header
LB: loop body
LE: loop exit
PB: predicated region body
PF: predicated region fallthrough
CT: control target
= control target key end

     0   :  { %10 = vsyncpa [#allocation3], 0  ;;  %s929_s0 = inlined_call_operand.hbm [shape: bf16[32,512], index: 0, kind: input, shape index: {}]   ;;  %s930_s1 = inlined_call_operand.hbm [shape: bf16[512,128], index: 1, kind: input, shape index: {}]   ;;  %s931_s2 = inlined_call_operand.hbm [shape: bf16[32,128], index: 2, kind: output, shape index: {0}]   ;;  %s932_s3 = inlined_call_operand.hbm [shape: f32[8,128], index: 3, kind: output, shape index: {1}]   ;;  %s933_s4 = inlined_call_operand.hbm [shape: f32[8,128], index: 4, kind: output, shape index: {2}]  }
   0x1   :  { %11 = vsyncpa [#allocation6], 0 }
   0x2   :  { %12 = vsyncpa [#allocation4], 0 }
   0x3   :  { %13 = vsyncpa [#allocation9], 0  ;;  %s827_s15 = smov [#allocation2]   ;;  %s709_s19 = scalar_lea.hbm %s929_s0, 1024 }
   0x4   :  { %s19_s16 = sshll.u32 %s827_s15, 4  ;;  %p710_p0 = scmp.ne.s32.totalorder %s929_s0, %s709_s19  ;;  %s20_s16 = int_to_ptr.vmem [resolvable:$true] %s19_s16 }
   0x5   :  { %p713_p1 = scmp.lt.u32.totalorder %s709_s19, %s929_s0 }
   0x7   :  { %p715_p2 = pnand %p713_p1, %p710_p0 }
   0x9   :  { %718 = shalt.err (!%p715_p2)
}
   0xa   :  { %s719_s24 = scalar_lea.vmem %s20_s16, 1024  ;;  %p724_p4 = scmp.lt.s32.totalorder %s20_s16, %s20_s16 }
   0xb   :  { %p720_p3 = scmp.ne.s32.totalorder %s20_s16, %s719_s24  ;;  %p725_p5 = scmp.lt.s32.totalorder %s719_s24, %s719_s24 }
   0xd   :  { %p726_p6 = por %p725_p5, %p724_p4 }
   0xf   :  { %p727_p7 = pnand %p726_p6, %p720_p3 }
  0x11   :  { %730 = shalt.err (!%p727_p7)
}
  0x12   :  { %s828_s25 = smov 256   ;;  %s829_s26 = smov 16  }
  0x13   :  { %25 = dma.hbm_to_vmem [thread:$0]  %s929_s0, 1024, %s20_s16, [#allocation3], %s828_s25, %s828_s25, %s829_s26  }
  0x14   :  { %s830_s29 = smov [#allocation5]   ;;  %s731_s7 = scalar_lea.hbm %s930_s1, 4096 }
  0x15   :  { %s31_s30 = sshll.u32 %s830_s29, 4  ;;  %p732_p8 = scmp.ne.s32.totalorder %s930_s1, %s731_s7  ;;  %s32_s30 = int_to_ptr.vmem [resolvable:$true] %s31_s30 }
  0x16   :  { %p735_p9 = scmp.lt.u32.totalorder %s731_s7, %s930_s1 }
  0x18   :  { %p737_p10 = pnand %p735_p9, %p732_p8 }
  0x1a   :  { %740 = shalt.err (!%p737_p10)
}
  0x1b   :  { %s741_s12 = scalar_lea.vmem %s32_s30, 4096  ;;  %p746_p12 = scmp.lt.s32.totalorder %s32_s30, %s32_s30 }
  0x1c   :  { %p742_p11 = scmp.ne.s32.totalorder %s32_s30, %s741_s12  ;;  %p747_p13 = scmp.lt.s32.totalorder %s741_s12, %s741_s12 }
  0x1e   :  { %p748_p0 = por %p747_p13, %p746_p12 }
  0x20   :  { %p749_p1 = pnand %p748_p0, %p742_p11 }
  0x22   :  { %752 = shalt.err (!%p749_p1)
}
  0x23   :  { %s831_s0 = smov 64   ;;  %s832_s13 = smov 4  }
  0x24   :  { %37 = dma.hbm_to_vmem [thread:$0]  %s930_s1, 4096, %s32_s30, [#allocation6], %s831_s0, %s831_s0, %s832_s13  }
  0x25   :  { %819 = dma.done.wait [#allocation3], 1024  }
  0x26   :  { %820 = vsyncadd [#allocation3], 4294966272 }
  0x27   :  { %821 = dma.done.wait [#allocation6], 4096  }
  0x28   :  { %822 = vsyncadd [#allocation6], 4294963200  ;;  %v665_v0 = vld [vmem:[#allocation5 + $0x40] sm:$0xff]   ;;  %v669_v4 = vld [vmem:[#allocation5 + $0x48] sm:$0xff]   ;;  %s833_s1 = smov [#allocation7]  }
  0x29   :  { %v666_v1 = vld [vmem:[#allocation5 + $0xc0] sm:$0xff]   ;;  %600 = vmatprep.subr.bf16.mxu0 %v665_v0  ;;  %v670_v5 = vld [vmem:[#allocation5 + $0xc8] sm:$0xff]   ;;  %v673_v8 = vld [vmem:[#allocation5 + $0x50] sm:$0xff]   ;;  %s501_s16 = sshll.u32 %s833_s1, 4  ;;  %s502_s16 = int_to_ptr.vmem [resolvable:$true] %s501_s16 }
  0x2a   :  { %v667_v2 = vld [vmem:[#allocation5] sm:$0xff]   ;;  %628 = vmatprep.subr.bf16.mxu1 %v666_v1  ;;  %v671_v6 = vld [vmem:[#allocation5 + $0x8] sm:$0xff]   ;;  %v674_v9 = vld [vmem:[#allocation5 + $0xd0] sm:$0xff]   ;;  %s753_s17 = scalar_lea.vmem %s502_s16, 256  ;;  %p758_p3 = scmp.lt.s32.totalorder %s502_s16, %s502_s16 }
  0x2b   :  { %v668_v3 = vld [vmem:[#allocation5 + $0x80] sm:$0xff]   ;;  %601 = vmatpush3.bf16.msra.mxu0 %v667_v2  ;;  %v672_v7 = vld [vmem:[#allocation5 + $0x88] sm:$0xff]   ;;  %v675_v10 = vld [vmem:[#allocation5 + $0x10] sm:$0xff]   ;;  %p754_p2 = scmp.ne.s32.totalorder %s502_s16, %s753_s17  ;;  %p759_p4 = scmp.lt.s32.totalorder %s753_s17, %s753_s17 }
  0x2c   :  { %629 = vmatpush3.bf16.msra.mxu1 %v668_v3  ;;  %602 = vmatprep.subr.bf16.mxu0 %v669_v4  ;;  %v676_v11 = vld [vmem:[#allocation5 + $0x90] sm:$0xff]   ;;  %v677_v12 = vld [vmem:[#allocation5 + $0x58] sm:$0xff]   ;;  %v681_v16 = vld [vmem:[#allocation5 + $0x60] sm:$0xff]  }
  0x2d   :  { %630 = vmatprep.subr.bf16.mxu1 %v670_v5  ;;  %v678_v13 = vld [vmem:[#allocation5 + $0xd8] sm:$0xff]   ;;  %v682_v17 = vld [vmem:[#allocation5 + $0xe0] sm:$0xff]   ;;  %v685_v20 = vld [vmem:[#allocation5 + $0x68] sm:$0xff]   ;;  %p760_p5 = por %p759_p4, %p758_p3 }
  0x2e   :  { %v679_v14 = vld [vmem:[#allocation5 + $0x18] sm:$0xff]   ;;  %v683_v18 = vld [vmem:[#allocation5 + $0x20] sm:$0xff]   ;;  %v686_v21 = vld [vmem:[#allocation5 + $0xe8] sm:$0xff]  }
  0x2f   :  { %603 = vmatpush3.bf16.msra.mxu0 %v671_v6  ;;  %v680_v15 = vld [vmem:[#allocation5 + $0x98] sm:$0xff]   ;;  %v684_v19 = vld [vmem:[#allocation5 + $0xa0] sm:$0xff]   ;;  %v687_v22 = vld [vmem:[#allocation5 + $0x28] sm:$0xff]   ;;  %p761_p6 = pnand %p760_p5, %p754_p2 }
  0x30   :  { %631 = vmatpush3.bf16.msra.mxu1 %v672_v7  ;;  %604 = vmatprep.subr.bf16.mxu0 %v673_v8  ;;  %v688_v23 = vld [vmem:[#allocation5 + $0xa8] sm:$0xff]   ;;  %v689_v24 = vld [vmem:[#allocation5 + $0x70] sm:$0xff]   ;;  %v693_v28 = vld [vmem:[#allocation5 + $0x78] sm:$0xff]  }
  0x31   :  { %632 = vmatprep.subr.bf16.mxu1 %v674_v9  ;;  %v690_v25 = vld [vmem:[#allocation5 + $0xf0] sm:$0xff]   ;;  %v694_v29 = vld [vmem:[#allocation5 + $0xf8] sm:$0xff]  }
  0x32   :  { %v691_v26 = vld [vmem:[#allocation5 + $0x30] sm:$0xff]   ;;  %v695_v30 = vld [vmem:[#allocation5 + $0x38] sm:$0xff]  }
  0x33   :  { %605 = vmatpush3.bf16.msra.mxu0 %v675_v10  ;;  %v692_v27 = vld [vmem:[#allocation5 + $0xb0] sm:$0xff]   ;;  %v696_v31 = vld [vmem:[#allocation5 + $0xb8] sm:$0xff]  }
  0x34   :  { %633 = vmatpush3.bf16.msra.mxu1 %v676_v11  ;;  %606 = vmatprep.subr.bf16.mxu0 %v677_v12  ;;  %v697_v32 = vld [vmem:[#allocation2] ss:$16 sps:$4 sm:$0xff]   ;;  %v699_v33 = vld [vmem:[#allocation2 + $0x4] ss:$16 sps:$4 sm:$0xff]   ;;  %v700_v34 = vld [vmem:[#allocation2 + $0x8] ss:$16 sps:$4 sm:$0xff]  }
  0x35   :  { %634 = vmatprep.subr.bf16.mxu1 %v678_v13  ;;  %v702_v35 = vld [vmem:[#allocation2 + $0xc] ss:$16 sps:$4 sm:$0xff]   ;;  %381 = vmatprep.mubr.bf16.mxu0 %v699_v33  ;;  %v703_v36 = vld [vmem:[#allocation2 + $0x24] ss:$16 sps:$4 sm:$0xff]   ;;  %v707_v38 = vld [vmem:[#allocation2 + $0x20] ss:$16 sps:$4 sm:$0xff]  }
  0x36   :  { %430 = vmatprep.mubr.bf16.mxu1 %v702_v35  ;;  %v705_v37 = vld [vmem:[#allocation2 + $0x2c] ss:$16 sps:$4 sm:$0xff]   ;;  %v708_v39 = vld [vmem:[#allocation2 + $0x28] ss:$16 sps:$4 sm:$0xff]  }
  0x37   :  { %607 = vmatpush3.bf16.msra.mxu0 %v679_v14 }
  0x38   :  { %635 = vmatpush3.bf16.msra.mxu1 %v680_v15  ;;  %608 = vmatprep.subr.bf16.mxu0 %v681_v16 }
  0x39   :  { %636 = vmatprep.subr.bf16.mxu1 %v682_v17  ;;  %v489_v17 = vlaneseq }
  0x3b   :  { %609 = vmatpush3.bf16.msra.mxu0 %v683_v18 }
  0x3c   :  { %637 = vmatpush3.bf16.msra.mxu1 %v684_v19  ;;  %610 = vmatprep.subr.bf16.mxu0 %v685_v20 }
  0x3d   :  { %638 = vmatprep.subr.bf16.mxu1 %v686_v21 }
  0x3f   :  { %611 = vmatpush3.bf16.msra.mxu0 %v687_v22 }
  0x40   :  { %639 = vmatpush3.bf16.msra.mxu1 %v688_v23  ;;  %612 = vmatprep.subr.bf16.mxu0 %v689_v24 }
  0x41   :  { %640 = vmatprep.subr.bf16.mxu1 %v690_v25 }
  0x43   :  { %613 = vmatpush3.bf16.msra.mxu0 %v691_v26 }
  0x44   :  { %641 = vmatpush3.bf16.msra.mxu1 %v692_v27  ;;  %614 = vmatprep.subr.bf16.mxu0 %v693_v28 }
  0x45   :  { %642 = vmatprep.subr.bf16.mxu1 %v694_v29 }
  0x47   :  { %615 = vmatpush3.bf16.msra.mxu0 %v695_v30 }
  0x48   :  { %643 = vmatpush3.bf16.msra.mxu1 %v696_v31 }
  0x4a   :  { %382 = vmatmul.mubr.bf16.vlgmr.msra.gmra.mrb[0].mxu0 %v697_v32 }
  0x4b   :  { %431 = vmatmul.mubr.bf16.vlgmr.msra.gmra.mrb[0].mxu1 %v700_v34  ;;  %389 = vmatprep.mubr.bf16.mxu0 %v703_v36 }
  0x4c   :  { %438 = vmatprep.mubr.bf16.mxu1 %v705_v37 }
  0x52   :  { %390 = vmatmul.mubr.bf16.gmra.mrb[4].mxu0 %v707_v38 }
  0x53   :  { %439 = vmatmul.mubr.bf16.gmra.mrb[4].mxu1 %v708_v39 }
 0x11d   :  { %v616_v40 = vpop.f32.mrb[0].mxu0 }
 0x11e   :  { %v644_v41 = vpop.f32.mrb[0].mxu1  ;;  %v617_v42 = vpop.f32.mrb[1].mxu0 }
 0x11f   :  { %v618_v43 = vadd.f32 %v617_v42, %v616_v40  ;;  %v645_v44 = vpop.f32.mrb[1].mxu1  ;;  %v619_v45 = vpop.f32.mrb[2].mxu0 }
 0x120   :  { %v646_v46 = vadd.f32 %v645_v44, %v644_v41  ;;  %v647_v47 = vpop.f32.mrb[2].mxu1  ;;  %v620_v48 = vpop.f32.mrb[3].mxu0 }
 0x121   :  { %v621_v49 = vadd.f32 %v620_v48, %v619_v45  ;;  %v648_v50 = vpop.f32.mrb[3].mxu1 }
 0x122   :  { %v433_v51 = vadd.f32 %v646_v46, %v618_v43  ;;  %v649_v52 = vadd.f32 %v648_v50, %v647_v47 }
 0x124   :  { %v436_v53 = vadd.f32 %v649_v52, %v621_v49  ;;  %v476_v55 = vmul.f32 %v433_v51, %v433_v51 }
 0x125   :  { %v622_v54 = vpop.f32.mrb[4].mxu0 }
 0x126   :  { %v467_v56 = vadd.f32 %v436_v53, %v433_v51  ;;  %v477_v57 = vmul.f32 %v436_v53, %v436_v53  ;;  %v650_v58 = vpop.f32.mrb[4].mxu1  ;;  %v623_v59 = vpop.f32.mrb[5].mxu0  ;;  %v592_v60 = vpack.c.bf16 %v436_v53, %v433_v51 }
 0x127   :  { %v624_v61 = vadd.f32 %v623_v59, %v622_v54  ;;  %v651_v62 = vpop.f32.mrb[5].mxu1  ;;  %v625_v63 = vpop.f32.mrb[6].mxu0 }
 0x128   :  { %v480_v0 = vadd.f32 %v477_v57, %v476_v55  ;;  %v652_v1 = vadd.f32 %v651_v62, %v650_v58  ;;  %v653_v2 = vpop.f32.mrb[6].mxu1  ;;  %v626_v3 = vpop.f32.mrb[7].mxu0  ;;  %593 = vst [vmem:[#allocation7] sm:$0xff] %v592_v60  }
 0x129   :  { %v627_v4 = vadd.f32 %v626_v3, %v625_v63  ;;  %v654_v5 = vpop.f32.mrb[7].mxu1 }
 0x12a   :  { %v441_v6 = vadd.f32 %v652_v1, %v624_v61  ;;  %v655_v7 = vadd.f32 %v654_v5, %v653_v2 }
 0x12c   :  { %v468_v8 = vadd.f32 %v467_v56, %v441_v6  ;;  %v478_v9 = vmul.f32 %v441_v6, %v441_v6  ;;  %v444_v10 = vadd.f32 %v655_v7, %v627_v4 }
 0x12e   :  { %v481_v11 = vadd.f32 %v480_v0, %v478_v9  ;;  %v469_v12 = vadd.f32 %v468_v8, %v444_v10  ;;  %v479_v13 = vmul.f32 %v444_v10, %v444_v10  ;;  %v597_v14 = vpack.c.bf16 %v444_v10, %v441_v6 }
 0x130   :  { %v470_v15 = vrot.slane %v469_v12, 4  ;;  %v482_v16 = vadd.f32 %v481_v11, %v479_v13  ;;  %599 = vst [vmem:[#allocation7 + $0x8] sm:$0xff] %v597_v14  }
 0x131   :  { %764 = shalt.err (!%p761_p6)
}
 0x132   :  { %s765_s20 = scalar_lea.hbm %s931_s2, 256 }
 0x133   :  { %p766_p7 = scmp.ne.s32.totalorder %s931_s2, %s765_s20  ;;  %p769_p8 = scmp.lt.u32.totalorder %s765_s20, %s931_s2 }
 0x135   :  { %p771_p9 = pnand %p769_p8, %p766_p7 }
 0x137   :  { %774 = shalt.err (!%p771_p9)
}
 0x138   :  { %507 = dma.vmem_to_hbm [thread:$0]  %s502_s16, 256, %s931_s2, [#allocation4], %s831_s0, %s831_s0, %s832_s13   ;;  %v483_v18 = vrot.slane %v482_v16, 4  ;;  %v471_v19 = vadd.f32 %v470_v15, %v469_v12  ;;  %v490_v22 = vshrl.u32 %v489_v17, 7 }
 0x139   :  { %s834_s27 = smov [#allocation8]   ;;  %s835_s29 = smov [#allocation10]  }
 0x13a   :  { %v472_v20 = vrot.slane %v471_v19, 2  ;;  %v484_v21 = vadd.f32 %v483_v18, %v482_v16  ;;  %s514_s28 = sshll.u32 %s834_s27, 4  ;;  %vm491_vm0 = vcmp.eq.s32.totalorder %v490_v22, 0  ;;  %s524_s30 = sshll.u32 %s835_s29, 4  ;;  %s515_s28 = int_to_ptr.vmem [resolvable:$true] %s514_s28  ;;  %s525_s30 = int_to_ptr.vmem [resolvable:$true] %s524_s30 }
 0x13b   :  { %s775_s2 = scalar_lea.vmem %s515_s28, 128  ;;  %p780_p11 = scmp.lt.s32.totalorder %s515_s28, %s515_s28 }
 0x13c   :  { %v473_v23 = vadd.f32 %v472_v20, %v471_v19  ;;  %v485_v24 = vrot.slane %v484_v21, 2  ;;  %p776_p10 = scmp.ne.s32.totalorder %s515_s28, %s775_s2  ;;  %p781_p12 = scmp.lt.s32.totalorder %s775_s2, %s775_s2 }
 0x13e   :  { %v474_v25 = vrot.slane %v473_v23, 1  ;;  %v486_v26 = vadd.f32 %v485_v24, %v484_v21  ;;  %p782_p13 = por %p781_p12, %p780_p11 }
 0x140   :  { %v475_v27 = vadd.f32 %v474_v25, %v473_v23  ;;  %v487_v28 = vrot.slane %v486_v26, 1  ;;  %p783_p0 = pnand %p782_p13, %p776_p10 }
 0x142   :  { %v492_v29 = vsel %vm491_vm0, %v475_v27, 0.0  ;;  %v488_v30 = vadd.f32 %v487_v28, %v486_v26 }
 0x143   :  { %493 = vst [vmem:[#allocation8] sm:$0xff] %v492_v29 }
 0x144   :  { %786 = shalt.err (!%p783_p0)
}
 0x145   :  { %s787_s7 = scalar_lea.hbm %s932_s3, 128 }
 0x146   :  { %p788_p1 = scmp.ne.s32.totalorder %s932_s3, %s787_s7  ;;  %p791_p2 = scmp.lt.u32.totalorder %s787_s7, %s932_s3 }
 0x148   :  { %p793_p3 = pnand %p791_p2, %p788_p1 }
 0x14a   :  { %796 = shalt.err (!%p793_p3)
}
 0x14b   :  { %517 = dma.vmem_to_hbm [thread:$0]  %s515_s28, 128, %s932_s3, [#allocation9]   ;;  %v494_v31 = vsel %vm491_vm0, %v488_v30, 0.0 }
 0x14c   :  { %495 = vst [vmem:[#allocation10] sm:$0xff] %v494_v31  ;;  %s797_s13 = scalar_lea.vmem %s525_s30, 128  ;;  %p802_p5 = scmp.lt.s32.totalorder %s525_s30, %s525_s30 }
 0x14d   :  { %p798_p4 = scmp.ne.s32.totalorder %s525_s30, %s797_s13  ;;  %p803_p6 = scmp.lt.s32.totalorder %s797_s13, %s797_s13 }
 0x14f   :  { %p804_p7 = por %p803_p6, %p802_p5 }
 0x151   :  { %p805_p8 = pnand %p804_p7, %p798_p4 }
 0x153   :  { %808 = shalt.err (!%p805_p8)
}
 0x154   :  { %s809_s1 = scalar_lea.hbm %s933_s4, 128 }
 0x155   :  { %p810_p9 = scmp.ne.s32.totalorder %s933_s4, %s809_s1  ;;  %p813_p10 = scmp.lt.u32.totalorder %s809_s1, %s933_s4 }
 0x157   :  { %p815_p11 = pnand %p813_p10, %p810_p9 }
 0x159   :  { %818 = shalt.err (!%p815_p11)
}
 0x15a   :  { %527 = dma.vmem_to_hbm [thread:$0]  %s525_s30, 128, %s933_s4, [#allocation9]  }
 0x15b   :  { %823 = dma.done.wait [#allocation4], 256  }
 0x15c   :  { %824 = vsyncadd [#allocation4], 4294967040 }
 0x15d   :  { %825 = dma.done.wait [#allocation9], 256  }
 0x15e   :  { %826 = vsyncadd [#allocation9], 4294967040 }
 0x15f   :  { %537 = vsyncpa [#allocation3], 1 }
 0x160   :  { %538 = vsyncpa [#allocation6], 1 }
 0x161   :  { %539 = vsyncpa [#allocation4], 1 }
 0x162   :  { %540 = vsyncpa [#allocation9], 1 }

// kernel: anime_discriminator_forward.15
= control target key start
LH: loop header
LB: loop body
LE: loop exit
PB: predicated region body
PF: predicated region fallthrough
CT: control target
= control target key end

     0   :  { %7 = vsyncpa [#allocation3], 0  ;;  %s1172_s0 = inlined_call_operand.hbm [shape: bf16[16,1024], index: 0, kind: input, shape index: {}]   ;;  %s1173_s1 = inlined_call_operand.hbm [shape: bf16[1024,128], index: 1, kind: input, shape index: {}]   ;;  %s1174_s2 = inlined_call_operand.hbm [shape: f32[16,128], index: 2, kind: output, shape index: {}]  }
   0x1   :  { %8 = vsyncpa [#allocation6], 0 }
   0x2   :  { %9 = vsyncpa [#allocation4], 0  ;;  %s1112_s9 = smov [#allocation2]   ;;  %s1040_s13 = scalar_lea.hbm %s1172_s0, 1024 }
   0x3   :  { %s15_s10 = sshll.u32 %s1112_s9, 4  ;;  %p1041_p0 = scmp.ne.s32.totalorder %s1172_s0, %s1040_s13  ;;  %s16_s10 = int_to_ptr.vmem [resolvable:$true] %s15_s10 }
   0x4   :  { %p1044_p1 = scmp.lt.u32.totalorder %s1040_s13, %s1172_s0 }
   0x6   :  { %p1046_p2 = pnand %p1044_p1, %p1041_p0 }
   0x8   :  { %1049 = shalt.err (!%p1046_p2)
}
   0x9   :  { %s1050_s18 = scalar_lea.vmem %s16_s10, 1024  ;;  %p1055_p4 = scmp.lt.s32.totalorder %s16_s10, %s16_s10 }
   0xa   :  { %p1051_p3 = scmp.ne.s32.totalorder %s16_s10, %s1050_s18  ;;  %p1056_p5 = scmp.lt.s32.totalorder %s1050_s18, %s1050_s18 }
   0xc   :  { %p1057_p6 = por %p1056_p5, %p1055_p4 }
   0xe   :  { %p1058_p7 = pnand %p1057_p6, %p1051_p3 }
  0x10   :  { %1061 = shalt.err (!%p1058_p7)
}
  0x11   :  { %s1113_s19 = smov 512   ;;  %s1114_s20 = smov 32  }
  0x12   :  { %21 = dma.hbm_to_vmem [thread:$0]  %s1172_s0, 1024, %s16_s10, [#allocation3], %s1113_s19, %s1113_s19, %s1114_s20  }
  0x13   :  { %s1115_s23 = smov [#allocation5]   ;;  %s1062_s27 = scalar_lea.hbm %s1173_s1, 8192 }
  0x14   :  { %s27_s24 = sshll.u32 %s1115_s23, 4  ;;  %p1063_p8 = scmp.ne.s32.totalorder %s1173_s1, %s1062_s27  ;;  %s28_s24 = int_to_ptr.vmem [resolvable:$true] %s27_s24 }
  0x15   :  { %p1066_p9 = scmp.lt.u32.totalorder %s1062_s27, %s1173_s1 }
  0x17   :  { %p1068_p10 = pnand %p1066_p9, %p1063_p8 }
  0x19   :  { %1071 = shalt.err (!%p1068_p10)
}
  0x1a   :  { %s1072_s4 = scalar_lea.vmem %s28_s24, 8192  ;;  %p1077_p12 = scmp.lt.s32.totalorder %s28_s24, %s28_s24 }
  0x1b   :  { %p1073_p11 = scmp.ne.s32.totalorder %s28_s24, %s1072_s4  ;;  %p1078_p13 = scmp.lt.s32.totalorder %s1072_s4, %s1072_s4 }
  0x1d   :  { %p1079_p0 = por %p1078_p13, %p1077_p12 }
  0x1f   :  { %p1080_p1 = pnand %p1079_p0, %p1073_p11 }
  0x21   :  { %1083 = shalt.err (!%p1080_p1)
}
  0x22   :  { %s1116_s0 = smov 64   ;;  %s1117_s5 = smov 4  }
  0x23   :  { %33 = dma.hbm_to_vmem [thread:$0]  %s1173_s1, 8192, %s28_s24, [#allocation6], %s1116_s0, %s1116_s0, %s1117_s5  }
  0x24   :  { %1106 = dma.done.wait [#allocation3], 1024  }
  0x25   :  { %1107 = vsyncadd [#allocation3], 4294966272 }
  0x26   :  { %1108 = dma.done.wait [#allocation6], 8192  }
  0x27   :  { %1109 = vsyncadd [#allocation6], 4294959104  ;;  %v968_v0 = vld [vmem:[#allocation5 + $0x40] sm:$0xff]   ;;  %v972_v4 = vld [vmem:[#allocation5 + $0x48] sm:$0xff]   ;;  %s1118_s1 = smov [#allocation7]  }
  0x28   :  { %v969_v1 = vld [vmem:[#allocation5 + $0xc0] sm:$0xff]   ;;  %871 = vmatprep.subr.bf16.mxu0 %v968_v0  ;;  %v973_v5 = vld [vmem:[#allocation5 + $0xc8] sm:$0xff]   ;;  %v976_v8 = vld [vmem:[#allocation5 + $0x50] sm:$0xff]   ;;  %s786_s8 = sshll.u32 %s1118_s1, 4  ;;  %s787_s8 = int_to_ptr.vmem [resolvable:$true] %s786_s8 }
  0x29   :  { %v970_v2 = vld [vmem:[#allocation5] sm:$0xff]   ;;  %893 = vmatprep.subr.bf16.mxu1 %v969_v1  ;;  %v974_v6 = vld [vmem:[#allocation5 + $0x8] sm:$0xff]   ;;  %v977_v9 = vld [vmem:[#allocation5 + $0xd0] sm:$0xff]   ;;  %s1084_s9 = scalar_lea.vmem %s787_s8, 256  ;;  %p1089_p3 = scmp.lt.s32.totalorder %s787_s8, %s787_s8 }
  0x2a   :  { %v971_v3 = vld [vmem:[#allocation5 + $0x80] sm:$0xff]   ;;  %872 = vmatpush3.bf16.msra.mxu0 %v970_v2  ;;  %v975_v7 = vld [vmem:[#allocation5 + $0x88] sm:$0xff]   ;;  %v978_v10 = vld [vmem:[#allocation5 + $0x10] sm:$0xff]   ;;  %p1085_p2 = scmp.ne.s32.totalorder %s787_s8, %s1084_s9  ;;  %p1090_p4 = scmp.lt.s32.totalorder %s1084_s9, %s1084_s9 }
  0x2b   :  { %894 = vmatpush3.bf16.msra.mxu1 %v971_v3  ;;  %873 = vmatprep.subr.bf16.mxu0 %v972_v4  ;;  %v979_v11 = vld [vmem:[#allocation5 + $0x90] sm:$0xff]   ;;  %v980_v12 = vld [vmem:[#allocation5 + $0x58] sm:$0xff]   ;;  %v984_v16 = vld [vmem:[#allocation5 + $0x60] sm:$0xff]  }
  0x2c   :  { %895 = vmatprep.subr.bf16.mxu1 %v973_v5  ;;  %v981_v13 = vld [vmem:[#allocation5 + $0xd8] sm:$0xff]   ;;  %v985_v17 = vld [vmem:[#allocation5 + $0xe0] sm:$0xff]   ;;  %v988_v20 = vld [vmem:[#allocation5 + $0x68] sm:$0xff]   ;;  %p1091_p5 = por %p1090_p4, %p1089_p3 }
  0x2d   :  { %v982_v14 = vld [vmem:[#allocation5 + $0x18] sm:$0xff]   ;;  %v986_v18 = vld [vmem:[#allocation5 + $0x20] sm:$0xff]   ;;  %v989_v21 = vld [vmem:[#allocation5 + $0xe8] sm:$0xff]  }
  0x2e   :  { %874 = vmatpush3.bf16.msra.mxu0 %v974_v6  ;;  %v983_v15 = vld [vmem:[#allocation5 + $0x98] sm:$0xff]   ;;  %v987_v19 = vld [vmem:[#allocation5 + $0xa0] sm:$0xff]   ;;  %v990_v22 = vld [vmem:[#allocation5 + $0x28] sm:$0xff]   ;;  %p1092_p6 = pnand %p1091_p5, %p1085_p2 }
  0x2f   :  { %896 = vmatpush3.bf16.msra.mxu1 %v975_v7  ;;  %875 = vmatprep.subr.bf16.mxu0 %v976_v8  ;;  %v991_v23 = vld [vmem:[#allocation5 + $0xa8] sm:$0xff]   ;;  %v992_v24 = vld [vmem:[#allocation5 + $0x70] sm:$0xff]   ;;  %v996_v28 = vld [vmem:[#allocation5 + $0x78] sm:$0xff]  }
  0x30   :  { %897 = vmatprep.subr.bf16.mxu1 %v977_v9  ;;  %v993_v25 = vld [vmem:[#allocation5 + $0xf0] sm:$0xff]   ;;  %v997_v29 = vld [vmem:[#allocation5 + $0xf8] sm:$0xff]   ;;  %v41_v32 = vld [vmem:[#allocation2] sm:$0xff] }
  0x31   :  { %v994_v26 = vld [vmem:[#allocation5 + $0x30] sm:$0xff]   ;;  %v998_v30 = vld [vmem:[#allocation5 + $0x38] sm:$0xff]   ;;  %v45_v33 = vld [vmem:[#allocation2 + $0x20] sm:$0xff] }
  0x32   :  { %876 = vmatpush3.bf16.msra.mxu0 %v978_v10  ;;  %v995_v27 = vld [vmem:[#allocation5 + $0xb0] sm:$0xff]   ;;  %v999_v31 = vld [vmem:[#allocation5 + $0xb8] sm:$0xff]   ;;  %v42_v34 = vld [vmem:[#allocation2 + $0x8] sm:$0xff]  ;;  %v799_v35 = vcombine.low %v41_v32, %v45_v33  ;;  %v800_v36 = vcombine.high %v41_v32, %v45_v33 }
  0x33   :  { %898 = vmatpush3.bf16.msra.mxu1 %v979_v11  ;;  %877 = vmatprep.subr.bf16.mxu0 %v980_v12  ;;  %v46_v37 = vld [vmem:[#allocation2 + $0x28] sm:$0xff]  ;;  %v1000_v40 = vld [vmem:[#allocation5 + $0x140] sm:$0xff]   ;;  %v1008_v48 = vld [vmem:[#allocation5 + $0x150] sm:$0xff]  }
  0x34   :  { %899 = vmatprep.subr.bf16.mxu1 %v981_v13  ;;  %v801_v38 = vcombine.low %v42_v34, %v46_v37  ;;  %v802_v39 = vcombine.high %v42_v34, %v46_v37  ;;  %633 = vmatprep.mubr.bf16.mxu0 %v800_v36  ;;  %v1001_v41 = vld [vmem:[#allocation5 + $0x1c0] sm:$0xff]   ;;  %v1004_v44 = vld [vmem:[#allocation5 + $0x148] sm:$0xff]   ;;  %v1009_v49 = vld [vmem:[#allocation5 + $0x1d0] sm:$0xff]  }
  0x35   :  { %v1002_v42 = vld [vmem:[#allocation5 + $0x100] sm:$0xff]   ;;  %v1005_v45 = vld [vmem:[#allocation5 + $0x1c8] sm:$0xff]   ;;  %v1010_v50 = vld [vmem:[#allocation5 + $0x110] sm:$0xff]  }
  0x36   :  { %878 = vmatpush3.bf16.msra.mxu0 %v982_v14  ;;  %674 = vmatprep.mubr.bf16.mxu1 %v802_v39  ;;  %v1003_v43 = vld [vmem:[#allocation5 + $0x180] sm:$0xff]   ;;  %v1006_v46 = vld [vmem:[#allocation5 + $0x108] sm:$0xff]   ;;  %v1011_v51 = vld [vmem:[#allocation5 + $0x190] sm:$0xff]  }
  0x37   :  { %900 = vmatpush3.bf16.msra.mxu1 %v983_v15  ;;  %879 = vmatprep.subr.bf16.mxu0 %v984_v16  ;;  %v1007_v47 = vld [vmem:[#allocation5 + $0x188] sm:$0xff]   ;;  %v1012_v52 = vld [vmem:[#allocation5 + $0x158] sm:$0xff]   ;;  %v1016_v56 = vld [vmem:[#allocation5 + $0x160] sm:$0xff]  }
  0x38   :  { %901 = vmatprep.subr.bf16.mxu1 %v985_v17  ;;  %v1013_v53 = vld [vmem:[#allocation5 + $0x1d8] sm:$0xff]   ;;  %v1017_v57 = vld [vmem:[#allocation5 + $0x1e0] sm:$0xff]   ;;  %v1020_v60 = vld [vmem:[#allocation5 + $0x168] sm:$0xff]  }
  0x39   :  { %v1014_v54 = vld [vmem:[#allocation5 + $0x118] sm:$0xff]   ;;  %v1018_v58 = vld [vmem:[#allocation5 + $0x120] sm:$0xff]   ;;  %v1021_v61 = vld [vmem:[#allocation5 + $0x1e8] sm:$0xff]  }
  0x3a   :  { %880 = vmatpush3.bf16.msra.mxu0 %v986_v18  ;;  %v1015_v55 = vld [vmem:[#allocation5 + $0x198] sm:$0xff]   ;;  %v1019_v59 = vld [vmem:[#allocation5 + $0x1a0] sm:$0xff]   ;;  %v1022_v62 = vld [vmem:[#allocation5 + $0x128] sm:$0xff]  }
  0x3b   :  { %902 = vmatpush3.bf16.msra.mxu1 %v987_v19  ;;  %881 = vmatprep.subr.bf16.mxu0 %v988_v20  ;;  %v1023_v63 = vld [vmem:[#allocation5 + $0x1a8] sm:$0xff]   ;;  %v1024_v0 = vld [vmem:[#allocation5 + $0x170] sm:$0xff]   ;;  %v1028_v4 = vld [vmem:[#allocation5 + $0x178] sm:$0xff]  }
  0x3c   :  { %903 = vmatprep.subr.bf16.mxu1 %v989_v21  ;;  %v1025_v1 = vld [vmem:[#allocation5 + $0x1f0] sm:$0xff]   ;;  %v1029_v5 = vld [vmem:[#allocation5 + $0x1f8] sm:$0xff]  }
  0x3d   :  { %v1026_v2 = vld [vmem:[#allocation5 + $0x130] sm:$0xff]   ;;  %v1030_v6 = vld [vmem:[#allocation5 + $0x138] sm:$0xff]  }
  0x3e   :  { %882 = vmatpush3.bf16.msra.mxu0 %v990_v22  ;;  %v1027_v3 = vld [vmem:[#allocation5 + $0x1b0] sm:$0xff]   ;;  %v1031_v7 = vld [vmem:[#allocation5 + $0x1b8] sm:$0xff]  }
  0x3f   :  { %904 = vmatpush3.bf16.msra.mxu1 %v991_v23  ;;  %883 = vmatprep.subr.bf16.mxu0 %v992_v24  ;;  %v43_v8 = vld [vmem:[#allocation2 + $0x10] sm:$0xff]  ;;  %v44_v12 = vld [vmem:[#allocation2 + $0x18] sm:$0xff] }
  0x40   :  { %905 = vmatprep.subr.bf16.mxu1 %v993_v25  ;;  %v47_v9 = vld [vmem:[#allocation2 + $0x30] sm:$0xff]  ;;  %v48_v13 = vld [vmem:[#allocation2 + $0x38] sm:$0xff] }
  0x41   :  { %v803_v10 = vcombine.low %v43_v8, %v47_v9  ;;  %v804_v11 = vcombine.high %v43_v8, %v47_v9  ;;  %v805_v14 = vcombine.low %v44_v12, %v48_v13  ;;  %v806_v15 = vcombine.high %v44_v12, %v48_v13 }
  0x42   :  { %884 = vmatpush3.bf16.msra.mxu0 %v994_v26 }
  0x43   :  { %906 = vmatpush3.bf16.msra.mxu1 %v995_v27  ;;  %885 = vmatprep.subr.bf16.mxu0 %v996_v28 }
  0x44   :  { %907 = vmatprep.subr.bf16.mxu1 %v997_v29 }
  0x46   :  { %886 = vmatpush3.bf16.msra.mxu0 %v998_v30 }
  0x47   :  { %908 = vmatpush3.bf16.msra.mxu1 %v999_v31  ;;  %915 = vmatprep.subr.bf16.mxu0 %v1000_v40 }
  0x48   :  { %937 = vmatprep.subr.bf16.mxu1 %v1001_v41 }
  0x49   :  { %634 = vmatmul.mubr.bf16.vlgmr.msra.gmra.mrb[0].mxu0 %v799_v35 }
  0x4a   :  { %675 = vmatmul.mubr.bf16.vlgmr.msra.gmra.mrb[0].mxu1 %v801_v38  ;;  %916 = vmatpush3.bf16.msra.mxu0 %v1002_v42 }
  0x4b   :  { %938 = vmatpush3.bf16.msra.mxu1 %v1003_v43  ;;  %917 = vmatprep.subr.bf16.mxu0 %v1004_v44 }
  0x4c   :  { %939 = vmatprep.subr.bf16.mxu1 %v1005_v45  ;;  %715 = vmatprep.mubr.bf16.mxu0 %v804_v11 }
  0x4d   :  { %756 = vmatprep.mubr.bf16.mxu1 %v806_v15 }
  0x4e   :  { %918 = vmatpush3.bf16.msra.mxu0 %v1006_v46 }
  0x4f   :  { %940 = vmatpush3.bf16.msra.mxu1 %v1007_v47  ;;  %919 = vmatprep.subr.bf16.mxu0 %v1008_v48 }
  0x50   :  { %941 = vmatprep.subr.bf16.mxu1 %v1009_v49 }
  0x52   :  { %920 = vmatpush3.bf16.msra.mxu0 %v1010_v50 }
  0x53   :  { %942 = vmatpush3.bf16.msra.mxu1 %v1011_v51  ;;  %921 = vmatprep.subr.bf16.mxu0 %v1012_v52 }
  0x54   :  { %943 = vmatprep.subr.bf16.mxu1 %v1013_v53 }
  0x56   :  { %922 = vmatpush3.bf16.msra.mxu0 %v1014_v54 }
  0x57   :  { %944 = vmatpush3.bf16.msra.mxu1 %v1015_v55  ;;  %923 = vmatprep.subr.bf16.mxu0 %v1016_v56 }
  0x58   :  { %945 = vmatprep.subr.bf16.mxu1 %v1017_v57 }
  0x5a   :  { %924 = vmatpush3.bf16.msra.mxu0 %v1018_v58 }
  0x5b   :  { %946 = vmatpush3.bf16.msra.mxu1 %v1019_v59  ;;  %925 = vmatprep.subr.bf16.mxu0 %v1020_v60 }
  0x5c   :  { %947 = vmatprep.subr.bf16.mxu1 %v1021_v61 }
  0x5e   :  { %926 = vmatpush3.bf16.msra.mxu0 %v1022_v62 }
  0x5f   :  { %948 = vmatpush3.bf16.msra.mxu1 %v1023_v63  ;;  %927 = vmatprep.subr.bf16.mxu0 %v1024_v0 }
  0x60   :  { %949 = vmatprep.subr.bf16.mxu1 %v1025_v1 }
  0x62   :  { %928 = vmatpush3.bf16.msra.mxu0 %v1026_v2 }
  0x63   :  { %950 = vmatpush3.bf16.msra.mxu1 %v1027_v3  ;;  %929 = vmatprep.subr.bf16.mxu0 %v1028_v4 }
  0x64   :  { %951 = vmatprep.subr.bf16.mxu1 %v1029_v5 }
  0x66   :  { %930 = vmatpush3.bf16.msra.mxu0 %v1030_v6 }
  0x67   :  { %952 = vmatpush3.bf16.msra.mxu1 %v1031_v7 }
  0x69   :  { %716 = vmatmul.mubr.bf16.vlgmr.msra.gmra.mrb[4].mxu0 %v803_v10 }
  0x6a   :  { %757 = vmatmul.mubr.bf16.vlgmr.msra.gmra.mrb[4].mxu1 %v805_v14 }
 0x11c   :  { %v887_v16 = vpop.f32.mrb[0].mxu0 }
 0x11d   :  { %v909_v17 = vpop.f32.mrb[0].mxu1  ;;  %v888_v18 = vpop.f32.mrb[1].mxu0 }
 0x11e   :  { %v889_v19 = vadd.f32 %v888_v18, %v887_v16  ;;  %v910_v20 = vpop.f32.mrb[1].mxu1  ;;  %v890_v21 = vpop.f32.mrb[2].mxu0 }
 0x11f   :  { %v911_v22 = vadd.f32 %v910_v20, %v909_v17  ;;  %v912_v23 = vpop.f32.mrb[2].mxu1  ;;  %v891_v24 = vpop.f32.mrb[3].mxu0 }
 0x120   :  { %v892_v25 = vadd.f32 %v891_v24, %v890_v21  ;;  %v913_v26 = vpop.f32.mrb[3].mxu1 }
 0x121   :  { %v677_v27 = vadd.f32 %v911_v22, %v889_v19  ;;  %v914_v28 = vadd.f32 %v913_v26, %v912_v23 }
 0x123   :  { %v680_v29 = vadd.f32 %v914_v28, %v892_v25 }
 0x13c   :  { %v931_v30 = vpop.f32.mrb[4].mxu0 }
 0x13d   :  { %v953_v31 = vpop.f32.mrb[4].mxu1  ;;  %v932_v32 = vpop.f32.mrb[5].mxu0 }
 0x13e   :  { %v933_v33 = vadd.f32 %v932_v32, %v931_v30  ;;  %v954_v34 = vpop.f32.mrb[5].mxu1  ;;  %v934_v35 = vpop.f32.mrb[6].mxu0 }
 0x13f   :  { %v955_v36 = vadd.f32 %v954_v34, %v953_v31  ;;  %v956_v37 = vpop.f32.mrb[6].mxu1  ;;  %v935_v38 = vpop.f32.mrb[7].mxu0 }
 0x140   :  { %v718_v39 = vadd.f32 %v933_v33, %v677_v27  ;;  %v936_v40 = vadd.f32 %v935_v38, %v934_v35  ;;  %v957_v41 = vpop.f32.mrb[7].mxu1 }
 0x141   :  { %v958_v42 = vadd.f32 %v957_v41, %v956_v37 }
 0x142   :  { %v759_v43 = vadd.f32 %v955_v36, %v718_v39  ;;  %v721_v44 = vadd.f32 %v936_v40, %v680_v29 }
 0x144   :  { %v765_v45 = vsub.f32 0.0, %v759_v43  ;;  %v762_v46 = vadd.f32 %v958_v42, %v721_v44 }
 0x146   :  { %v767_v47 = vmul.f32 1.442695, %v765_v45  ;;  %v766_v48 = vsub.f32 0.0, %v762_v46 }
 0x148   :  { %1032 = vpow2.f32 %v767_v47  ;;  %v769_v49 = vmul.f32 1.442695, %v766_v48 }
 0x14a   :  { %1034 = vpow2.f32 %v769_v49 }
 0x152   :  { %v1033_v50 = vpop.eup %1032 }
 0x153   :  { %v771_v51 = vadd.f32 1.0, %v1033_v50 }
 0x154   :  { %v1035_v52 = vpop.eup %1034 }
 0x155   :  { %1036 = vrcp.f32 %v771_v51  ;;  %v772_v53 = vadd.f32 1.0, %v1035_v52 }
 0x157   :  { %1038 = vrcp.f32 %v772_v53 }
 0x15f   :  { %v1037_v54 = vpop.eup %1036 }
 0x160   :  { %v775_v55 = vmax.f32 %v1037_v54, 0.0 }
 0x161   :  { %v1039_v56 = vpop.eup %1038 }
 0x162   :  { %v776_v57 = vmax.f32 %v1039_v56, 0.0  ;;  %v777_v58 = vmin.f32 %v775_v55, 1.0 }
 0x164   :  { %v778_v59 = vmin.f32 %v776_v57, 1.0  ;;  %779 = vst [vmem:[#allocation7] sm:$0xff] %v777_v58 }
 0x166   :  { %780 = vst [vmem:[#allocation7 + $0x8] sm:$0xff] %v778_v59 }
 0x167   :  { %1095 = shalt.err (!%p1092_p6)
}
 0x168   :  { %s1096_s12 = scalar_lea.hbm %s1174_s2, 256 }
 0x169   :  { %p1097_p7 = scmp.ne.s32.totalorder %s1174_s2, %s1096_s12  ;;  %p1100_p8 = scmp.lt.u32.totalorder %s1096_s12, %s1174_s2 }
 0x16b   :  { %p1102_p9 = pnand %p1100_p8, %p1097_p7 }
 0x16d   :  { %1105 = shalt.err (!%p1102_p9)
}
 0x16e   :  { %s1119_s17 = smov 128   ;;  %s1120_s18 = smov 8  }
 0x16f   :  { %792 = dma.vmem_to_hbm [thread:$0]  %s787_s8, 256, %s1174_s2, [#allocation4], %s1119_s17, %s1119_s17, %s1120_s18  }
 0x170   :  { %1110 = dma.done.wait [#allocation4], 256  }
 0x171   :  { %1111 = vsyncadd [#allocation4], 4294967040 }
 0x172   :  { %796 = vsyncpa [#allocation3], 1 }
 0x173   :  { %797 = vsyncpa [#allocation6], 1 }
 0x174   :  { %798 = vsyncpa [#allocation4], 1 }

</bundles_post_ra>
